<compile_context>
chip_gen: v7x
topology: tpu7x:2x2x1
jax: 0.10.0
libtpu: 0.0.40
codegen_flags: <defaults>
</compile_context>

<pallas_src>
import numpy as np
import jax
import jax.numpy as jnp
from jax.experimental import pallas as pl
from jax.experimental.pallas import tpu as pltpu

# ----------------------------- small config ---------------------------------
B, H, W = 2, 16, 16     # batch, spatial
CIN = 32                # cf.end_filts          (input feature channels)
NF = 32                 # cf.n_rpn_features     (shared conv channels)
A = 3                   # len(cf.rpn_anchor_ratios)
DIM = 2                 # 2-D RPN
STRIDE = 1              # cf.rpn_anchor_stride
HW = H * W
NB = 2 * DIM * A        # bbox regression channels (12)
NCLS = 2 * A            # class logit channels (6)
NOUT = 2 * NCLS + NB    # merged kernel output width: logits | probs | bbox = 24


# ------------------------------ Pallas kernel --------------------------------
def rpn_kernel(patch_ref, w3_ref, b3_ref, wcat_ref, bcat_ref, out_ref):
    # patch_ref : (TM, 9*CIN)  bf16 im2col patches (lane-dense, built in wrapper)
    # w3_ref    : (9*CIN, NF)  bf16 flattened 3x3 conv weights ((ky,kx,cin) rows)
    # wcat_ref  : (NF, 24)     bf16 fused 1x1 weights [wc | wc_evenodd_swapped | wb]
    # out_ref   : (TM, 24)     f32  [logits(6) | probs(6) | bbox(12)]

    # conv_shared: single im2col MXU matmul (K=288) + bias + ReLU, f32 accumulate.
    feat = jnp.dot(patch_ref[...], w3_ref[...], preferred_element_type=jnp.float32)
    feat = jnp.maximum(feat + b3_ref[...], 0.0)

    # conv_class + conv_bbox fused into one matmul (N=24).
    out = jnp.dot(feat.astype(jnp.bfloat16), wcat_ref[...],
                  preferred_element_type=jnp.float32) + bcat_ref[...]

    cls = out[:, 0:NCLS]            # logits, original interleaved channel order
    par = out[:, NCLS:2 * NCLS]     # partner logits (even <-> odd swapped columns)

    # softmax over each (even, odd) pair — purely elementwise between the groups.
    m = jnp.maximum(cls, par)
    e = jnp.exp(cls - m)
    ep = jnp.exp(par - m)
    probs = e * pl.reciprocal(e + ep, approx=True)   # EUP reciprocal

    out_ref[...] = out                      # cols 0:6 logits / 12:24 bbox are final
    out_ref[:, NCLS:2 * NCLS] = probs       # overwrite partner block with probs


# ------------------------------ wrapper ---------------------------------------
def _num_row_blocks(total_rows):
    """2 row blocks on dual-TensorCore chips (v7x); 1 on v5e/v6e (single TC)."""
    try:
        kind = jax.devices()[0].device_kind.lower()
    except Exception:
        kind = ""
    n = 2 if ("v7" in kind or "7x" in kind) else 1
    return n if (total_rows % n == 0) else 1


def rpn_forward(x_nchw, params):
    """x_nchw: (B, CIN, H, W) f32 -> [logits (B,N,2), probs (B,N,2), bbox (B,N,2*DIM)]."""
    w3, b3, wc, bc, wb, bb = params
    b, c, h, w = x_nchw.shape
    k2 = 9 * c
    rows = b * h * w

    # ---- wrapper-side layout prep (fused by XLA around the pallas_call) --------
    x = jnp.transpose(x_nchw, (0, 2, 3, 1))                          # NHWC
    xp = jnp.pad(x, ((0, 0), (1, 1), (1, 1), (0, 0)))                # pad=1
    # im2col patch matrix; channel order (ky, kx, cin) matches w3.reshape below.
    patches = jnp.concatenate(
        [xp[:, ky:ky + h, kx:kx + w, :] for ky in range(3) for kx in range(3)],
        axis=-1).reshape(rows, k2)

    w3f = w3.reshape(k2, NF)
    # even/odd-swapped class weights -> partner logits for in-kernel pair softmax.
    swap = np.arange(NCLS).reshape(-1, 2)[:, ::-1].reshape(-1)       # [1,0,3,2,5,4]
    wcat = jnp.concatenate([wc, wc[:, swap], wb], axis=1)            # (NF, 24)
    bcat = jnp.concatenate([bc, bc[swap], bb])[None, :]              # (1, 24) f32

    # bf16 MXU operands, f32 accumulation.
    patches = patches.astype(jnp.bfloat16)
    w3f = w3f.astype(jnp.bfloat16)
    wcat = wcat.astype(jnp.bfloat16)

    nblk = _num_row_blocks(rows)
    tm = rows // nblk

    out = pl.pallas_call(
        rpn_kernel,
        out_shape=jax.ShapeDtypeStruct((rows, NOUT), jnp.float32),
        grid_spec=pltpu.PrefetchScalarGridSpec(
            num_scalar_prefetch=0,
            grid=(nblk,),
            in_specs=[
                pl.BlockSpec((tm, k2), lambda i: (i, 0)),        # im2col patches
                pl.BlockSpec((k2, NF), lambda i: (0, 0)),        # 3x3 weights (flat)
                pl.BlockSpec((1, NF), lambda i: (0, 0)),         # shared bias
                pl.BlockSpec((NF, NOUT), lambda i: (0, 0)),      # fused 1x1 weights
                pl.BlockSpec((1, NOUT), lambda i: (0, 0)),       # fused 1x1 bias
            ],
            out_specs=pl.BlockSpec((tm, NOUT), lambda i: (i, 0)),
        ),
        compiler_params=pltpu.CompilerParams(dimension_semantics=("parallel",)),
    )(patches, w3f, b3[None, :], wcat, bcat)

    # glue: pure slices + reshapes (interleaving already produced by the kernel).
    rpn_class_logits = out[:, :NCLS].reshape(b, -1, 2)
    rpn_probs = out[:, NCLS:2 * NCLS].reshape(b, -1, 2)
    rpn_bbox = out[:, 2 * NCLS:].reshape(b, -1, 2 * DIM)
    return rpn_class_logits, rpn_probs, rpn_bbox


# --------------------------- pure-JAX reference --------------------------------
def rpn_reference(x_nchw, params):
    w3, b3, wc, bc, wb, bb = params
    x = jnp.transpose(x_nchw, (0, 2, 3, 1))
    dn = jax.lax.conv_dimension_numbers(x.shape, w3.shape, ('NHWC', 'HWIO', 'NHWC'))
    feat = jax.lax.conv_general_dilated(x, w3, (STRIDE, STRIDE), 'SAME',
                                        dimension_numbers=dn) + b3
    feat = jnp.maximum(feat, 0.0)
    cls = jnp.einsum('bhwc,cd->bhwd', feat, wc) + bc
    box = jnp.einsum('bhwc,cd->bhwd', feat, wb) + bb
    logits = cls.reshape(x.shape[0], -1, 2)
    probs = jax.nn.softmax(logits, axis=-1)
    return logits, probs, box.reshape(x.shape[0], -1, 2 * DIM)


# ------------------------------- main ------------------------------------------
if __name__ == "__main__":
    key = jax.random.PRNGKey(0)
    kx, k1, k2, k3, k4, k5, k6 = jax.random.split(key, 7)

    x = jax.random.normal(kx, (B, CIN, H, W), dtype=jnp.float32)

    # deterministic synthetic parameters (HWIO / (in,out) layouts)
    w3 = 0.1 * jax.random.normal(k1, (3, 3, CIN, NF), dtype=jnp.float32)
    b3 = 0.1 * jax.random.normal(k2, (NF,), dtype=jnp.float32)
    wc = 0.1 * jax.random.normal(k3, (NF, NCLS), dtype=jnp.float32)
    bc = 0.1 * jax.random.normal(k4, (NCLS,), dtype=jnp.float32)
    wb = 0.1 * jax.random.normal(k5, (NF, NB), dtype=jnp.float32)
    bb = 0.1 * jax.random.normal(k6, (NB,), dtype=jnp.float32)
    params = (w3, b3, wc, bc, wb, bb)

    rpn_forward_j = jax.jit(rpn_forward)
    outs = jax.block_until_ready(rpn_forward_j(x, params))
    refs = jax.block_until_ready(rpn_reference(x, params))

    # Tolerance widened vs. a pure-f32 kernel because the MXU operands are bf16
    # (f32 accumulation); everything else (softmax, outputs) is f32.
    for o, r in zip(outs, refs):
        assert o.shape == r.shape, (o.shape, r.shape)
        np.testing.assert_allclose(np.asarray(o), np.asarray(r), rtol=2e-2, atol=2e-2)

    print("KERNEL_OK")
</pallas_src>

<mosaic_0001>
module attributes {stable_mosaic.version = 11 : i64} {
  func.func @rpn_kernel(%arg0: i32, %arg1: memref<512x288xbf16, #tpu.memory_space<vmem>>, %arg2: memref<288x32xbf16, #tpu.memory_space<vmem>>, %arg3: memref<1x32xf32, #tpu.memory_space<vmem>>, %arg4: memref<32x24xbf16, #tpu.memory_space<vmem>>, %arg5: memref<1x24xf32, #tpu.memory_space<vmem>>, %arg6: memref<512x24xf32, #tpu.memory_space<vmem>>) attributes {dimension_semantics = [#tpu.dimension_semantics<parallel>], iteration_bounds = array<i64: 1>, scalar_prefetch = 0 : i64, scratch_operands = 0 : i64, tpu.core_type = #tpu.core_type<tc>, window_params = [{transform_indices = @transform_0, window_bounds = array<i64: 512, 288>}, {pipeline_mode = #tpu.pipeline_mode<synchronous>, transform_indices = @transform_1, window_bounds = array<i64: 288, 32>}, {pipeline_mode = #tpu.pipeline_mode<synchronous>, transform_indices = @transform_2, window_bounds = array<i64: 1, 32>}, {pipeline_mode = #tpu.pipeline_mode<synchronous>, transform_indices = @transform_3, window_bounds = array<i64: 32, 24>}, {pipeline_mode = #tpu.pipeline_mode<synchronous>, transform_indices = @transform_4, window_bounds = array<i64: 1, 24>}, {transform_indices = @transform_5, window_bounds = array<i64: 512, 24>}]} {
    %c0 = arith.constant 0 : index
    %c0_0 = arith.constant 0 : index
    %0 = vector.load %arg1[%c0, %c0_0] : memref<512x288xbf16, #tpu.memory_space<vmem>>, vector<512x288xbf16>
    %c0_1 = arith.constant 0 : index
    %c0_2 = arith.constant 0 : index
    %1 = vector.load %arg2[%c0_1, %c0_2] : memref<288x32xbf16, #tpu.memory_space<vmem>>, vector<288x32xbf16>
    %cst = arith.constant dense<0.000000e+00> : vector<512x32xf32>
    %2 = tpu.matmul %0, %1, %cst {dimension_numbers = #tpu.dot_dimension_numbers<[1], [0], [0], [1], [0, 0, 1, 1], [], []>} : vector<512x288xbf16>, vector<288x32xbf16>, vector<512x32xf32> -> vector<512x32xf32>
    %c0_3 = arith.constant 0 : index
    %c0_4 = arith.constant 0 : index
    %3 = vector.load %arg3[%c0_3, %c0_4] : memref<1x32xf32, #tpu.memory_space<vmem>>, vector<1x32xf32>
    %4 = vector.broadcast %3 : vector<1x32xf32> to vector<512x32xf32>
    %5 = arith.addf %2, %4 : vector<512x32xf32>
    %cst_5 = arith.constant 0.000000e+00 : f32
    %6 = vector.broadcast %cst_5 : f32 to vector<512x32xf32>
    %7 = arith.maximumf %5, %6 : vector<512x32xf32>
    %8 = arith.truncf %7 : vector<512x32xf32> to vector<512x32xbf16>
    %c0_6 = arith.constant 0 : index
    %c0_7 = arith.constant 0 : index
    %9 = vector.load %arg4[%c0_6, %c0_7] : memref<32x24xbf16, #tpu.memory_space<vmem>>, vector<32x24xbf16>
    %cst_8 = arith.constant dense<0.000000e+00> : vector<512x24xf32>
    %10 = tpu.matmul %8, %9, %cst_8 {dimension_numbers = #tpu.dot_dimension_numbers<[1], [0], [0], [1], [0, 0, 1, 1], [], []>} : vector<512x32xbf16>, vector<32x24xbf16>, vector<512x24xf32> -> vector<512x24xf32>
    %c0_9 = arith.constant 0 : index
    %c0_10 = arith.constant 0 : index
    %11 = vector.load %arg5[%c0_9, %c0_10] : memref<1x24xf32, #tpu.memory_space<vmem>>, vector<1x24xf32>
    %12 = vector.broadcast %11 : vector<1x24xf32> to vector<512x24xf32>
    %13 = arith.addf %10, %12 : vector<512x24xf32>
    %14 = vector.extract_strided_slice %13 {offsets = [0, 0], sizes = [512, 6], strides = [1, 1]} : vector<512x24xf32> to vector<512x6xf32>
    %15 = vector.extract_strided_slice %13 {offsets = [0, 6], sizes = [512, 6], strides = [1, 1]} : vector<512x24xf32> to vector<512x6xf32>
    %16 = arith.maximumf %14, %15 : vector<512x6xf32>
    %17 = arith.subf %14, %16 : vector<512x6xf32>
    %18 = math.exp %17 : vector<512x6xf32>
    %19 = arith.subf %15, %16 : vector<512x6xf32>
    %20 = math.exp %19 : vector<512x6xf32>
    %21 = arith.addf %18, %20 : vector<512x6xf32>
    %22 = tpu.reciprocal %21 {approx = true} : vector<512x6xf32> -> vector<512x6xf32>
    %23 = arith.mulf %18, %22 : vector<512x6xf32>
    %c0_11 = arith.constant 0 : index
    %c0_12 = arith.constant 0 : index
    %24 = vector.load %arg6[%c0_11, %c0_12] : memref<512x24xf32, #tpu.memory_space<vmem>>, vector<512x24xf32>
    tpu.vector_store %arg6[%c0_11, %c0_12], %13 {strides = array<i32>} : memref<512x24xf32, #tpu.memory_space<vmem>>, vector<512x24xf32>,
    %c0_13 = arith.constant 0 : index
    %c6 = arith.constant 6 : index
    %25 = vector.load %arg6[%c0_13, %c6] : memref<512x24xf32, #tpu.memory_space<vmem>>, vector<512x6xf32>
    tpu.vector_store %arg6[%c0_13, %c6], %23 {strides = array<i32>} : memref<512x24xf32, #tpu.memory_space<vmem>>, vector<512x6xf32>,
    return
  }
  func.func @transform_0(%arg0: i32) -> (i32, i32) {
    %c0_i32 = arith.constant 0 : i32
    %c0_i32_0 = arith.constant 0 : i32
    return %arg0, %c0_i32 : i32, i32
  }
  func.func @transform_1(%arg0: i32) -> (i32, i32) {
    %c0_i32 = arith.constant 0 : i32
    %c0_i32_0 = arith.constant 0 : i32
    %c0_i32_1 = arith.constant 0 : i32
    return %c0_i32, %c0_i32_0 : i32, i32
  }
  func.func @transform_2(%arg0: i32) -> (i32, i32) {
    %c0_i32 = arith.constant 0 : i32
    %c0_i32_0 = arith.constant 0 : i32
    %c0_i32_1 = arith.constant 0 : i32
    return %c0_i32, %c0_i32_0 : i32, i32
  }
  func.func @transform_3(%arg0: i32) -> (i32, i32) {
    %c0_i32 = arith.constant 0 : i32
    %c0_i32_0 = arith.constant 0 : i32
    %c0_i32_1 = arith.constant 0 : i32
    return %c0_i32, %c0_i32_0 : i32, i32
  }
  func.func @transform_4(%arg0: i32) -> (i32, i32) {
    %c0_i32 = arith.constant 0 : i32
    %c0_i32_0 = arith.constant 0 : i32
    %c0_i32_1 = arith.constant 0 : i32
    return %c0_i32, %c0_i32_0 : i32, i32
  }
  func.func @transform_5(%arg0: i32) -> (i32, i32) {
    %c0_i32 = arith.constant 0 : i32
    %c0_i32_0 = arith.constant 0 : i32
    return %arg0, %c0_i32 : i32, i32
  }
}

</mosaic_0001>

<bundles_post_ra>
// kernel: rpn_forward.1
= control target key start
LH: loop header
LB: loop body
LE: loop exit
PB: predicated region body
PF: predicated region fallthrough
CT: control target
= control target key end

     0   :  { %v4678_v0 = vmov 0   ;;  %vm780_vm0 = vcmask 261120   ;;  %vm3367_vm1 = vcmask 195584   ;;  %s4680_s21 = smov 6   ;;  %vm3688_vm2 = vcmask 97328   ;;  %s6995_s1 = inlined_call_operand.vmem [shape: bf16[288,32], index: 1, kind: input, shape index: {}]   ;;  %s6996_s0 = inlined_call_operand.vmem [shape: bf16[512,288], index: 0, kind: input, shape index: {}]   ;;  %s6997_s3 = inlined_call_operand.vmem [shape: bf16[32,24], index: 3, kind: input, shape index: {}]   ;;  %s6998_s2 = inlined_call_operand.vmem [shape: f32[1,32], index: 2, kind: input, shape index: {}]   ;;  %s6999_s4 = inlined_call_operand.vmem [shape: f32[1,24], index: 4, kind: input, shape index: {}]   ;;  %s7000_s5 = inlined_call_operand.vmem [shape: f32[512,24], index: 5, kind: output, shape index: {}]  }
   0x1   :  { %877 = vmatprep.subr.bf16.mxu0 %v4678_v0  ;;  %v4146_v1 = vld [vmem:[%s6995_s1] sm:$0xff]   ;;  %v4147_v2 = vld [vmem:[%s6995_s1 + $0x8] sm:$0xff]   ;;  %v4148_v3 = vld [vmem:[%s6995_s1 + $0x10] sm:$0xff]  }
   0x2   :  { %878 = vmatpush1.bf16.msra.mxu0 %v4146_v1  ;;  %v4149_v4 = vld [vmem:[%s6995_s1 + $0x18] sm:$0xff]   ;;  %v4150_v5 = vld [vmem:[%s6995_s1 + $0x20] sm:$0xff]   ;;  %v4163_v7 = vld [vmem:[%s6995_s1 + $0x88] sm:$0xff]  }
   0x3   :  { %879 = vmatprep.subr.bf16.mxu0 %v4678_v0  ;;  %v4161_v6 = vld [vmem:[%s6995_s1 + $0x80] sm:$0xff]   ;;  %v4151_v8 = vld [vmem:[%s6995_s1 + $0x28] sm:$0xff]   ;;  %v4152_v12 = vld [vmem:[%s6995_s1 + $0x30] sm:$0xff]  }
   0x4   :  { %4007 = vmatprep.subr.bf16.mxu1 %v4161_v6  ;;  %v4166_v9 = vld [vmem:[%s6996_s0 + $0x4] ss:$12 sps:$4 sm:$0xff]   ;;  %v4167_v10 = vld [vmem:[%s6996_s0 + $0x8] ss:$12 sps:$4 sm:$0xff]   ;;  %v4168_v11 = vld [vmem:[%s6996_s0 + $0x20] ss:$12 sps:$4 sm:$0xff]  }
   0x5   :  { %4008 = vmatpush3.bf16.msra.mxu1 %v4161_v6  ;;  %909 = vmatprep.mubr.bf16.mxu0 %v4166_v9  ;;  %v4175_v13 = vld [vmem:[%s6996_s0 + $0x38] ss:$12 sps:$4 sm:$0xff]   ;;  %v4176_v16 = vld [vmem:[%s6996_s0 + $0x50] ss:$12 sps:$4 sm:$0xff]   ;;  %v4183_v17 = vld [vmem:[%s6996_s0 + $0x68] ss:$12 sps:$4 sm:$0xff]  }
   0x6   :  { %880 = vmatpush1.bf16.msra.mxu0 %v4147_v2  ;;  %4009 = vmatprep.subr.bf16.mxu1 %v4163_v7  ;;  %v4153_v14 = vld [vmem:[%s6995_s1 + $0x38] sm:$0xff]   ;;  %v4154_v15 = vld [vmem:[%s6995_s1 + $0x40] sm:$0xff]   ;;  %v4155_v18 = vld [vmem:[%s6995_s1 + $0x48] sm:$0xff]  }
   0x7   :  { %881 = vmatprep.subr.bf16.mxu0 %v4678_v0  ;;  %4011 = vmatprep.mubr.msk.bf16.mxu1 %vm780_vm0, %v4167_v10  ;;  %v4156_v19 = vld [vmem:[%s6995_s1 + $0x50] sm:$0xff]   ;;  %v4184_v20 = vld [vmem:[%s6996_s0 + $0x80] ss:$12 sps:$4 sm:$0xff]   ;;  %v4191_v21 = vld [vmem:[%s6996_s0 + $0x98] ss:$12 sps:$4 sm:$0xff]  }
   0x8   :  { %v4157_v22 = vld [vmem:[%s6995_s1 + $0x58] sm:$0xff]   ;;  %v4158_v23 = vld [vmem:[%s6995_s1 + $0x60] sm:$0xff]   ;;  %v4199_v25 = vld [vmem:[%s6996_s0 + $0xc8] ss:$12 sps:$4 sm:$0xff]  }
   0x9   :  { %4010 = vmatpush3.bf16.msra.mxu1 %v4163_v7  ;;  %v4192_v24 = vld [vmem:[%s6996_s0 + $0xb0] ss:$12 sps:$4 sm:$0xff]   ;;  %v4159_v26 = vld [vmem:[%s6995_s1 + $0x68] sm:$0xff]   ;;  %v4217_v27 = vld [vmem:[%s6997_s3] sm:$0xff]  }
   0xa   :  { %882 = vmatpush1.bf16.msra.mxu0 %v4148_v3  ;;  %v4160_v28 = vld [vmem:[%s6995_s1 + $0x70] sm:$0xff]   ;;  %4075 = vmatprep.subr.bf16.mxu1 %v4217_v27  ;;  %v4200_v29 = vld [vmem:[%s6996_s0 + $0xe0] ss:$12 sps:$4 sm:$0xff]   ;;  %v4207_v30 = vld [vmem:[%s6996_s0 + $0xf8] ss:$12 sps:$4 sm:$0xff]  }
   0xb   :  { %883 = vmatprep.subr.bf16.mxu0 %v4678_v0  ;;  %v4162_v31 = vld [vmem:[%s6995_s1 + $0x78] sm:$0xff]   ;;  %v4164_v32 = vld [vmem:[%s6996_s0] ss:$12 sps:$4 sm:$0xff]   ;;  %v4215_v35 = vld [vmem:[%s6996_s0 + $0x128] ss:$12 sps:$4 sm:$0xff]  }
   0xc   :  { %4012 = vmatmul.mubr.msk.bf16.vlgmr.msra.gmra.mrb[0].mxu1 %vm780_vm0, %v4168_v11  ;;  %v4208_v33 = vld [vmem:[%s6996_s0 + $0x110] ss:$12 sps:$4 sm:$0xff]   ;;  %v4171_v36 = vld [vmem:[%s6996_s0 + $0x18] ss:$12 sps:$4 sm:$0xff]   ;;  %v4216_v37 = vld [vmem:[%s6996_s0 + $0x140] ss:$12 sps:$4 sm:$0xff]  }
   0xd   :  { %4015 = vmatprep.mubr.msk.bf16.mxu1 %vm780_vm0, %v4175_v13  ;;  %4076 = vmatpush3.bf16.msra.mxu1 %v4217_v27  ;;  %v4169_v34 = vld [vmem:[%s6996_s0 + $0x1c] ss:$12 sps:$4 sm:$0xff]   ;;  %v4172_v38 = vld [vmem:[%s6996_s0 + $0x34] ss:$12 sps:$4 sm:$0xff]   ;;  %v4224_v39 = vld [vmem:[%s6996_s0 + $0x158] ss:$12 sps:$4 sm:$0xff]  }
   0xe   :  { %884 = vmatpush1.bf16.msra.mxu0 %v4149_v4  ;;  %v4174_v40 = vld [vmem:[%s6996_s0 + $0x30] ss:$12 sps:$4 sm:$0xff]   ;;  %v4177_v42 = vld [vmem:[%s6996_s0 + $0x4c] ss:$12 sps:$4 sm:$0xff]   ;;  %v4232_v43 = vld [vmem:[%s6996_s0 + $0x188] ss:$12 sps:$4 sm:$0xff]  }
   0xf   :  { %885 = vmatprep.subr.bf16.mxu0 %v4678_v0  ;;  %v4225_v41 = vld [vmem:[%s6996_s0 + $0x170] ss:$12 sps:$4 sm:$0xff]   ;;  %v4179_v44 = vld [vmem:[%s6996_s0 + $0x48] ss:$12 sps:$4 sm:$0xff]   ;;  %v4233_v45 = vld [vmem:[%s6996_s0 + $0x1a0] ss:$12 sps:$4 sm:$0xff]  }
  0x10   :  { %v4180_v46 = vld [vmem:[%s6996_s0 + $0x64] ss:$12 sps:$4 sm:$0xff]   ;;  %v4182_v48 = vld [vmem:[%s6996_s0 + $0x60] ss:$12 sps:$4 sm:$0xff]   ;;  %v4185_v50 = vld [vmem:[%s6996_s0 + $0x7c] ss:$12 sps:$4 sm:$0xff]  }
  0x11   :  { %v4240_v47 = vld [vmem:[%s6996_s0 + $0x1b8] ss:$12 sps:$4 sm:$0xff]   ;;  %v4241_v49 = vld [vmem:[%s6996_s0 + $0x1d0] ss:$12 sps:$4 sm:$0xff]   ;;  %v4248_v51 = vld [vmem:[%s6996_s0 + $0x1e8] ss:$12 sps:$4 sm:$0xff]  }
  0x12   :  { %886 = vmatpush1.bf16.msra.mxu0 %v4150_v5  ;;  %v4250_v52 = vld [vmem:[%s6997_s3 + $0x8] sm:$0xff]   ;;  %v4187_v53 = vld [vmem:[%s6996_s0 + $0x78] ss:$12 sps:$4 sm:$0xff]   ;;  %v4188_v55 = vld [vmem:[%s6996_s0 + $0x94] ss:$12 sps:$4 sm:$0xff]  }
  0x13   :  { %887 = vmatprep.subr.bf16.mxu0 %v4678_v0  ;;  %4077 = vmatprep.subr.bf16.mxu1 %v4250_v52  ;;  %v4249_v54 = vld [vmem:[%s6996_s0 + $0x200] ss:$12 sps:$4 sm:$0xff]   ;;  %v4190_v56 = vld [vmem:[%s6996_s0 + $0x90] ss:$12 sps:$4 sm:$0xff]   ;;  %v4257_v58 = vld [vmem:[%s6996_s0 + $0x218] ss:$12 sps:$4 sm:$0xff]  }
  0x14   :  { %4016 = vmatmul.mubr.msk.bf16.gmra.mrb[4].mxu1 %vm780_vm0, %v4176_v16  ;;  %v4193_v57 = vld [vmem:[%s6996_s0 + $0xac] ss:$12 sps:$4 sm:$0xff]   ;;  %v4258_v59 = vld [vmem:[%s6996_s0 + $0x230] ss:$12 sps:$4 sm:$0xff]   ;;  %v4195_v60 = vld [vmem:[%s6996_s0 + $0xa8] ss:$12 sps:$4 sm:$0xff]  }
  0x15   :  { %4019 = vmatprep.mubr.msk.bf16.mxu1 %vm780_vm0, %v4183_v17  ;;  %4078 = vmatpush3.bf16.msra.mxu1 %v4250_v52  ;;  %v4196_v61 = vld [vmem:[%s6996_s0 + $0xc4] ss:$12 sps:$4 sm:$0xff]   ;;  %v4198_v62 = vld [vmem:[%s6996_s0 + $0xc0] ss:$12 sps:$4 sm:$0xff]   ;;  %v4201_v63 = vld [vmem:[%s6996_s0 + $0xdc] ss:$12 sps:$4 sm:$0xff]  }
  0x16   :  { %888 = vmatpush1.bf16.msra.mxu0 %v4151_v8  ;;  %v4266_v1 = vld [vmem:[%s6996_s0 + $0x260] ss:$12 sps:$4 sm:$0xff]   ;;  %v4203_v2 = vld [vmem:[%s6996_s0 + $0xd8] ss:$12 sps:$4 sm:$0xff]   ;;  %v4271_v5 = vld [vmem:[%s6996_s0 + $0x290] ss:$12 sps:$4 sm:$0xff]  }
  0x17   :  { %889 = vmatprep.subr.bf16.mxu0 %v4678_v0  ;;  %v4204_v3 = vld [vmem:[%s6996_s0 + $0xf4] ss:$12 sps:$4 sm:$0xff]   ;;  %v4270_v4 = vld [vmem:[%s6996_s0 + $0x278] ss:$12 sps:$4 sm:$0xff]   ;;  %v4206_v6 = vld [vmem:[%s6996_s0 + $0xf0] ss:$12 sps:$4 sm:$0xff]  }
  0x18   :  { %v4209_v7 = vld [vmem:[%s6996_s0 + $0x10c] ss:$12 sps:$4 sm:$0xff]   ;;  %v4275_v8 = vld [vmem:[%s6996_s0 + $0x2a8] ss:$12 sps:$4 sm:$0xff]   ;;  %v4212_v11 = vld [vmem:[%s6996_s0 + $0x124] ss:$12 sps:$4 sm:$0xff]  }
  0x19   :  { %v4276_v9 = vld [vmem:[%s6996_s0 + $0x2c0] ss:$12 sps:$4 sm:$0xff]   ;;  %v4211_v10 = vld [vmem:[%s6996_s0 + $0x108] ss:$12 sps:$4 sm:$0xff]   ;;  %v4281_v13 = vld [vmem:[%s6996_s0 + $0x2f0] ss:$12 sps:$4 sm:$0xff]  }
  0x1a   :  { %890 = vmatpush1.bf16.msra.mxu0 %v4152_v12  ;;  %v4280_v12 = vld [vmem:[%s6996_s0 + $0x2d8] ss:$12 sps:$4 sm:$0xff]   ;;  %v4221_v17 = vld [vmem:[%s6996_s0 + $0x154] ss:$12 sps:$4 sm:$0xff]  }
  0x1b   :  { %891 = vmatprep.subr.bf16.mxu0 %v4678_v0  ;;  %v4220_v16 = vld [vmem:[%s6996_s0 + $0x138] ss:$12 sps:$4 sm:$0xff]  }
  0x1c   :  { %4020 = vmatmul.mubr.msk.bf16.gmra.mrb[8].mxu1 %vm780_vm0, %v4184_v20  ;;  %v4228_v20 = vld [vmem:[%s6996_s0 + $0x168] ss:$12 sps:$4 sm:$0xff]   ;;  %v4242_v27 = vld [vmem:[%s6996_s0 + $0x1cc] ss:$12 sps:$4 sm:$0xff]  }
  0x1d   :  { %4023 = vmatprep.mubr.msk.bf16.mxu1 %vm780_vm0, %v4191_v21  ;;  %v4229_v21 = vld [vmem:[%s6996_s0 + $0x184] ss:$12 sps:$4 sm:$0xff]  }
  0x1e   :  { %892 = vmatpush1.bf16.msra.mxu0 %v4153_v14  ;;  %v4214_v14 = vld [vmem:[%s6996_s0 + $0x120] ss:$12 sps:$4 sm:$0xff]  }
  0x1f   :  { %893 = vmatprep.subr.bf16.mxu0 %v4678_v0 }
  0x22   :  { %894 = vmatpush1.bf16.msra.mxu0 %v4154_v15  ;;  %v4218_v15 = vld [vmem:[%s6996_s0 + $0x13c] ss:$12 sps:$4 sm:$0xff]  }
  0x23   :  { %895 = vmatprep.subr.bf16.mxu0 %v4678_v0 }
  0x24   :  { %4024 = vmatmul.mubr.msk.bf16.gmra.mrb[12].mxu1 %vm780_vm0, %v4192_v24  ;;  %v4236_v24 = vld [vmem:[%s6996_s0 + $0x198] ss:$12 sps:$4 sm:$0xff]  }
  0x25   :  { %4027 = vmatprep.mubr.msk.bf16.mxu1 %vm780_vm0, %v4199_v25  ;;  %v4237_v25 = vld [vmem:[%s6996_s0 + $0x1b4] ss:$12 sps:$4 sm:$0xff]  }
  0x26   :  { %896 = vmatpush1.bf16.msra.mxu0 %v4155_v18  ;;  %v4223_v18 = vld [vmem:[%s6996_s0 + $0x150] ss:$12 sps:$4 sm:$0xff]  }
  0x27   :  { %897 = vmatprep.subr.bf16.mxu0 %v4678_v0 }
  0x2a   :  { %898 = vmatpush1.bf16.msra.mxu0 %v4156_v19  ;;  %v4226_v19 = vld [vmem:[%s6996_s0 + $0x16c] ss:$12 sps:$4 sm:$0xff]  }
  0x2b   :  { %899 = vmatprep.subr.bf16.mxu0 %v4678_v0 }
  0x2c   :  { %4028 = vmatmul.mubr.msk.bf16.gmra.mrb[16].mxu1 %vm780_vm0, %v4200_v29  ;;  %v4245_v29 = vld [vmem:[%s6996_s0 + $0x1e4] ss:$12 sps:$4 sm:$0xff]  }
  0x2d   :  { %4031 = vmatprep.mubr.msk.bf16.mxu1 %vm780_vm0, %v4207_v30  ;;  %v4247_v30 = vld [vmem:[%s6996_s0 + $0x1e0] ss:$12 sps:$4 sm:$0xff]  }
  0x2e   :  { %900 = vmatpush1.bf16.msra.mxu0 %v4157_v22  ;;  %v4231_v22 = vld [vmem:[%s6996_s0 + $0x180] ss:$12 sps:$4 sm:$0xff]  }
  0x2f   :  { %901 = vmatprep.subr.bf16.mxu0 %v4678_v0 }
  0x32   :  { %902 = vmatpush1.bf16.msra.mxu0 %v4158_v23  ;;  %v4234_v23 = vld [vmem:[%s6996_s0 + $0x19c] ss:$12 sps:$4 sm:$0xff]  }
  0x33   :  { %903 = vmatprep.subr.bf16.mxu0 %v4678_v0 }
  0x34   :  { %4032 = vmatmul.mubr.msk.bf16.gmra.mrb[20].mxu1 %vm780_vm0, %v4208_v33  ;;  %v4254_v33 = vld [vmem:[%s6996_s0 + $0x214] ss:$12 sps:$4 sm:$0xff]  }
  0x35   :  { %4035 = vmatprep.mubr.msk.bf16.mxu1 %vm780_vm0, %v4215_v35  ;;  %v4256_v35 = vld [vmem:[%s6996_s0 + $0x210] ss:$12 sps:$4 sm:$0xff]  }
  0x36   :  { %904 = vmatpush1.bf16.msra.mxu0 %v4159_v26  ;;  %v4239_v26 = vld [vmem:[%s6996_s0 + $0x1b0] ss:$12 sps:$4 sm:$0xff]  }
  0x37   :  { %905 = vmatprep.subr.bf16.mxu0 %v4678_v0 }
  0x3a   :  { %906 = vmatpush1.bf16.msra.mxu0 %v4160_v28  ;;  %v4244_v28 = vld [vmem:[%s6996_s0 + $0x1c8] ss:$12 sps:$4 sm:$0xff]  }
  0x3b   :  { %907 = vmatprep.subr.bf16.mxu0 %v4678_v0  ;;  %v4265_v0 = vld [vmem:[%s6996_s0 + $0x248] ss:$12 sps:$4 sm:$0xff]  }
  0x3c   :  { %4036 = vmatmul.mubr.msk.bf16.gmra.mrb[24].mxu1 %vm780_vm0, %v4216_v37  ;;  %v4259_v37 = vld [vmem:[%s6996_s0 + $0x22c] ss:$12 sps:$4 sm:$0xff]  }
  0x3d   :  { %4039 = vmatprep.mubr.msk.bf16.mxu1 %vm780_vm0, %v4224_v39 }
  0x3e   :  { %908 = vmatpush1.bf16.msra.mxu0 %v4162_v31  ;;  %v4251_v31 = vld [vmem:[%s6996_s0 + $0x1fc] ss:$12 sps:$4 sm:$0xff]  }
  0x41   :  { %910 = vmatmul.mubr.bf16.vlgmr.msra.gmra.mrb[0].mxu0 %v4164_v32  ;;  %v4253_v32 = vld [vmem:[%s6996_s0 + $0x1f8] ss:$12 sps:$4 sm:$0xff]  }
  0x42   :  { %917 = vmatprep.mubr.bf16.mxu0 %v4169_v34 }
  0x44   :  { %4040 = vmatmul.mubr.msk.bf16.gmra.mrb[28].mxu1 %vm780_vm0, %v4225_v41  ;;  %v4261_v41 = vld [vmem:[%s6996_s0 + $0x228] ss:$12 sps:$4 sm:$0xff]  }
  0x45   :  { %4043 = vmatprep.mubr.msk.bf16.mxu1 %vm780_vm0, %v4232_v43  ;;  %v4262_v43 = vld [vmem:[%s6996_s0 + $0x244] ss:$12 sps:$4 sm:$0xff]  }
  0x49   :  { %918 = vmatmul.mubr.bf16.gmra.mrb[4].mxu0 %v4171_v36 }
  0x4a   :  { %925 = vmatprep.mubr.bf16.mxu0 %v4172_v38 }
  0x4c   :  { %4044 = vmatmul.mubr.msk.bf16.gmra.mrb[32].mxu1 %vm780_vm0, %v4233_v45 }
  0x4d   :  { %4047 = vmatprep.mubr.msk.bf16.mxu1 %vm780_vm0, %v4240_v47  ;;  %v4264_v47 = vld [vmem:[%s6996_s0 + $0x240] ss:$12 sps:$4 sm:$0xff]  }
  0x51   :  { %926 = vmatmul.mubr.bf16.gmra.mrb[8].mxu0 %v4174_v40 }
  0x52   :  { %933 = vmatprep.mubr.bf16.mxu0 %v4177_v42 }
  0x54   :  { %4048 = vmatmul.mubr.msk.bf16.gmra.mrb[36].mxu1 %vm780_vm0, %v4241_v49  ;;  %v4267_v49 = vld [vmem:[%s6996_s0 + $0x25c] ss:$12 sps:$4 sm:$0xff]  }
  0x55   :  { %4051 = vmatprep.mubr.msk.bf16.mxu1 %vm780_vm0, %v4248_v51 }
  0x59   :  { %934 = vmatmul.mubr.bf16.gmra.mrb[12].mxu0 %v4179_v44 }
  0x5a   :  { %941 = vmatprep.mubr.bf16.mxu0 %v4180_v46 }
  0x5c   :  { %4052 = vmatmul.mubr.msk.bf16.gmra.mrb[40].mxu1 %vm780_vm0, %v4249_v54 }
  0x5d   :  { %4055 = vmatprep.mubr.msk.bf16.mxu1 %vm780_vm0, %v4257_v58 }
  0x61   :  { %942 = vmatmul.mubr.bf16.gmra.mrb[16].mxu0 %v4182_v48 }
  0x62   :  { %949 = vmatprep.mubr.bf16.mxu0 %v4185_v50 }
  0x64   :  { %4056 = vmatmul.mubr.msk.bf16.gmra.mrb[44].mxu1 %vm780_vm0, %v4258_v59  ;;  %v4274_v59 = vld [vmem:[%s6996_s0 + $0x270] ss:$12 sps:$4 sm:$0xff]  }
  0x65   :  { %4059 = vmatprep.mubr.msk.bf16.mxu1 %vm780_vm0, %v4265_v0  ;;  %v5119_v0 = vld [vmem:[%s6998_s2] ss:$0 sm:$0xff] }
  0x69   :  { %950 = vmatmul.mubr.bf16.gmra.mrb[20].mxu0 %v4187_v53  ;;  %v4269_v53 = vld [vmem:[%s6996_s0 + $0x258] ss:$12 sps:$4 sm:$0xff]  }
  0x6a   :  { %957 = vmatprep.mubr.bf16.mxu0 %v4188_v55  ;;  %v4272_v55 = vld [vmem:[%s6996_s0 + $0x274] ss:$12 sps:$4 sm:$0xff]  }
  0x6c   :  { %4060 = vmatmul.mubr.msk.bf16.gmra.mrb[48].mxu1 %vm780_vm0, %v4266_v1 }
  0x6d   :  { %4063 = vmatprep.mubr.msk.bf16.mxu1 %vm780_vm0, %v4270_v4 }
  0x71   :  { %958 = vmatmul.mubr.bf16.gmra.mrb[24].mxu0 %v4190_v56 }
  0x72   :  { %965 = vmatprep.mubr.bf16.mxu0 %v4193_v57 }
  0x74   :  { %4064 = vmatmul.mubr.msk.bf16.gmra.mrb[52].mxu1 %vm780_vm0, %v4271_v5  ;;  %v4279_v5 = vld [vmem:[%s6996_s0 + $0x288] ss:$12 sps:$4 sm:$0xff]  }
  0x75   :  { %4067 = vmatprep.mubr.msk.bf16.mxu1 %vm780_vm0, %v4275_v8  ;;  %v4282_v8 = vld [vmem:[%s6996_s0 + $0x2a4] ss:$12 sps:$4 sm:$0xff]  }
  0x79   :  { %966 = vmatmul.mubr.bf16.gmra.mrb[28].mxu0 %v4195_v60 }
  0x7a   :  { %973 = vmatprep.mubr.bf16.mxu0 %v4196_v61  ;;  %v4277_v61 = vld [vmem:[%s6996_s0 + $0x28c] ss:$12 sps:$4 sm:$0xff]  }
  0x7c   :  { %4068 = vmatmul.mubr.msk.bf16.gmra.mrb[56].mxu1 %vm780_vm0, %v4276_v9 }
  0x7d   :  { %4071 = vmatprep.mubr.msk.bf16.mxu1 %vm780_vm0, %v4280_v12 }
  0x81   :  { %974 = vmatmul.mubr.bf16.gmra.mrb[32].mxu0 %v4198_v62 }
  0x82   :  { %981 = vmatprep.mubr.bf16.mxu0 %v4201_v63 }
  0x84   :  { %4072 = vmatmul.mubr.msk.bf16.gmra.mrb[60].mxu1 %vm780_vm0, %v4281_v13 }
  0x89   :  { %982 = vmatmul.mubr.bf16.gmra.mrb[36].mxu0 %v4203_v2 }
  0x8a   :  { %989 = vmatprep.mubr.bf16.mxu0 %v4204_v3 }
  0x91   :  { %990 = vmatmul.mubr.bf16.gmra.mrb[40].mxu0 %v4206_v6 }
  0x92   :  { %997 = vmatprep.mubr.bf16.mxu0 %v4209_v7 }
  0x99   :  { %998 = vmatmul.mubr.bf16.gmra.mrb[44].mxu0 %v4211_v10 }
  0x9a   :  { %1005 = vmatprep.mubr.bf16.mxu0 %v4212_v11 }
  0xa1   :  { %1006 = vmatmul.mubr.bf16.gmra.mrb[48].mxu0 %v4214_v14 }
  0xa2   :  { %1013 = vmatprep.mubr.bf16.mxu0 %v4218_v15 }
  0xa9   :  { %1014 = vmatmul.mubr.bf16.gmra.mrb[52].mxu0 %v4220_v16 }
  0xaa   :  { %1021 = vmatprep.mubr.bf16.mxu0 %v4221_v17 }
  0xb1   :  { %1022 = vmatmul.mubr.bf16.gmra.mrb[56].mxu0 %v4223_v18 }
  0xb2   :  { %1029 = vmatprep.mubr.bf16.mxu0 %v4226_v19 }
  0xb9   :  { %1030 = vmatmul.mubr.bf16.gmra.mrb[60].mxu0 %v4228_v20 }
  0xba   :  { %1037 = vmatprep.mubr.bf16.mxu0 %v4229_v21 }
  0xc1   :  { %1038 = vmatmul.mubr.bf16.gmra.mrb[64].mxu0 %v4231_v22  ;;  %v4284_v22 = vld [vmem:[%s6996_s0 + $0x2a0] ss:$12 sps:$4 sm:$0xff]  }
  0xc2   :  { %1045 = vmatprep.mubr.bf16.mxu0 %v4234_v23 }
  0xc9   :  { %1046 = vmatmul.mubr.bf16.gmra.mrb[68].mxu0 %v4236_v24 }
  0xca   :  { %1053 = vmatprep.mubr.bf16.mxu0 %v4237_v25  ;;  %v4285_v25 = vld [vmem:[%s6996_s0 + $0x2bc] ss:$12 sps:$4 sm:$0xff]  }
  0xd1   :  { %1054 = vmatmul.mubr.bf16.gmra.mrb[72].mxu0 %v4239_v26 }
  0xd2   :  { %1061 = vmatprep.mubr.bf16.mxu0 %v4242_v27 }
  0xd9   :  { %1062 = vmatmul.mubr.bf16.gmra.mrb[76].mxu0 %v4244_v28 }
  0xda   :  { %1069 = vmatprep.mubr.bf16.mxu0 %v4245_v29 }
  0xdf   :  { %v5050_v34 = vpop.f32.mrb[0].mxu1 }
  0xe0   :  { %v1200_v36 = vpop.f32.mrb[1].mxu1 }
  0xe1   :  { %1070 = vmatmul.mubr.bf16.gmra.mrb[80].mxu0 %v4247_v30  ;;  %v5058_v38 = vpop.f32.mrb[2].mxu1 }
  0xe2   :  { %1077 = vmatprep.mubr.bf16.mxu0 %v4251_v31  ;;  %v1203_v39 = vpop.f32.mrb[3].mxu1 }
  0xe7   :  { %v5060_v40 = vpop.f32.mrb[4].mxu1 }
  0xe8   :  { %v5065_v42 = vpop.f32.mrb[5].mxu1 }
  0xe9   :  { %1078 = vmatmul.mubr.bf16.gmra.mrb[84].mxu0 %v4253_v32  ;;  %v5070_v44 = vpop.f32.mrb[6].mxu1 }
  0xea   :  { %1085 = vmatprep.mubr.bf16.mxu0 %v4254_v33  ;;  %v5072_v45 = vpop.f32.mrb[7].mxu1 }
  0xef   :  { %v5074_v46 = vpop.f32.mrb[8].mxu1 }
  0xf0   :  { %v5079_v48 = vpop.f32.mrb[9].mxu1 }
  0xf1   :  { %1086 = vmatmul.mubr.bf16.gmra.mrb[88].mxu0 %v4256_v35  ;;  %v5084_v50 = vpop.f32.mrb[10].mxu1 }
  0xf2   :  { %1093 = vmatprep.mubr.bf16.mxu0 %v4259_v37  ;;  %v5086_v51 = vpop.f32.mrb[11].mxu1 }
  0xf7   :  { %v5088_v52 = vpop.f32.mrb[12].mxu1 }
  0xf8   :  { %v5093_v54 = vpop.f32.mrb[13].mxu1 }
  0xf9   :  { %1094 = vmatmul.mubr.bf16.gmra.mrb[92].mxu0 %v4261_v41  ;;  %v5098_v56 = vpop.f32.mrb[14].mxu1  ;;  %v4287_v41 = vld [vmem:[%s6996_s0 + $0x2b8] ss:$12 sps:$4 sm:$0xff]  }
  0xfa   :  { %1101 = vmatprep.mubr.bf16.mxu0 %v4262_v43  ;;  %v5100_v57 = vpop.f32.mrb[15].mxu1 }
  0xff   :  { %v5102_v58 = vpop.f32.mrb[16].mxu1 }
 0x100   :  { %v5107_v60 = vpop.f32.mrb[17].mxu1 }
 0x101   :  { %1102 = vmatmul.mubr.bf16.gmra.mrb[96].mxu0 %v4264_v47  ;;  %v5112_v62 = vpop.f32.mrb[18].mxu1 }
 0x102   :  { %1109 = vmatprep.mubr.bf16.mxu0 %v4267_v49  ;;  %v5114_v63 = vpop.f32.mrb[19].mxu1 }
 0x107   :  { %v5121_v2 = vpop.f32.mrb[20].mxu1 }
 0x108   :  { %v5127_v6 = vpop.f32.mrb[21].mxu1 }
 0x109   :  { %1110 = vmatmul.mubr.bf16.gmra.mrb[100].mxu0 %v4269_v53  ;;  %v5132_v9 = vpop.f32.mrb[22].mxu1 }
 0x10a   :  { %1117 = vmatprep.mubr.bf16.mxu0 %v4272_v55  ;;  %v5135_v13 = vpop.f32.mrb[23].mxu1 }
 0x10f   :  { %v5137_v18 = vpop.f32.mrb[24].mxu1 }
 0x110   :  { %v5143_v23 = vpop.f32.mrb[25].mxu1 }
 0x111   :  { %1118 = vmatmul.mubr.bf16.gmra.mrb[104].mxu0 %v4274_v59  ;;  %v5148_v26 = vpop.f32.mrb[26].mxu1 }
 0x112   :  { %1125 = vmatprep.mubr.bf16.mxu0 %v4277_v61  ;;  %v5153_v30 = vpop.f32.mrb[27].mxu1 }
 0x114   :  { %v911_v1 = vpop.f32.mrb[0].mxu0 }
 0x115   :  { %v912_v3 = vadd.f32 %v5119_v0, %v911_v1  ;;  %v913_v4 = vpop.f32.mrb[1].mxu0 }
 0x116   :  { %v914_v7 = vpop.f32.mrb[2].mxu0 }
 0x117   :  { %v915_v10 = vadd.f32 %v5119_v0, %v914_v7  ;;  %v1201_v11 = vadd.f32 %v1200_v36, %v912_v3  ;;  %v916_v12 = vpop.f32.mrb[3].mxu0  ;;  %v5156_v36 = vpop.f32.mrb[28].mxu1 }
 0x118   :  { %v5162_v43 = vpop.f32.mrb[29].mxu1 }
 0x119   :  { %v1204_v14 = vadd.f32 %v1203_v39, %v915_v10  ;;  %1126 = vmatmul.mubr.bf16.gmra.mrb[108].mxu0 %v4279_v5  ;;  %v1455_v15 = vmax.f32 %v1201_v11, 0.0  ;;  %v5167_v49 = vpop.f32.mrb[30].mxu1 }
 0x11a   :  { %1133 = vmatprep.mubr.bf16.mxu0 %v4282_v8  ;;  %v5172_v61 = vpop.f32.mrb[31].mxu1 }
 0x11b   :  { %v1456_v16 = vmax.f32 %v1204_v14, 0.0 }
 0x11c   :  { %v919_v17 = vpop.f32.mrb[4].mxu0 }
 0x11d   :  { %v1519_v19 = vpack.c.bf16 %v1456_v16, %v1455_v15  ;;  %v920_v20 = vadd.f32 %v5119_v0, %v919_v17  ;;  %v921_v21 = vpop.f32.mrb[5].mxu0 }
 0x11e   :  { %v922_v24 = vpop.f32.mrb[6].mxu0 }
 0x11f   :  { %v1209_v27 = vadd.f32 %v5050_v34, %v920_v20  ;;  %v923_v28 = vadd.f32 %v5119_v0, %v922_v24  ;;  %v924_v29 = vpop.f32.mrb[7].mxu0  ;;  %4079 = vmatprep.mubr.msk.bf16.mxu1 %vm780_vm0, %v1519_v19  ;;  %v5175_v7 = vpop.f32.mrb[32].mxu1 }
 0x120   :  { %v5181_v12 = vpop.f32.mrb[33].mxu1 }
 0x121   :  { %v1212_v31 = vadd.f32 %v5058_v38, %v923_v28  ;;  %1134 = vmatmul.mubr.bf16.gmra.mrb[112].mxu0 %v4284_v22  ;;  %v1457_v32 = vmax.f32 %v1209_v27, 0.0  ;;  %v4288_v38 = vld [vmem:[%s6996_s0 + $0x2d4] ss:$12 sps:$4 sm:$0xff]   ;;  %v5186_v15 = vpop.f32.mrb[34].mxu1 }
 0x122   :  { %1141 = vmatprep.mubr.bf16.mxu0 %v4285_v25  ;;  %v5191_v20 = vpop.f32.mrb[35].mxu1 }
 0x123   :  { %v1458_v33 = vmax.f32 %v1212_v31, 0.0  ;;  %v4293_v31 = vld [vmem:[%s6996_s0 + $0x2e8] ss:$12 sps:$4 sm:$0xff]  }
 0x124   :  { %v927_v35 = vpop.f32.mrb[8].mxu0 }
 0x125   :  { %v1520_v37 = vpack.c.bf16 %v1458_v33, %v1457_v32  ;;  %v928_v39 = vadd.f32 %v5119_v0, %v927_v35  ;;  %v929_v34 = vpop.f32.mrb[9].mxu0 }
 0x126   :  { %v930_v47 = vpop.f32.mrb[10].mxu0 }
 0x127   :  { %v931_v53 = vadd.f32 %v5119_v0, %v930_v47  ;;  %v1217_v55 = vadd.f32 %v5065_v42, %v928_v39  ;;  %v932_v59 = vpop.f32.mrb[11].mxu0  ;;  %4080 = vmatmul.mubr.msk.bf16.vlgmr.msra.gmra.mrb[64].mxu1 %vm780_vm0, %v1520_v37  ;;  %v4290_v42 = vld [vmem:[%s6996_s0 + $0x2d0] ss:$12 sps:$4 sm:$0xff]   ;;  %v5194_v27 = vpop.f32.mrb[36].mxu1 }
 0x128   :  { %v5200_v32 = vpop.f32.mrb[37].mxu1 }
 0x129   :  { %v1220_v1 = vadd.f32 %v5072_v45, %v931_v53  ;;  %1142 = vmatmul.mubr.bf16.gmra.mrb[116].mxu0 %v4287_v41  ;;  %v1459_v3 = vmax.f32 %v1217_v55, 0.0  ;;  %v4291_v45 = vld [vmem:[%s6996_s0 + $0x2ec] ss:$12 sps:$4 sm:$0xff]   ;;  %v5202_v35 = vpop.f32.mrb[38].mxu1 }
 0x12a   :  { %1149 = vmatprep.mubr.bf16.mxu0 %v4288_v38  ;;  %v5207_v34 = vpop.f32.mrb[39].mxu1 }
 0x12b   :  { %v1460_v4 = vmax.f32 %v1220_v1, 0.0 }
 0x12c   :  { %v935_v5 = vpop.f32.mrb[12].mxu0 }
 0x12d   :  { %v1521_v8 = vpack.c.bf16 %v1460_v4, %v1459_v3  ;;  %v936_v10 = vadd.f32 %v5119_v0, %v935_v5  ;;  %v937_v11 = vpop.f32.mrb[13].mxu0 }
 0x12e   :  { %v938_v14 = vpop.f32.mrb[14].mxu0 }
 0x12f   :  { %v1225_v16 = vadd.f32 %v5060_v40, %v936_v10  ;;  %v939_v17 = vadd.f32 %v5119_v0, %v938_v14  ;;  %v940_v19 = vpop.f32.mrb[15].mxu0  ;;  %4083 = vmatprep.mubr.msk.bf16.mxu1 %vm780_vm0, %v1521_v8  ;;  %v5210_v55 = vpop.f32.mrb[40].mxu1 }
 0x130   :  { %v5213_v4 = vpop.f32.mrb[41].mxu1 }
 0x131   :  { %v1228_v21 = vadd.f32 %v5070_v44, %v939_v17  ;;  %1150 = vmatmul.mubr.bf16.gmra.mrb[120].mxu0 %v4290_v42  ;;  %v1461_v22 = vmax.f32 %v1225_v16, 0.0  ;;  %v5215_v5 = vpop.f32.mrb[42].mxu1 }
 0x132   :  { %1157 = vmatprep.mubr.bf16.mxu0 %v4291_v45  ;;  %v5220_v11 = vpop.f32.mrb[43].mxu1 }
 0x133   :  { %v1462_v24 = vmax.f32 %v1228_v21, 0.0 }
 0x134   :  { %v943_v25 = vpop.f32.mrb[16].mxu0 }
 0x135   :  { %v1522_v28 = vpack.c.bf16 %v1462_v24, %v1461_v22  ;;  %v944_v29 = vadd.f32 %v5119_v0, %v943_v25  ;;  %v945_v40 = vpop.f32.mrb[17].mxu0 }
 0x136   :  { %v946_v33 = vpop.f32.mrb[18].mxu0 }
 0x137   :  { %v947_v44 = vadd.f32 %v5119_v0, %v946_v33  ;;  %v1233_v37 = vadd.f32 %v5079_v48, %v944_v29  ;;  %v948_v39 = vpop.f32.mrb[19].mxu0  ;;  %4084 = vmatmul.mubr.msk.bf16.gmra.mrb[68].mxu1 %vm780_vm0, %v1522_v28  ;;  %v5224_v22 = vpop.f32.mrb[44].mxu1 }
 0x139   :  { %v1236_v41 = vadd.f32 %v5086_v51, %v947_v44  ;;  %1158 = vmatmul.mubr.bf16.gmra.mrb[124].mxu0 %v4293_v31  ;;  %v1463_v47 = vmax.f32 %v1233_v37, 0.0 }
 0x13b   :  { %v1464_v38 = vmax.f32 %v1236_v41, 0.0 }
 0x13c   :  { %v951_v53 = vpop.f32.mrb[20].mxu0 }
 0x13d   :  { %v1523_v59 = vpack.c.bf16 %v1464_v38, %v1463_v47  ;;  %v952_v1 = vadd.f32 %v5119_v0, %v951_v53  ;;  %v953_v3 = vpop.f32.mrb[21].mxu0 }
 0x13e   :  { %v954_v48 = vpop.f32.mrb[22].mxu0 }
 0x13f   :  { %v1241_v8 = vadd.f32 %v5074_v46, %v952_v1  ;;  %v955_v10 = vadd.f32 %v5119_v0, %v954_v48  ;;  %v956_v51 = vpop.f32.mrb[23].mxu0  ;;  %4087 = vmatprep.mubr.msk.bf16.mxu1 %vm780_vm0, %v1523_v59  ;;  %v5226_v46 = vpop.f32.mrb[45].mxu1 }
 0x141   :  { %v1244_v42 = vadd.f32 %v5084_v50, %v955_v10  ;;  %v1465_v14 = vmax.f32 %v1241_v8, 0.0  ;;  %v5231_v50 = vpop.f32.mrb[46].mxu1 }
 0x142   :  { %v5233_v40 = vpop.f32.mrb[47].mxu1 }
 0x143   :  { %v1466_v45 = vmax.f32 %v1244_v42, 0.0  ;;  %v5242_v42 = vpop.f32.mrb[48].mxu1 }
 0x144   :  { %v959_v16 = vpop.f32.mrb[24].mxu0 }
 0x145   :  { %v1524_v17 = vpack.c.bf16 %v1466_v45, %v1465_v14  ;;  %v960_v19 = vadd.f32 %v5119_v0, %v959_v16  ;;  %v961_v21 = vpop.f32.mrb[25].mxu0  ;;  %v5244_v45 = vpop.f32.mrb[49].mxu1 }
 0x146   :  { %v962_v24 = vpop.f32.mrb[26].mxu0 }
 0x147   :  { %v963_v25 = vadd.f32 %v5119_v0, %v962_v24  ;;  %v1249_v28 = vadd.f32 %v5093_v54, %v960_v19  ;;  %v964_v29 = vpop.f32.mrb[27].mxu0  ;;  %4088 = vmatmul.mubr.msk.bf16.gmra.mrb[72].mxu1 %vm780_vm0, %v1524_v17 }
 0x149   :  { %v1252_v31 = vadd.f32 %v5100_v57, %v963_v25  ;;  %v1467_v33 = vmax.f32 %v1249_v28, 0.0 }
 0x14b   :  { %v1468_v44 = vmax.f32 %v1252_v31, 0.0 }
 0x14c   :  { %v967_v37 = vpop.f32.mrb[28].mxu0 }
 0x14d   :  { %v1525_v39 = vpack.c.bf16 %v1468_v44, %v1467_v33  ;;  %v968_v41 = vadd.f32 %v5119_v0, %v967_v37  ;;  %v969_v47 = vpop.f32.mrb[29].mxu0 }
 0x14e   :  { %v970_v38 = vpop.f32.mrb[30].mxu0 }
 0x14f   :  { %v1257_v53 = vadd.f32 %v5088_v52, %v968_v41  ;;  %v971_v54 = vadd.f32 %v5119_v0, %v970_v38  ;;  %v972_v59 = vpop.f32.mrb[31].mxu0  ;;  %4091 = vmatprep.mubr.msk.bf16.mxu1 %vm780_vm0, %v1525_v39 }
 0x151   :  { %v1260_v1 = vadd.f32 %v5098_v56, %v971_v54  ;;  %v1469_v3 = vmax.f32 %v1257_v53, 0.0  ;;  %v5249_v56 = vpop.f32.mrb[50].mxu1 }
 0x152   :  { %v5251_v19 = vpop.f32.mrb[51].mxu1 }
 0x153   :  { %v1470_v48 = vmax.f32 %v1260_v1, 0.0  ;;  %v5258_v41 = vpop.f32.mrb[52].mxu1 }
 0x154   :  { %v975_v57 = vpop.f32.mrb[32].mxu0 }
 0x155   :  { %v1526_v8 = vpack.c.bf16 %v1470_v48, %v1469_v3  ;;  %v976_v10 = vadd.f32 %v5119_v0, %v975_v57  ;;  %v977_v51 = vpop.f32.mrb[33].mxu0 }
 0x156   :  { %v978_v14 = vpop.f32.mrb[34].mxu0 }
 0x157   :  { %v979_v52 = vadd.f32 %v5119_v0, %v978_v14  ;;  %v1265_v16 = vadd.f32 %v5107_v60, %v976_v10  ;;  %v980_v17 = vpop.f32.mrb[35].mxu0  ;;  %4092 = vmatmul.mubr.msk.bf16.gmra.mrb[76].mxu1 %vm780_vm0, %v1526_v8 }
 0x159   :  { %v1268_v21 = vadd.f32 %v5114_v63, %v979_v52  ;;  %v1471_v24 = vmax.f32 %v1265_v16, 0.0  ;;  %v5261_v63 = vpop.f32.mrb[53].mxu1 }
 0x15a   :  { %v5263_v38 = vpop.f32.mrb[54].mxu1 }
 0x15b   :  { %v1472_v25 = vmax.f32 %v1268_v21, 0.0  ;;  %v5265_v59 = vpop.f32.mrb[55].mxu1 }
 0x15c   :  { %v983_v28 = vpop.f32.mrb[36].mxu0 }
 0x15d   :  { %v1527_v29 = vpack.c.bf16 %v1472_v25, %v1471_v24  ;;  %v984_v31 = vadd.f32 %v5119_v0, %v983_v28  ;;  %v985_v33 = vpop.f32.mrb[37].mxu0 }
 0x15e   :  { %v986_v44 = vpop.f32.mrb[38].mxu0 }
 0x15f   :  { %v1273_v37 = vadd.f32 %v5102_v58, %v984_v31  ;;  %v987_v60 = vadd.f32 %v5119_v0, %v986_v44  ;;  %v988_v39 = vpop.f32.mrb[39].mxu0  ;;  %4095 = vmatprep.mubr.msk.bf16.mxu1 %vm780_vm0, %v1527_v29 }
 0x161   :  { %v1276_v47 = vadd.f32 %v5112_v62, %v987_v60  ;;  %v1473_v53 = vmax.f32 %v1273_v37, 0.0  ;;  %v5271_v62 = vpop.f32.mrb[56].mxu1 }
 0x162   :  { %v5274_v52 = vpop.f32.mrb[57].mxu1 }
 0x163   :  { %v1474_v54 = vmax.f32 %v1276_v47, 0.0  ;;  %v5276_v16 = vpop.f32.mrb[58].mxu1 }
 0x164   :  { %v991_v1 = vpop.f32.mrb[40].mxu0  ;;  %v5278_v24 = vpop.f32.mrb[59].mxu1 }
 0x165   :  { %v1528_v3 = vpack.c.bf16 %v1474_v54, %v1473_v53  ;;  %v992_v58 = vadd.f32 %v5119_v0, %v991_v1  ;;  %v993_v48 = vpop.f32.mrb[41].mxu0 }
 0x166   :  { %v994_v57 = vpop.f32.mrb[42].mxu0 }
 0x167   :  { %v995_v8 = vadd.f32 %v5119_v0, %v994_v57  ;;  %v1281_v10 = vadd.f32 %v5127_v6, %v992_v58  ;;  %v996_v51 = vpop.f32.mrb[43].mxu0  ;;  %4096 = vmatmul.mubr.msk.bf16.gmra.mrb[80].mxu1 %vm780_vm0, %v1528_v3 }
 0x169   :  { %v1284_v14 = vadd.f32 %v5135_v13, %v995_v8  ;;  %v1475_v17 = vmax.f32 %v1281_v10, 0.0  ;;  %v5284_v13 = vpop.f32.mrb[60].mxu1 }
 0x16a   :  { %v5287_v39 = vpop.f32.mrb[61].mxu1 }
 0x16b   :  { %v1476_v21 = vmax.f32 %v1284_v14, 0.0  ;;  %v5289_v47 = vpop.f32.mrb[62].mxu1 }
 0x16c   :  { %v999_v25 = vpop.f32.mrb[44].mxu0  ;;  %v5291_v1 = vpop.f32.mrb[63].mxu1 }
 0x16d   :  { %v1529_v28 = vpack.c.bf16 %v1476_v21, %v1475_v17  ;;  %v1000_v29 = vadd.f32 %v5119_v0, %v999_v25  ;;  %v1001_v6 = vpop.f32.mrb[45].mxu0 }
 0x16e   :  { %v1002_v31 = vpop.f32.mrb[46].mxu0 }
 0x16f   :  { %v1289_v33 = vadd.f32 %v5121_v2, %v1000_v29  ;;  %v1003_v44 = vadd.f32 %v5119_v0, %v1002_v31  ;;  %v1004_v37 = vpop.f32.mrb[47].mxu0  ;;  %4099 = vmatprep.mubr.msk.bf16.mxu1 %vm780_vm0, %v1529_v28 }
 0x171   :  { %v1292_v60 = vadd.f32 %v5132_v9, %v1003_v44  ;;  %v1477_v53 = vmax.f32 %v1289_v33, 0.0 }
 0x173   :  { %v1478_v54 = vmax.f32 %v1292_v60, 0.0 }
 0x174   :  { %v1007_v3 = vpop.f32.mrb[48].mxu0 }
 0x175   :  { %v1530_v58 = vpack.c.bf16 %v1478_v54, %v1477_v53  ;;  %v1008_v2 = vadd.f32 %v5119_v0, %v1007_v3  ;;  %v1009_v48 = vpop.f32.mrb[49].mxu0 }
 0x176   :  { %v1010_v57 = vpop.f32.mrb[50].mxu0 }
 0x177   :  { %v1011_v8 = vadd.f32 %v5119_v0, %v1010_v57  ;;  %v1297_v10 = vadd.f32 %v5143_v23, %v1008_v2  ;;  %v1012_v51 = vpop.f32.mrb[51].mxu0  ;;  %4100 = vmatmul.mubr.msk.bf16.gmra.mrb[84].mxu1 %vm780_vm0, %v1530_v58 }
 0x179   :  { %v1300_v9 = vadd.f32 %v5153_v30, %v1011_v8  ;;  %v1479_v14 = vmax.f32 %v1297_v10, 0.0 }
 0x17b   :  { %v1480_v17 = vmax.f32 %v1300_v9, 0.0 }
 0x17c   :  { %v1015_v21 = vpop.f32.mrb[52].mxu0 }
 0x17d   :  { %v1531_v25 = vpack.c.bf16 %v1480_v17, %v1479_v14  ;;  %v1016_v28 = vadd.f32 %v5119_v0, %v1015_v21  ;;  %v1017_v29 = vpop.f32.mrb[53].mxu0 }
 0x17e   :  { %v1018_v6 = vpop.f32.mrb[54].mxu0 }
 0x17f   :  { %v1305_v31 = vadd.f32 %v5137_v18, %v1016_v28  ;;  %v1019_v33 = vadd.f32 %v5119_v0, %v1018_v6  ;;  %v1020_v44 = vpop.f32.mrb[55].mxu0  ;;  %4103 = vmatprep.mubr.msk.bf16.mxu1 %vm780_vm0, %v1531_v25 }
 0x181   :  { %v1308_v23 = vadd.f32 %v5148_v26, %v1019_v33  ;;  %v1481_v37 = vmax.f32 %v1305_v31, 0.0 }
 0x183   :  { %v1482_v60 = vmax.f32 %v1308_v23, 0.0 }
 0x184   :  { %v1023_v30 = vpop.f32.mrb[56].mxu0 }
 0x185   :  { %v1532_v53 = vpack.c.bf16 %v1482_v60, %v1481_v37  ;;  %v1024_v54 = vadd.f32 %v5119_v0, %v1023_v30  ;;  %v1025_v3 = vpop.f32.mrb[57].mxu0 }
 0x186   :  { %v1026_v58 = vpop.f32.mrb[58].mxu0 }
 0x187   :  { %v1027_v2 = vadd.f32 %v5119_v0, %v1026_v58  ;;  %v1313_v48 = vadd.f32 %v5162_v43, %v1024_v54  ;;  %v1028_v18 = vpop.f32.mrb[59].mxu0  ;;  %4104 = vmatmul.mubr.msk.bf16.gmra.mrb[88].mxu1 %vm780_vm0, %v1532_v53 }
 0x189   :  { %v1316_v57 = vadd.f32 %v5172_v61, %v1027_v2  ;;  %v1483_v8 = vmax.f32 %v1313_v48, 0.0 }
 0x18b   :  { %v1484_v10 = vmax.f32 %v1316_v57, 0.0 }
 0x18c   :  { %v1031_v26 = vpop.f32.mrb[60].mxu0 }
 0x18d   :  { %v1533_v51 = vpack.c.bf16 %v1484_v10, %v1483_v8  ;;  %v1032_v9 = vadd.f32 %v5119_v0, %v1031_v26  ;;  %v1033_v14 = vpop.f32.mrb[61].mxu0 }
 0x18e   :  { %v1034_v17 = vpop.f32.mrb[62].mxu0 }
 0x18f   :  { %v1321_v21 = vadd.f32 %v5156_v36, %v1032_v9  ;;  %v1035_v25 = vadd.f32 %v5119_v0, %v1034_v17  ;;  %v1036_v28 = vpop.f32.mrb[63].mxu0  ;;  %4107 = vmatprep.mubr.msk.bf16.mxu1 %vm780_vm0, %v1533_v51 }
 0x191   :  { %v1324_v43 = vadd.f32 %v5167_v49, %v1035_v25  ;;  %v1485_v29 = vmax.f32 %v1321_v21, 0.0 }
 0x193   :  { %v1486_v6 = vmax.f32 %v1324_v43, 0.0 }
 0x194   :  { %v1039_v61 = vpop.f32.mrb[64].mxu0 }
 0x195   :  { %v1534_v31 = vpack.c.bf16 %v1486_v6, %v1485_v29  ;;  %v1040_v33 = vadd.f32 %v5119_v0, %v1039_v61  ;;  %v1041_v44 = vpop.f32.mrb[65].mxu0 }
 0x196   :  { %v1042_v23 = vpop.f32.mrb[66].mxu0 }
 0x197   :  { %v1043_v37 = vadd.f32 %v5119_v0, %v1042_v23  ;;  %v1329_v60 = vadd.f32 %v5181_v12, %v1040_v33  ;;  %v1044_v36 = vpop.f32.mrb[67].mxu0  ;;  %4108 = vmatmul.mubr.msk.bf16.gmra.mrb[92].mxu1 %vm780_vm0, %v1534_v31 }
 0x199   :  { %v1332_v30 = vadd.f32 %v5191_v20, %v1043_v37  ;;  %v1487_v53 = vmax.f32 %v1329_v60, 0.0 }
 0x19b   :  { %v1488_v54 = vmax.f32 %v1332_v30, 0.0 }
 0x19c   :  { %v1047_v49 = vpop.f32.mrb[68].mxu0 }
 0x19d   :  { %v1535_v3 = vpack.c.bf16 %v1488_v54, %v1487_v53  ;;  %v1048_v58 = vadd.f32 %v5119_v0, %v1047_v49  ;;  %v1049_v2 = vpop.f32.mrb[69].mxu0 }
 0x19e   :  { %v1050_v48 = vpop.f32.mrb[70].mxu0 }
 0x19f   :  { %v1337_v18 = vadd.f32 %v5175_v7, %v1048_v58  ;;  %v1051_v57 = vadd.f32 %v5119_v0, %v1050_v48  ;;  %v1052_v8 = vpop.f32.mrb[71].mxu0  ;;  %4111 = vmatprep.mubr.msk.bf16.mxu1 %vm780_vm0, %v1535_v3 }
 0x1a1   :  { %v1340_v12 = vadd.f32 %v5186_v15, %v1051_v57  ;;  %v1489_v10 = vmax.f32 %v1337_v18, 0.0 }
 0x1a3   :  { %v1490_v26 = vmax.f32 %v1340_v12, 0.0 }
 0x1a4   :  { %v1055_v20 = vpop.f32.mrb[72].mxu0 }
 0x1a5   :  { %v1536_v51 = vpack.c.bf16 %v1490_v26, %v1489_v10  ;;  %v1056_v9 = vadd.f32 %v5119_v0, %v1055_v20  ;;  %v1057_v14 = vpop.f32.mrb[73].mxu0 }
 0x1a6   :  { %v1058_v17 = vpop.f32.mrb[74].mxu0 }
 0x1a7   :  { %v1059_v21 = vadd.f32 %v5119_v0, %v1058_v17  ;;  %v1345_v25 = vadd.f32 %v5200_v32, %v1056_v9  ;;  %v1060_v7 = vpop.f32.mrb[75].mxu0  ;;  %4112 = vmatmul.mubr.msk.bf16.gmra.mrb[96].mxu1 %vm780_vm0, %v1536_v51 }
 0x1a9   :  { %v1348_v28 = vadd.f32 %v5207_v34, %v1059_v21  ;;  %v1491_v43 = vmax.f32 %v1345_v25, 0.0 }
 0x1ab   :  { %v1492_v29 = vmax.f32 %v1348_v28, 0.0 }
 0x1ac   :  { %v1063_v15 = vpop.f32.mrb[76].mxu0 }
 0x1ad   :  { %v1537_v6 = vpack.c.bf16 %v1492_v29, %v1491_v43  ;;  %v1064_v61 = vadd.f32 %v5119_v0, %v1063_v15  ;;  %v1065_v31 = vpop.f32.mrb[77].mxu0 }
 0x1ae   :  { %v1066_v33 = vpop.f32.mrb[78].mxu0 }
 0x1af   :  { %v1353_v44 = vadd.f32 %v5194_v27, %v1064_v61  ;;  %v1067_v23 = vadd.f32 %v5119_v0, %v1066_v33  ;;  %v1068_v37 = vpop.f32.mrb[79].mxu0  ;;  %4115 = vmatprep.mubr.msk.bf16.mxu1 %vm780_vm0, %v1537_v6 }
 0x1b1   :  { %v1356_v32 = vadd.f32 %v5202_v35, %v1067_v23  ;;  %v1493_v60 = vmax.f32 %v1353_v44, 0.0 }
 0x1b3   :  { %v1494_v36 = vmax.f32 %v1356_v32, 0.0 }
 0x1b4   :  { %v1071_v34 = vpop.f32.mrb[80].mxu0 }
 0x1b5   :  { %v1538_v30 = vpack.c.bf16 %v1494_v36, %v1493_v60  ;;  %v1072_v53 = vadd.f32 %v5119_v0, %v1071_v34  ;;  %v1073_v54 = vpop.f32.mrb[81].mxu0 }
 0x1b6   :  { %v1074_v49 = vpop.f32.mrb[82].mxu0 }
 0x1b7   :  { %v1075_v3 = vadd.f32 %v5119_v0, %v1074_v49  ;;  %v1361_v58 = vadd.f32 %v5213_v4, %v1072_v53  ;;  %v1076_v27 = vpop.f32.mrb[83].mxu0  ;;  %4116 = vmatmul.mubr.msk.bf16.gmra.mrb[100].mxu1 %vm780_vm0, %v1538_v30 }
 0x1b9   :  { %v1364_v2 = vadd.f32 %v5220_v11, %v1075_v3  ;;  %v1495_v48 = vmax.f32 %v1361_v58, 0.0 }
 0x1bb   :  { %v1496_v18 = vmax.f32 %v1364_v2, 0.0 }
 0x1bc   :  { %v1079_v35 = vpop.f32.mrb[84].mxu0 }
 0x1bd   :  { %v1539_v57 = vpack.c.bf16 %v1496_v18, %v1495_v48  ;;  %v1080_v8 = vadd.f32 %v5119_v0, %v1079_v35  ;;  %v1081_v12 = vpop.f32.mrb[85].mxu0 }
 0x1be   :  { %v1082_v10 = vpop.f32.mrb[86].mxu0 }
 0x1bf   :  { %v1369_v26 = vadd.f32 %v5210_v55, %v1080_v8  ;;  %v1083_v20 = vadd.f32 %v5119_v0, %v1082_v10  ;;  %v1084_v51 = vpop.f32.mrb[87].mxu0  ;;  %4119 = vmatprep.mubr.msk.bf16.mxu1 %vm780_vm0, %v1539_v57 }
 0x1c1   :  { %v1372_v4 = vadd.f32 %v5215_v5, %v1083_v20  ;;  %v1497_v9 = vmax.f32 %v1369_v26, 0.0 }
 0x1c3   :  { %v1498_v14 = vmax.f32 %v1372_v4, 0.0 }
 0x1c4   :  { %v1087_v11 = vpop.f32.mrb[88].mxu0 }
 0x1c5   :  { %v1540_v17 = vpack.c.bf16 %v1498_v14, %v1497_v9  ;;  %v1088_v21 = vadd.f32 %v5119_v0, %v1087_v11  ;;  %v1089_v25 = vpop.f32.mrb[89].mxu0 }
 0x1c6   :  { %v1090_v7 = vpop.f32.mrb[90].mxu0 }
 0x1c7   :  { %v1091_v28 = vadd.f32 %v5119_v0, %v1090_v7  ;;  %v1377_v43 = vadd.f32 %v5226_v46, %v1088_v21  ;;  %v1092_v55 = vpop.f32.mrb[91].mxu0  ;;  %4120 = vmatmul.mubr.msk.bf16.gmra.mrb[104].mxu1 %vm780_vm0, %v1540_v17 }
 0x1c9   :  { %v1380_v29 = vadd.f32 %v5233_v40, %v1091_v28  ;;  %v1499_v15 = vmax.f32 %v1377_v43, 0.0 }
 0x1cb   :  { %v1500_v6 = vmax.f32 %v1380_v29, 0.0 }
 0x1cc   :  { %v1095_v5 = vpop.f32.mrb[92].mxu0 }
 0x1cd   :  { %v1541_v61 = vpack.c.bf16 %v1500_v6, %v1499_v15  ;;  %v1096_v31 = vadd.f32 %v5119_v0, %v1095_v5  ;;  %v1097_v33 = vpop.f32.mrb[93].mxu0 }
 0x1ce   :  { %v1098_v44 = vpop.f32.mrb[94].mxu0 }
 0x1cf   :  { %v1385_v23 = vadd.f32 %v5224_v22, %v1096_v31  ;;  %v1099_v37 = vadd.f32 %v5119_v0, %v1098_v44  ;;  %v1100_v32 = vpop.f32.mrb[95].mxu0  ;;  %4123 = vmatprep.mubr.msk.bf16.mxu1 %vm780_vm0, %v1541_v61 }
 0x1d1   :  { %v1388_v46 = vadd.f32 %v5231_v50, %v1099_v37  ;;  %v1501_v60 = vmax.f32 %v1385_v23, 0.0 }
 0x1d3   :  { %v1502_v36 = vmax.f32 %v1388_v46, 0.0 }
 0x1d4   :  { %v1103_v40 = vpop.f32.mrb[96].mxu0 }
 0x1d5   :  { %v1542_v34 = vpack.c.bf16 %v1502_v36, %v1501_v60  ;;  %v1104_v30 = vadd.f32 %v5119_v0, %v1103_v40  ;;  %v1105_v53 = vpop.f32.mrb[97].mxu0  ;;  %v5380_v60 = vld [vmem:[%s6999_s4] ss:$0 sm:$0xff]  ;;  %s4679_s4 = smov 122  }
 0x1d6   :  { %v1106_v54 = vpop.f32.mrb[98].mxu0 }
 0x1d7   :  { %v1107_v49 = vadd.f32 %v5119_v0, %v1106_v54  ;;  %v1393_v3 = vadd.f32 %v5244_v45, %v1104_v30  ;;  %v1108_v22 = vpop.f32.mrb[99].mxu0  ;;  %4124 = vmatmul.mubr.msk.bf16.gmra.mrb[108].mxu1 %vm780_vm0, %v1542_v34 }
 0x1d9   :  { %v1396_v58 = vadd.f32 %v5251_v19, %v1107_v49  ;;  %v1503_v27 = vmax.f32 %v1393_v3, 0.0 }
 0x1db   :  { %v1504_v2 = vmax.f32 %v1396_v58, 0.0 }
 0x1dc   :  { %v1111_v50 = vpop.f32.mrb[100].mxu0 }
 0x1dd   :  { %v1543_v48 = vpack.c.bf16 %v1504_v2, %v1503_v27  ;;  %v1112_v18 = vadd.f32 %v5119_v0, %v1111_v50  ;;  %v1113_v35 = vpop.f32.mrb[101].mxu0 }
 0x1de   :  { %v1114_v57 = vpop.f32.mrb[102].mxu0 }
 0x1df   :  { %v1401_v8 = vadd.f32 %v5242_v42, %v1112_v18  ;;  %v1115_v12 = vadd.f32 %v5119_v0, %v1114_v57  ;;  %v1116_v10 = vpop.f32.mrb[103].mxu0  ;;  %4127 = vmatprep.mubr.msk.bf16.mxu1 %vm780_vm0, %v1543_v48 }
 0x1e1   :  { %v1404_v45 = vadd.f32 %v5249_v56, %v1115_v12  ;;  %v1505_v26 = vmax.f32 %v1401_v8, 0.0 }
 0x1e3   :  { %v1506_v20 = vmax.f32 %v1404_v45, 0.0 }
 0x1e4   :  { %v1119_v19 = vpop.f32.mrb[104].mxu0 }
 0x1e5   :  { %v1544_v51 = vpack.c.bf16 %v1506_v20, %v1505_v26  ;;  %v1120_v4 = vadd.f32 %v5119_v0, %v1119_v19  ;;  %v1121_v9 = vpop.f32.mrb[105].mxu0 }
 0x1e6   :  { %v1122_v14 = vpop.f32.mrb[106].mxu0 }
 0x1e7   :  { %v1409_v11 = vadd.f32 %v5261_v63, %v1120_v4  ;;  %v1123_v17 = vadd.f32 %v5119_v0, %v1122_v14  ;;  %v1124_v42 = vpop.f32.mrb[107].mxu0  ;;  %4128 = vmatmul.mubr.msk.bf16.gmra.mrb[112].mxu1 %vm780_vm0, %v1544_v51 }
 0x1e9   :  { %v1412_v21 = vadd.f32 %v5265_v59, %v1123_v17  ;;  %v1507_v25 = vmax.f32 %v1409_v11, 0.0 }
 0x1eb   :  { %v1508_v7 = vmax.f32 %v1412_v21, 0.0 }
 0x1ec   :  { %v1127_v56 = vpop.f32.mrb[108].mxu0 }
 0x1ed   :  { %v1545_v28 = vpack.c.bf16 %v1508_v7, %v1507_v25  ;;  %v1128_v43 = vadd.f32 %v5119_v0, %v1127_v56  ;;  %v1129_v55 = vpop.f32.mrb[109].mxu0 }
 0x1ee   :  { %v1130_v29 = vpop.f32.mrb[110].mxu0 }
 0x1ef   :  { %v1417_v15 = vadd.f32 %v5258_v41, %v1128_v43  ;;  %v1131_v6 = vadd.f32 %v5119_v0, %v1130_v29  ;;  %v1132_v63 = vpop.f32.mrb[111].mxu0  ;;  %4131 = vmatprep.mubr.msk.bf16.mxu1 %vm780_vm0, %v1545_v28 }
 0x1f1   :  { %v1420_v5 = vadd.f32 %v5263_v38, %v1131_v6  ;;  %v1509_v61 = vmax.f32 %v1417_v15, 0.0 }
 0x1f3   :  { %v1510_v31 = vmax.f32 %v1420_v5, 0.0 }
 0x1f4   :  { %v1135_v59 = vpop.f32.mrb[112].mxu0 }
 0x1f5   :  { %v1546_v33 = vpack.c.bf16 %v1510_v31, %v1509_v61  ;;  %v1136_v44 = vadd.f32 %v5119_v0, %v1135_v59  ;;  %v1137_v23 = vpop.f32.mrb[113].mxu0 }
 0x1f6   :  { %v1138_v37 = vpop.f32.mrb[114].mxu0 }
 0x1f7   :  { %v1425_v32 = vadd.f32 %v5274_v52, %v1136_v44  ;;  %v1139_v46 = vadd.f32 %v5119_v0, %v1138_v37  ;;  %v1140_v41 = vpop.f32.mrb[115].mxu0  ;;  %4132 = vmatmul.mubr.msk.bf16.gmra.mrb[116].mxu1 %vm780_vm0, %v1546_v33 }
 0x1f9   :  { %v1428_v38 = vadd.f32 %v5278_v24, %v1139_v46  ;;  %v1511_v40 = vmax.f32 %v1425_v32, 0.0 }
 0x1fa   :  { %v4081_v36 = vpop.f32.mrb[64].mxu1 }
 0x1fb   :  { %v1512_v34 = vmax.f32 %v1428_v38, 0.0  ;;  %v5384_v30 = vadd.f32 %v4081_v36, %v5380_v60  ;;  %v1704_v52 = vpop.f32.mrb[65].mxu1 }
 0x1fc   :  { %v5387_v53 = vadd.f32 %v5380_v60, %v1704_v52  ;;  %v1143_v54 = vpop.f32.mrb[116].mxu0  ;;  %v4082_v49 = vpop.f32.mrb[66].mxu1 }
 0x1fd   :  { %v1547_v3 = vpack.c.bf16 %v1512_v34, %v1511_v40  ;;  %v1144_v22 = vadd.f32 %v5119_v0, %v1143_v54  ;;  %v5391_v58 = vadd.f32 %v4082_v49, %v5380_v60  ;;  %v1145_v24 = vpop.f32.mrb[117].mxu0  ;;  %2027 = vrot.lane.b32.xlu1 %v5384_v30, %s4679_s4  ;;  %v1707_v27 = vpop.f32.mrb[67].mxu1  ;;  %3370 = vst.msk [vmem:[%s7000_s5 + $0x10] sm:$0xff] %vm3367_vm1, %v5384_v30 }
 0x1fe   :  { %v5401_v2 = vadd.f32 %v5380_v60, %v1707_v27  ;;  %v1146_v50 = vpop.f32.mrb[118].mxu0  ;;  %2023 = vrot.lane.b32.xlu0 %v5387_v53, %s4679_s4  ;;  %3368 = vst.msk [vmem:[%s7000_s5] sm:$0xff] %vm3367_vm1, %v5387_v53 }
 0x1ff   :  { %v1433_v48 = vadd.f32 %v5271_v62, %v1144_v22  ;;  %v1147_v18 = vadd.f32 %v5119_v0, %v1146_v50  ;;  %v1148_v35 = vpop.f32.mrb[119].mxu0  ;;  %4135 = vmatprep.mubr.msk.bf16.mxu1 %vm780_vm0, %v1547_v3  ;;  %3371 = vst.msk [vmem:[%s7000_s5 + $0x18] sm:$0xff] %vm3367_vm1, %v5391_v58 }
 0x200   :  { %3369 = vst.msk [vmem:[%s7000_s5 + $0x8] sm:$0xff] %vm3367_vm1, %v5401_v2 }
 0x201   :  { %v1436_v57 = vadd.f32 %v5276_v16, %v1147_v18  ;;  %2029 = vrot.lane.b32.xlu1 %v5391_v58, %s4679_s4  ;;  %v1513_v62 = vmax.f32 %v1433_v48, 0.0 }
 0x202   :  { %2025 = vrot.lane.b32.xlu0 %v5401_v2, %s4679_s4 }
 0x203   :  { %v1514_v8 = vmax.f32 %v1436_v57, 0.0 }
 0x204   :  { %v1151_v12 = vpop.f32.mrb[120].mxu0 }
 0x205   :  { %v1548_v10 = vpack.c.bf16 %v1514_v8, %v1513_v62  ;;  %v1152_v45 = vadd.f32 %v5119_v0, %v1151_v12  ;;  %v1153_v26 = vpop.f32.mrb[121].mxu0 }
 0x206   :  { %v1154_v20 = vpop.f32.mrb[122].mxu0 }
 0x207   :  { %v1441_v19 = vadd.f32 %v5287_v39, %v1152_v45  ;;  %v1155_v51 = vadd.f32 %v5119_v0, %v1154_v20  ;;  %v1156_v4 = vpop.f32.mrb[123].mxu0  ;;  %4136 = vmatmul.mubr.msk.bf16.gmra.mrb[120].mxu1 %vm780_vm0, %v1548_v10 }
 0x209   :  { %v1444_v16 = vadd.f32 %v5291_v1, %v1155_v51  ;;  %v1515_v14 = vmax.f32 %v1441_v19, 0.0 }
 0x20a   :  { %v4085_v9 = vpop.f32.mrb[68].mxu1 }
 0x20b   :  { %v1516_v11 = vmax.f32 %v1444_v16, 0.0  ;;  %v5434_v17 = vadd.f32 %v4085_v9, %v5380_v60  ;;  %v1720_v42 = vpop.f32.mrb[69].mxu1 }
 0x20c   :  { %v5437_v21 = vadd.f32 %v5380_v60, %v1720_v42  ;;  %v1159_v25 = vpop.f32.mrb[124].mxu0  ;;  %v4086_v7 = vpop.f32.mrb[70].mxu1 }
 0x20d   :  { %7103 = vst [vmem:[#allocation2_spill] sm:$0xff] %v5434_v17  ;;  %v1549_v39 = vpack.c.bf16 %v1516_v11, %v1515_v14  ;;  %v1160_v56 = vadd.f32 %v5119_v0, %v1159_v25  ;;  %v5441_v28 = vadd.f32 %v4086_v7, %v5380_v60  ;;  %v1161_v43 = vpop.f32.mrb[125].mxu0  ;;  %v1723_v1 = vpop.f32.mrb[71].mxu1  ;;  %2035 = vrot.lane.b32.xlu0 %v5434_v17, %s4679_s4  ;;  %3374 = vst.msk [vmem:[%s7000_s5 + $0x30] sm:$0xff] %vm3367_vm1, %v5434_v17 }
 0x20e   :  { %v5451_v55 = vadd.f32 %v5380_v60, %v1723_v1  ;;  %v1162_v29 = vpop.f32.mrb[126].mxu0  ;;  %3372 = vst.msk [vmem:[%s7000_s5 + $0x20] sm:$0xff] %vm3367_vm1, %v5437_v21 }
 0x20f   :  { %7104 = vst [vmem:[#allocation3_spill] sm:$0xff] %v5441_v28  ;;  %v1449_v15 = vadd.f32 %v5284_v13, %v1160_v56  ;;  %v1163_v6 = vadd.f32 %v5119_v0, %v1162_v29  ;;  %v1164_v63 = vpop.f32.mrb[127].mxu0  ;;  %4139 = vmatprep.mubr.msk.bf16.mxu1 %vm780_vm0, %v1549_v39  ;;  %2037 = vrot.lane.b32.xlu1 %v5441_v28, %s4679_s4  ;;  %3375 = vst.msk [vmem:[%s7000_s5 + $0x38] sm:$0xff] %vm3367_vm1, %v5441_v28 }
 0x210   :  { %3373 = vst.msk [vmem:[%s7000_s5 + $0x28] sm:$0xff] %vm3367_vm1, %v5451_v55 }
 0x211   :  { %v1452_v0 = vadd.f32 %v5289_v47, %v1163_v6  ;;  %2031 = vrot.lane.b32.xlu0 %v5437_v21, %s4679_s4  ;;  %v1517_v13 = vmax.f32 %v1449_v15, 0.0 }
 0x213   :  { %v1518_v5 = vmax.f32 %v1452_v0, 0.0  ;;  %2033 = vrot.lane.b32.xlu1 %v5451_v55, %s4679_s4 }
 0x215   :  { %v1550_v61 = vpack.c.bf16 %v1518_v5, %v1517_v13 }
 0x217   :  { %4140 = vmatmul.mubr.msk.bf16.gmra.mrb[124].mxu1 %vm780_vm0, %v1550_v61 }
 0x21a   :  { %v4089_v31 = vpop.f32.mrb[72].mxu1 }
 0x21b   :  { %v5480_v59 = vadd.f32 %v4089_v31, %v5380_v60  ;;  %v1736_v33 = vpop.f32.mrb[73].mxu1 }
 0x21c   :  { %v5483_v44 = vadd.f32 %v5380_v60, %v1736_v33  ;;  %v4090_v47 = vpop.f32.mrb[74].mxu1 }
 0x21d   :  { %v5486_v23 = vadd.f32 %v4090_v47, %v5380_v60  ;;  %v1739_v37 = vpop.f32.mrb[75].mxu1  ;;  %2043 = vrot.lane.b32.xlu0 %v5480_v59, %s4679_s4  ;;  %3378 = vst.msk [vmem:[%s7000_s5 + $0x50] sm:$0xff] %vm3367_vm1, %v5480_v59 }
 0x21e   :  { %v5496_v32 = vadd.f32 %v5380_v60, %v1739_v37  ;;  %3376 = vst.msk [vmem:[%s7000_s5 + $0x40] sm:$0xff] %vm3367_vm1, %v5483_v44 }
 0x21f   :  { %2045 = vrot.lane.b32.xlu1 %v5486_v23, %s4679_s4  ;;  %3379 = vst.msk [vmem:[%s7000_s5 + $0x58] sm:$0xff] %vm3367_vm1, %v5486_v23 }
 0x220   :  { %3377 = vst.msk [vmem:[%s7000_s5 + $0x48] sm:$0xff] %vm3367_vm1, %v5496_v32 }
 0x221   :  { %2039 = vrot.lane.b32.xlu0 %v5483_v44, %s4679_s4 }
 0x223   :  { %2041 = vrot.lane.b32.xlu1 %v5496_v32, %s4679_s4 }
 0x22a   :  { %v4093_v46 = vpop.f32.mrb[76].mxu1 }
 0x22b   :  { %v5520_v41 = vadd.f32 %v4093_v46, %v5380_v60  ;;  %v1752_v38 = vpop.f32.mrb[77].mxu1 }
 0x22c   :  { %v5523_v36 = vadd.f32 %v5380_v60, %v1752_v38  ;;  %v4094_v40 = vpop.f32.mrb[78].mxu1 }
 0x22d   :  { %v5526_v34 = vadd.f32 %v4094_v40, %v5380_v60  ;;  %v1755_v52 = vpop.f32.mrb[79].mxu1  ;;  %2051 = vrot.lane.b32.xlu0 %v5520_v41, %s4679_s4  ;;  %3382 = vst.msk [vmem:[%s7000_s5 + $0x70] sm:$0xff] %vm3367_vm1, %v5520_v41 }
 0x22e   :  { %v5536_v54 = vadd.f32 %v5380_v60, %v1755_v52  ;;  %3380 = vst.msk [vmem:[%s7000_s5 + $0x60] sm:$0xff] %vm3367_vm1, %v5523_v36 }
 0x22f   :  { %2053 = vrot.lane.b32.xlu1 %v5526_v34, %s4679_s4  ;;  %3383 = vst.msk [vmem:[%s7000_s5 + $0x78] sm:$0xff] %vm3367_vm1, %v5526_v34 }
 0x230   :  { %3381 = vst.msk [vmem:[%s7000_s5 + $0x68] sm:$0xff] %vm3367_vm1, %v5536_v54 }
 0x231   :  { %2047 = vrot.lane.b32.xlu0 %v5523_v36, %s4679_s4 }
 0x233   :  { %2049 = vrot.lane.b32.xlu1 %v5536_v54, %s4679_s4 }
 0x23a   :  { %v4097_v49 = vpop.f32.mrb[80].mxu1 }
 0x23b   :  { %v5560_v3 = vadd.f32 %v4097_v49, %v5380_v60  ;;  %v1768_v22 = vpop.f32.mrb[81].mxu1 }
 0x23c   :  { %v5563_v24 = vadd.f32 %v5380_v60, %v1768_v22  ;;  %v4098_v27 = vpop.f32.mrb[82].mxu1 }
 0x23d   :  { %v5566_v50 = vadd.f32 %v4098_v27, %v5380_v60  ;;  %v1771_v48 = vpop.f32.mrb[83].mxu1  ;;  %2059 = vrot.lane.b32.xlu0 %v5560_v3, %s4679_s4  ;;  %3386 = vst.msk [vmem:[%s7000_s5 + $0x90] sm:$0xff] %vm3367_vm1, %v5560_v3 }
 0x23e   :  { %v5576_v18 = vadd.f32 %v5380_v60, %v1771_v48  ;;  %3384 = vst.msk [vmem:[%s7000_s5 + $0x80] sm:$0xff] %vm3367_vm1, %v5563_v24 }
 0x23f   :  { %2061 = vrot.lane.b32.xlu1 %v5566_v50, %s4679_s4  ;;  %3387 = vst.msk [vmem:[%s7000_s5 + $0x98] sm:$0xff] %vm3367_vm1, %v5566_v50 }
 0x240   :  { %3385 = vst.msk [vmem:[%s7000_s5 + $0x88] sm:$0xff] %vm3367_vm1, %v5576_v18 }
 0x241   :  { %2055 = vrot.lane.b32.xlu0 %v5563_v24, %s4679_s4 }
 0x243   :  { %2057 = vrot.lane.b32.xlu1 %v5576_v18, %s4679_s4 }
 0x24a   :  { %v4101_v35 = vpop.f32.mrb[84].mxu1 }
 0x24b   :  { %v5600_v57 = vadd.f32 %v4101_v35, %v5380_v60  ;;  %v1784_v62 = vpop.f32.mrb[85].mxu1 }
 0x24c   :  { %v5603_v8 = vadd.f32 %v5380_v60, %v1784_v62  ;;  %v4102_v12 = vpop.f32.mrb[86].mxu1 }
 0x24d   :  { %v5606_v10 = vadd.f32 %v4102_v12, %v5380_v60  ;;  %v1787_v45 = vpop.f32.mrb[87].mxu1  ;;  %2067 = vrot.lane.b32.xlu0 %v5600_v57, %s4679_s4  ;;  %3390 = vst.msk [vmem:[%s7000_s5 + $0xb0] sm:$0xff] %vm3367_vm1, %v5600_v57 }
 0x24e   :  { %v5616_v26 = vadd.f32 %v5380_v60, %v1787_v45  ;;  %3388 = vst.msk [vmem:[%s7000_s5 + $0xa0] sm:$0xff] %vm3367_vm1, %v5603_v8 }
 0x24f   :  { %2069 = vrot.lane.b32.xlu1 %v5606_v10, %s4679_s4  ;;  %3391 = vst.msk [vmem:[%s7000_s5 + $0xb8] sm:$0xff] %vm3367_vm1, %v5606_v10 }
 0x250   :  { %3389 = vst.msk [vmem:[%s7000_s5 + $0xa8] sm:$0xff] %vm3367_vm1, %v5616_v26 }
 0x251   :  { %2063 = vrot.lane.b32.xlu0 %v5603_v8, %s4679_s4 }
 0x253   :  { %2065 = vrot.lane.b32.xlu1 %v5616_v26, %s4679_s4 }
 0x25a   :  { %v4105_v20 = vpop.f32.mrb[88].mxu1 }
 0x25b   :  { %v5640_v19 = vadd.f32 %v4105_v20, %v5380_v60  ;;  %v1800_v51 = vpop.f32.mrb[89].mxu1 }
 0x25c   :  { %v5643_v4 = vadd.f32 %v5380_v60, %v1800_v51  ;;  %v4106_v16 = vpop.f32.mrb[90].mxu1 }
 0x25d   :  { %7105 = vst [vmem:[#allocation4_spill] sm:$0xff] %v5640_v19  ;;  %v5646_v9 = vadd.f32 %v4106_v16, %v5380_v60  ;;  %v1803_v14 = vpop.f32.mrb[91].mxu1  ;;  %2075 = vrot.lane.b32.xlu0 %v5640_v19, %s4679_s4  ;;  %3394 = vst.msk [vmem:[%s7000_s5 + $0xd0] sm:$0xff] %vm3367_vm1, %v5640_v19 }
 0x25e   :  { %7106 = vst [vmem:[#allocation5_spill] sm:$0xff] %v5643_v4  ;;  %v5656_v11 = vadd.f32 %v5380_v60, %v1803_v14  ;;  %3392 = vst.msk [vmem:[%s7000_s5 + $0xc0] sm:$0xff] %vm3367_vm1, %v5643_v4 }
 0x25f   :  { %7107 = vst [vmem:[#allocation6_spill] sm:$0xff] %v5646_v9  ;;  %2077 = vrot.lane.b32.xlu1 %v5646_v9, %s4679_s4  ;;  %3395 = vst.msk [vmem:[%s7000_s5 + $0xd8] sm:$0xff] %vm3367_vm1, %v5646_v9 }
 0x260   :  { %7108 = vst [vmem:[#allocation7_spill] sm:$0xff] %v5656_v11  ;;  %3393 = vst.msk [vmem:[%s7000_s5 + $0xc8] sm:$0xff] %vm3367_vm1, %v5656_v11 }
 0x261   :  { %2071 = vrot.lane.b32.xlu0 %v5643_v4, %s4679_s4 }
 0x263   :  { %2073 = vrot.lane.b32.xlu1 %v5656_v11, %s4679_s4 }
 0x26a   :  { %v4109_v42 = vpop.f32.mrb[92].mxu1 }
 0x26b   :  { %v5680_v25 = vadd.f32 %v4109_v42, %v5380_v60  ;;  %v1816_v7 = vpop.f32.mrb[93].mxu1 }
 0x26c   :  { %v5683_v39 = vadd.f32 %v5380_v60, %v1816_v7  ;;  %v4110_v56 = vpop.f32.mrb[94].mxu1 }
 0x26d   :  { %7109 = vst [vmem:[#allocation8_spill] sm:$0xff] %v5680_v25  ;;  %v5686_v43 = vadd.f32 %v4110_v56, %v5380_v60  ;;  %v1819_v1 = vpop.f32.mrb[95].mxu1  ;;  %2083 = vrot.lane.b32.xlu0 %v5680_v25, %s4679_s4  ;;  %3398 = vst.msk [vmem:[%s7000_s5 + $0xf0] sm:$0xff] %vm3367_vm1, %v5680_v25 }
 0x26e   :  { %7110 = vst [vmem:[#allocation9_spill] sm:$0xff] %v5683_v39  ;;  %v5696_v29 = vadd.f32 %v5380_v60, %v1819_v1  ;;  %3396 = vst.msk [vmem:[%s7000_s5 + $0xe0] sm:$0xff] %vm3367_vm1, %v5683_v39 }
 0x26f   :  { %7111 = vst [vmem:[#allocation10_spill] sm:$0xff] %v5686_v43  ;;  %v2028_v15 = vpop.permute.xlu1 %2027  ;;  %2085 = vrot.lane.b32.xlu1 %v5686_v43, %s4679_s4  ;;  %3399 = vst.msk [vmem:[%s7000_s5 + $0xf8] sm:$0xff] %vm3367_vm1, %v5686_v43 }
 0x270   :  { %7112 = vst [vmem:[#allocation11_spill] sm:$0xff] %v5696_v29  ;;  %v2024_v6 = vpop.permute.xlu0 %2023  ;;  %3397 = vst.msk [vmem:[%s7000_s5 + $0xe8] sm:$0xff] %vm3367_vm1, %v5696_v29  ;;  %v5718_v63 = vmax.f32 %v5384_v30, %v2028_v15 }
 0x271   :  { %2079 = vrot.lane.b32.xlu0 %v5683_v39, %s4679_s4  ;;  %v5728_v61 = vmax.f32 %v5387_v53, %v2024_v6 }
 0x272   :  { %7113 = vst [vmem:[#allocation12_spill] sm:$0xff] %v5718_v63 }
 0x273   :  { %v2030_v0 = vpop.permute.xlu1 %2029  ;;  %2081 = vrot.lane.b32.xlu1 %v5696_v29, %s4679_s4  ;;  %7115 = vst [vmem:[#allocation14_spill] sm:$0xff] %v5728_v61 }
 0x274   :  { %v5723_v13 = vmax.f32 %v5391_v58, %v2030_v0  ;;  %v2026_v5 = vpop.permute.xlu0 %2025 }
 0x275   :  { %2539 = vrot.lane.b32.xlu0 %v5718_v63, %s4680_s21  ;;  %v5733_v31 = vmax.f32 %v5401_v2, %v2026_v5 }
 0x276   :  { %7114 = vst [vmem:[#allocation13_spill] sm:$0xff] %v5723_v13 }
 0x277   :  { %2541 = vrot.lane.b32.xlu1 %v5723_v13, %s4680_s21  ;;  %7116 = vst [vmem:[#allocation15_spill] sm:$0xff] %v5733_v31 }
 0x279   :  { %2535 = vrot.lane.b32.xlu0 %v5728_v61, %s4680_s21 }
 0x27a   :  { %v4113_v33 = vpop.f32.mrb[96].mxu1 }
 0x27b   :  { %v5738_v47 = vadd.f32 %v4113_v33, %v5380_v60  ;;  %v1832_v37 = vpop.f32.mrb[97].mxu1  ;;  %2537 = vrot.lane.b32.xlu1 %v5733_v31, %s4680_s21 }
 0x27c   :  { %v5743_v46 = vadd.f32 %v5380_v60, %v1832_v37  ;;  %v4114_v38 = vpop.f32.mrb[98].mxu1 }
 0x27d   :  { %v5746_v40 = vadd.f32 %v4114_v38, %v5380_v60  ;;  %v1835_v52 = vpop.f32.mrb[99].mxu1  ;;  %2091 = vrot.lane.b32.xlu0 %v5738_v47, %s4679_s4  ;;  %3402 = vst.msk [vmem:[%s7000_s5 + $0x110] sm:$0xff] %vm3367_vm1, %v5738_v47 }
 0x27e   :  { %7117 = vst [vmem:[#allocation16_spill] sm:$0xff] %v5743_v46  ;;  %v5756_v49 = vadd.f32 %v5380_v60, %v1835_v52  ;;  %3400 = vst.msk [vmem:[%s7000_s5 + $0x100] sm:$0xff] %vm3367_vm1, %v5743_v46 }
 0x27f   :  { %2093 = vrot.lane.b32.xlu1 %v5746_v40, %s4679_s4  ;;  %v2036_v22 = vpop.permute.xlu0 %2035  ;;  %3403 = vst.msk [vmem:[%s7000_s5 + $0x118] sm:$0xff] %vm3367_vm1, %v5746_v40 }
 0x280   :  { %7118 = vst [vmem:[#allocation17_spill] sm:$0xff] %v5756_v49  ;;  %3401 = vst.msk [vmem:[%s7000_s5 + $0x108] sm:$0xff] %vm3367_vm1, %v5756_v49  ;;  %v5778_v48 = vmax.f32 %v5434_v17, %v2036_v22 }
 0x281   :  { %v2038_v27 = vpop.permute.xlu1 %2037  ;;  %2087 = vrot.lane.b32.xlu0 %v5743_v46, %s4679_s4 }
 0x282   :  { %7119 = vst [vmem:[#allocation18_spill] sm:$0xff] %v5778_v48  ;;  %v5783_v62 = vmax.f32 %v5441_v28, %v2038_v27 }
 0x283   :  { %2089 = vrot.lane.b32.xlu1 %v5756_v49, %s4679_s4  ;;  %v2032_v35 = vpop.permute.xlu0 %2031 }
 0x284   :  { %7120 = vst [vmem:[#allocation19_spill] sm:$0xff] %v5783_v62  ;;  %v5788_v45 = vmax.f32 %v5437_v21, %v2032_v35 }
 0x285   :  { %2547 = vrot.lane.b32.xlu0 %v5778_v48, %s4680_s21  ;;  %v2034_v12 = vpop.permute.xlu1 %2033 }
 0x286   :  { %7121 = vst [vmem:[#allocation20_spill] sm:$0xff] %v5788_v45  ;;  %v5793_v20 = vmax.f32 %v5451_v55, %v2034_v12 }
 0x287   :  { %2549 = vrot.lane.b32.xlu1 %v5783_v62, %s4680_s21 }
 0x288   :  { %7122 = vst [vmem:[#allocation21_spill] sm:$0xff] %v5793_v20 }
 0x289   :  { %2543 = vrot.lane.b32.xlu0 %v5788_v45, %s4680_s21 }
 0x28a   :  { %v4117_v51 = vpop.f32.mrb[100].mxu1 }
 0x28b   :  { %v5798_v16 = vadd.f32 %v4117_v51, %v5380_v60  ;;  %v1848_v14 = vpop.f32.mrb[101].mxu1  ;;  %2545 = vrot.lane.b32.xlu1 %v5793_v20, %s4680_s21 }
 0x28c   :  { %v5803_v42 = vadd.f32 %v5380_v60, %v1848_v14  ;;  %v4118_v7 = vpop.f32.mrb[102].mxu1 }
 0x28d   :  { %v5806_v56 = vadd.f32 %v4118_v7, %v5380_v60  ;;  %v1851_v1 = vpop.f32.mrb[103].mxu1  ;;  %2099 = vrot.lane.b32.xlu0 %v5798_v16, %s4679_s4  ;;  %3406 = vst.msk [vmem:[%s7000_s5 + $0x130] sm:$0xff] %vm3367_vm1, %v5798_v16 }
 0x28e   :  { %v5816_v15 = vadd.f32 %v5380_v60, %v1851_v1  ;;  %3404 = vst.msk [vmem:[%s7000_s5 + $0x120] sm:$0xff] %vm3367_vm1, %v5803_v42 }
 0x28f   :  { %2101 = vrot.lane.b32.xlu1 %v5806_v56, %s4679_s4  ;;  %v2044_v6 = vpop.permute.xlu0 %2043  ;;  %3407 = vst.msk [vmem:[%s7000_s5 + $0x138] sm:$0xff] %vm3367_vm1, %v5806_v56 }
 0x290   :  { %3405 = vst.msk [vmem:[%s7000_s5 + $0x128] sm:$0xff] %vm3367_vm1, %v5816_v15  ;;  %v5838_v5 = vmax.f32 %v5480_v59, %v2044_v6 }
 0x291   :  { %v2046_v0 = vpop.permute.xlu1 %2045  ;;  %2095 = vrot.lane.b32.xlu0 %v5803_v42, %s4679_s4 }
 0x292   :  { %7123 = vst [vmem:[#allocation22_spill] sm:$0xff] %v5838_v5  ;;  %v5843_v37 = vmax.f32 %v5486_v23, %v2046_v0 }
 0x293   :  { %2097 = vrot.lane.b32.xlu1 %v5816_v15, %s4679_s4  ;;  %v2040_v33 = vpop.permute.xlu0 %2039 }
 0x294   :  { %7124 = vst [vmem:[#allocation23_spill] sm:$0xff] %v5843_v37  ;;  %v5848_v52 = vmax.f32 %v5483_v44, %v2040_v33 }
 0x295   :  { %2555 = vrot.lane.b32.xlu0 %v5838_v5, %s4680_s21  ;;  %v2042_v38 = vpop.permute.xlu1 %2041 }
 0x296   :  { %7125 = vst [vmem:[#allocation24_spill] sm:$0xff] %v5848_v52  ;;  %v5853_v22 = vmax.f32 %v5496_v32, %v2042_v38 }
 0x297   :  { %2557 = vrot.lane.b32.xlu1 %v5843_v37, %s4680_s21 }
 0x298   :  { %7126 = vst [vmem:[#allocation25_spill] sm:$0xff] %v5853_v22 }
 0x299   :  { %2551 = vrot.lane.b32.xlu0 %v5848_v52, %s4680_s21 }
 0x29a   :  { %v4121_v27 = vpop.f32.mrb[104].mxu1 }
 0x29b   :  { %v5858_v35 = vadd.f32 %v4121_v27, %v5380_v60  ;;  %v1864_v12 = vpop.f32.mrb[105].mxu1  ;;  %2553 = vrot.lane.b32.xlu1 %v5853_v22, %s4680_s21 }
 0x29c   :  { %v5863_v51 = vadd.f32 %v5380_v60, %v1864_v12  ;;  %v4122_v14 = vpop.f32.mrb[106].mxu1 }
 0x29d   :  { %v5866_v7 = vadd.f32 %v4122_v14, %v5380_v60  ;;  %v1867_v1 = vpop.f32.mrb[107].mxu1  ;;  %2107 = vrot.lane.b32.xlu0 %v5858_v35, %s4679_s4  ;;  %3410 = vst.msk [vmem:[%s7000_s5 + $0x150] sm:$0xff] %vm3367_vm1, %v5858_v35 }
 0x29e   :  { %v5876_v6 = vadd.f32 %v5380_v60, %v1867_v1  ;;  %3408 = vst.msk [vmem:[%s7000_s5 + $0x140] sm:$0xff] %vm3367_vm1, %v5863_v51 }
 0x29f   :  { %2109 = vrot.lane.b32.xlu1 %v5866_v7, %s4679_s4  ;;  %v2052_v0 = vpop.permute.xlu0 %2051  ;;  %3411 = vst.msk [vmem:[%s7000_s5 + $0x158] sm:$0xff] %vm3367_vm1, %v5866_v7 }
 0x2a0   :  { %3409 = vst.msk [vmem:[%s7000_s5 + $0x148] sm:$0xff] %vm3367_vm1, %v5876_v6  ;;  %v5898_v38 = vmax.f32 %v5520_v41, %v2052_v0 }
 0x2a1   :  { %v2054_v33 = vpop.permute.xlu1 %2053  ;;  %2103 = vrot.lane.b32.xlu0 %v5863_v51, %s4679_s4 }
 0x2a2   :  { %7127 = vst [vmem:[#allocation26_spill] sm:$0xff] %v5898_v38  ;;  %v5903_v12 = vmax.f32 %v5526_v34, %v2054_v33 }
 0x2a3   :  { %2105 = vrot.lane.b32.xlu1 %v5876_v6, %s4679_s4  ;;  %v2048_v27 = vpop.permute.xlu0 %2047 }
 0x2a4   :  { %7128 = vst [vmem:[#allocation27_spill] sm:$0xff] %v5903_v12  ;;  %v5908_v1 = vmax.f32 %v5523_v36, %v2048_v27 }
 0x2a5   :  { %2563 = vrot.lane.b32.xlu0 %v5898_v38, %s4680_s21  ;;  %v2050_v14 = vpop.permute.xlu1 %2049 }
 0x2a6   :  { %7129 = vst [vmem:[#allocation28_spill] sm:$0xff] %v5908_v1  ;;  %v5913_v0 = vmax.f32 %v5536_v54, %v2050_v14 }
 0x2a7   :  { %2565 = vrot.lane.b32.xlu1 %v5903_v12, %s4680_s21 }
 0x2a8   :  { %7130 = vst [vmem:[#allocation29_spill] sm:$0xff] %v5913_v0 }
 0x2a9   :  { %2559 = vrot.lane.b32.xlu0 %v5908_v1, %s4680_s21 }
 0x2aa   :  { %v4125_v22 = vpop.f32.mrb[108].mxu1 }
 0x2ab   :  { %v5918_v33 = vadd.f32 %v4125_v22, %v5380_v60  ;;  %v1880_v52 = vpop.f32.mrb[109].mxu1  ;;  %2561 = vrot.lane.b32.xlu1 %v5913_v0, %s4680_s21 }
 0x2ac   :  { %v5923_v27 = vadd.f32 %v5380_v60, %v1880_v52  ;;  %v4126_v38 = vpop.f32.mrb[110].mxu1 }
 0x2ad   :  { %v5926_v12 = vadd.f32 %v4126_v38, %v5380_v60  ;;  %v1883_v14 = vpop.f32.mrb[111].mxu1  ;;  %2115 = vrot.lane.b32.xlu0 %v5918_v33, %s4679_s4  ;;  %3414 = vst.msk [vmem:[%s7000_s5 + $0x170] sm:$0xff] %vm3367_vm1, %v5918_v33 }
 0x2ae   :  { %v5936_v22 = vadd.f32 %v5380_v60, %v1883_v14  ;;  %3412 = vst.msk [vmem:[%s7000_s5 + $0x160] sm:$0xff] %vm3367_vm1, %v5923_v27 }
 0x2af   :  { %2117 = vrot.lane.b32.xlu1 %v5926_v12, %s4679_s4  ;;  %v2060_v52 = vpop.permute.xlu0 %2059  ;;  %3415 = vst.msk [vmem:[%s7000_s5 + $0x178] sm:$0xff] %vm3367_vm1, %v5926_v12 }
 0x2b0   :  { %3413 = vst.msk [vmem:[%s7000_s5 + $0x168] sm:$0xff] %vm3367_vm1, %v5936_v22  ;;  %v5958_v14 = vmax.f32 %v5560_v3, %v2060_v52 }
 0x2b1   :  { %v2062_v38 = vpop.permute.xlu1 %2061  ;;  %2111 = vrot.lane.b32.xlu0 %v5923_v27, %s4679_s4 }
 0x2b2   :  { %7131 = vst [vmem:[#allocation30_spill] sm:$0xff] %v5958_v14  ;;  %v5963_v1 = vmax.f32 %v5566_v50, %v2062_v38 }
 0x2b3   :  { %2113 = vrot.lane.b32.xlu1 %v5936_v22, %s4679_s4  ;;  %v2056_v0 = vpop.permute.xlu0 %2055 }
 0x2b4   :  { %7132 = vst [vmem:[#allocation31_spill] sm:$0xff] %v5963_v1  ;;  %v5968_v5 = vmax.f32 %v5563_v24, %v2056_v0 }
 0x2b5   :  { %2571 = vrot.lane.b32.xlu0 %v5958_v14, %s4680_s21  ;;  %v2058_v37 = vpop.permute.xlu1 %2057 }
 0x2b6   :  { %7133 = vst [vmem:[#allocation32_spill] sm:$0xff] %v5968_v5  ;;  %v5973_v52 = vmax.f32 %v5576_v18, %v2058_v37 }
 0x2b7   :  { %2573 = vrot.lane.b32.xlu1 %v5963_v1, %s4680_s21 }
 0x2b8   :  { %7134 = vst [vmem:[#allocation33_spill] sm:$0xff] %v5973_v52 }
 0x2b9   :  { %2567 = vrot.lane.b32.xlu0 %v5968_v5, %s4680_s21 }
 0x2ba   :  { %v4129_v20 = vpop.f32.mrb[112].mxu1 }
 0x2bb   :  { %v5978_v38 = vadd.f32 %v4129_v20, %v5380_v60  ;;  %v1896_v45 = vpop.f32.mrb[113].mxu1  ;;  %2569 = vrot.lane.b32.xlu1 %v5973_v52, %s4680_s21 }
 0x2bc   :  { %v5983_v0 = vadd.f32 %v5380_v60, %v1896_v45  ;;  %v4130_v14 = vpop.f32.mrb[114].mxu1 }
 0x2bd   :  { %v5986_v1 = vadd.f32 %v4130_v14, %v5380_v60  ;;  %v1899_v37 = vpop.f32.mrb[115].mxu1  ;;  %2123 = vrot.lane.b32.xlu0 %v5978_v38, %s4679_s4  ;;  %3418 = vst.msk [vmem:[%s7000_s5 + $0x190] sm:$0xff] %vm3367_vm1, %v5978_v38 }
 0x2be   :  { %v5996_v20 = vadd.f32 %v5380_v60, %v1899_v37  ;;  %3416 = vst.msk [vmem:[%s7000_s5 + $0x180] sm:$0xff] %vm3367_vm1, %v5983_v0 }
 0x2bf   :  { %2125 = vrot.lane.b32.xlu1 %v5986_v1, %s4679_s4  ;;  %v2068_v45 = vpop.permute.xlu0 %2067  ;;  %3419 = vst.msk [vmem:[%s7000_s5 + $0x198] sm:$0xff] %vm3367_vm1, %v5986_v1 }
 0x2c0   :  { %3417 = vst.msk [vmem:[%s7000_s5 + $0x188] sm:$0xff] %vm3367_vm1, %v5996_v20  ;;  %v6018_v37 = vmax.f32 %v5600_v57, %v2068_v45 }
 0x2c1   :  { %v2070_v14 = vpop.permute.xlu1 %2069  ;;  %2119 = vrot.lane.b32.xlu0 %v5983_v0, %s4679_s4 }
 0x2c2   :  { %7135 = vst [vmem:[#allocation34_spill] sm:$0xff] %v6018_v37  ;;  %v6023_v5 = vmax.f32 %v5606_v10, %v2070_v14 }
 0x2c3   :  { %2121 = vrot.lane.b32.xlu1 %v5996_v20, %s4679_s4  ;;  %v2064_v52 = vpop.permute.xlu0 %2063 }
 0x2c4   :  { %7136 = vst [vmem:[#allocation35_spill] sm:$0xff] %v6023_v5  ;;  %v6028_v48 = vmax.f32 %v5603_v8, %v2064_v52 }
 0x2c5   :  { %2579 = vrot.lane.b32.xlu0 %v6018_v37, %s4680_s21  ;;  %v2066_v62 = vpop.permute.xlu1 %2065 }
 0x2c6   :  { %7137 = vst [vmem:[#allocation36_spill] sm:$0xff] %v6028_v48  ;;  %v6033_v45 = vmax.f32 %v5616_v26, %v2066_v62 }
 0x2c7   :  { %2581 = vrot.lane.b32.xlu1 %v6023_v5, %s4680_s21 }
 0x2c8   :  { %7138 = vst [vmem:[#allocation37_spill] sm:$0xff] %v6033_v45 }
 0x2c9   :  { %2575 = vrot.lane.b32.xlu0 %v6028_v48, %s4680_s21 }
 0x2ca   :  { %v4133_v31 = vpop.f32.mrb[116].mxu1 }
 0x2cb   :  { %v6038_v14 = vadd.f32 %v4133_v31, %v5380_v60  ;;  %v1912_v61 = vpop.f32.mrb[117].mxu1  ;;  %2577 = vrot.lane.b32.xlu1 %v6033_v45, %s4680_s21 }
 0x2cc   :  { %v6043_v52 = vadd.f32 %v5380_v60, %v1912_v61  ;;  %v4134_v37 = vpop.f32.mrb[118].mxu1 }
 0x2cd   :  { %v6046_v5 = vadd.f32 %v4134_v37, %v5380_v60  ;;  %v1915_v62 = vpop.f32.mrb[119].mxu1  ;;  %2131 = vrot.lane.b32.xlu0 %v6038_v14, %s4679_s4  ;;  %3422 = vst.msk [vmem:[%s7000_s5 + $0x1b0] sm:$0xff] %vm3367_vm1, %v6038_v14 }
 0x2ce   :  { %7139 = vst [vmem:[#allocation38_spill] sm:$0xff] %v6043_v52  ;;  %v6056_v31 = vadd.f32 %v5380_v60, %v1915_v62  ;;  %3420 = vst.msk [vmem:[%s7000_s5 + $0x1a0] sm:$0xff] %vm3367_vm1, %v6043_v52 }
 0x2cf   :  { %2133 = vrot.lane.b32.xlu1 %v6046_v5, %s4679_s4  ;;  %v2076_v61 = vpop.permute.xlu0 %2075  ;;  %3423 = vst.msk [vmem:[%s7000_s5 + $0x1b8] sm:$0xff] %vm3367_vm1, %v6046_v5 }
 0x2d0   :  { %7140 = vst [vmem:[#allocation39_spill] sm:$0xff] %v6056_v31  ;;  %3421 = vst.msk [vmem:[%s7000_s5 + $0x1a8] sm:$0xff] %vm3367_vm1, %v6056_v31  ;;  %v6078_v62 = vmax.f32 %v5640_v19, %v2076_v61 }
 0x2d1   :  { %v2078_v37 = vpop.permute.xlu1 %2077  ;;  %2127 = vrot.lane.b32.xlu0 %v6043_v52, %s4679_s4 }
 0x2d2   :  { %7141 = vst [vmem:[#allocation40_spill] sm:$0xff] %v6078_v62  ;;  %v6083_v48 = vmax.f32 %v5646_v9, %v2078_v37 }
 0x2d3   :  { %2129 = vrot.lane.b32.xlu1 %v6056_v31, %s4679_s4  ;;  %v2072_v45 = vpop.permute.xlu0 %2071 }
 0x2d4   :  { %7142 = vst [vmem:[#allocation41_spill] sm:$0xff] %v6083_v48  ;;  %v6088_v63 = vmax.f32 %v5643_v4, %v2072_v45 }
 0x2d5   :  { %2587 = vrot.lane.b32.xlu0 %v6078_v62, %s4680_s21  ;;  %v2074_v13 = vpop.permute.xlu1 %2073 }
 0x2d6   :  { %7143 = vst [vmem:[#allocation42_spill] sm:$0xff] %v6088_v63  ;;  %v6093_v61 = vmax.f32 %v5656_v11, %v2074_v13 }
 0x2d7   :  { %2589 = vrot.lane.b32.xlu1 %v6083_v48, %s4680_s21 }
 0x2d8   :  { %7144 = vst [vmem:[#allocation43_spill] sm:$0xff] %v6093_v61 }
 0x2d9   :  { %2583 = vrot.lane.b32.xlu0 %v6088_v63, %s4680_s21 }
 0x2da   :  { %v4137_v19 = vpop.f32.mrb[120].mxu1 }
 0x2db   :  { %v6098_v37 = vadd.f32 %v4137_v19, %v5380_v60  ;;  %v1928_v9 = vpop.f32.mrb[121].mxu1  ;;  %2585 = vrot.lane.b32.xlu1 %v6093_v61, %s4680_s21 }
 0x2dc   :  { %v6103_v45 = vadd.f32 %v5380_v60, %v1928_v9  ;;  %v4138_v62 = vpop.f32.mrb[122].mxu1 }
 0x2dd   :  { %7145 = vst [vmem:[#allocation44_spill] sm:$0xff] %v6098_v37  ;;  %v6106_v48 = vadd.f32 %v4138_v62, %v5380_v60  ;;  %v1931_v13 = vpop.f32.mrb[123].mxu1  ;;  %2139 = vrot.lane.b32.xlu0 %v6098_v37, %s4679_s4  ;;  %3426 = vst.msk [vmem:[%s7000_s5 + $0x1d0] sm:$0xff] %vm3367_vm1, %v6098_v37 }
 0x2de   :  { %7146 = vst [vmem:[#allocation45_spill] sm:$0xff] %v6103_v45  ;;  %v6116_v19 = vadd.f32 %v5380_v60, %v1931_v13  ;;  %3424 = vst.msk [vmem:[%s7000_s5 + $0x1c0] sm:$0xff] %vm3367_vm1, %v6103_v45 }
 0x2df   :  { %7147 = vst [vmem:[#allocation46_spill] sm:$0xff] %v6106_v48  ;;  %2141 = vrot.lane.b32.xlu1 %v6106_v48, %s4679_s4  ;;  %v2084_v9 = vpop.permute.xlu0 %2083  ;;  %3427 = vst.msk [vmem:[%s7000_s5 + $0x1d8] sm:$0xff] %vm3367_vm1, %v6106_v48 }
 0x2e0   :  { %7148 = vst [vmem:[#allocation47_spill] sm:$0xff] %v6116_v19  ;;  %3425 = vst.msk [vmem:[%s7000_s5 + $0x1c8] sm:$0xff] %vm3367_vm1, %v6116_v19  ;;  %v6138_v13 = vmax.f32 %v5680_v25, %v2084_v9 }
 0x2e1   :  { %v2086_v62 = vpop.permute.xlu1 %2085  ;;  %2135 = vrot.lane.b32.xlu0 %v6103_v45, %s4679_s4 }
 0x2e2   :  { %7149 = vst [vmem:[#allocation48_spill] sm:$0xff] %v6138_v13  ;;  %v6143_v63 = vmax.f32 %v5686_v43, %v2086_v62 }
 0x2e3   :  { %2137 = vrot.lane.b32.xlu1 %v6116_v19, %s4679_s4  ;;  %v2080_v61 = vpop.permute.xlu0 %2079 }
 0x2e4   :  { %7150 = vst [vmem:[#allocation49_spill] sm:$0xff] %v6143_v63  ;;  %v6148_v37 = vmax.f32 %v5683_v39, %v2080_v61 }
 0x2e5   :  { %v2082_v48 = vpop.permute.xlu1 %2081  ;;  %2595 = vrot.lane.b32.xlu0 %v6138_v13, %s4680_s21 }
 0x2e6   :  { %7151 = vst [vmem:[#allocation50_spill] sm:$0xff] %v6148_v37  ;;  %v6153_v9 = vmax.f32 %v5696_v29, %v2082_v48 }
 0x2e7   :  { %2597 = vrot.lane.b32.xlu1 %v6143_v63, %s4680_s21  ;;  %v2540_v45 = vpop.permute.xlu0 %2539 }
 0x2e8   :  { %7152 = vst [vmem:[#allocation51_spill] sm:$0xff] %v6153_v9  ;;  %v2729_v62 = vsub.f32 %v5384_v30, %v2540_v45 }
 0x2e9   :  { %v2542_v25 = vpop.permute.xlu1 %2541  ;;  %2591 = vrot.lane.b32.xlu0 %v6148_v37, %s4680_s21 }
 0x2ea   :  { %v4141_v43 = vpop.f32.mrb[124].mxu1  ;;  %v2730_v63 = vsub.f32 %v5391_v58, %v2542_v25 }
 0x2eb   :  { %v6159_v19 = vadd.f32 %v4141_v43, %v5380_v60  ;;  %v1944_v13 = vpop.f32.mrb[125].mxu1  ;;  %2593 = vrot.lane.b32.xlu1 %v6153_v9, %s4680_s21  ;;  %v2536_v61 = vpop.permute.xlu0 %2535  ;;  %v2795_v43 = vmul.f32 1.442695, %v2729_v62 }
 0x2ec   :  { %v6165_v48 = vadd.f32 %v5380_v60, %v1944_v13  ;;  %v4142_v29 = vpop.f32.mrb[126].mxu1  ;;  %v2727_v25 = vsub.f32 %v5387_v53, %v2536_v61  ;;  %v2797_v62 = vmul.f32 1.442695, %v2730_v63 }
 0x2ed   :  { %7153 = vst [vmem:[#allocation52_spill] sm:$0xff] %v6159_v19  ;;  %v6168_v39 = vadd.f32 %v4142_v29, %v5380_v60  ;;  %v1947_v37 = vpop.f32.mrb[127].mxu1  ;;  %v2538_v45 = vpop.permute.xlu1 %2537  ;;  %2147 = vrot.lane.b32.xlu0 %v6159_v19, %s4679_s4  ;;  %3430 = vst.msk [vmem:[%s7000_s5 + $0x1f0] sm:$0xff] %vm3367_vm1, %v6159_v19  ;;  %4294 = vpow2.f32 %v2795_v43 }
 0x2ee   :  { %v6179_v13 = vadd.f32 %v5380_v60, %v1947_v37  ;;  %3428 = vst.msk [vmem:[%s7000_s5 + $0x1e0] sm:$0xff] %vm3367_vm1, %v6165_v48  ;;  %v2728_v60 = vsub.f32 %v5401_v2, %v2538_v45  ;;  %v2791_v61 = vmul.f32 1.442695, %v2727_v25  ;;  %4296 = vpow2.f32 %v2797_v62 }
 0x2ef   :  { %7154 = vst [vmem:[#allocation53_spill] sm:$0xff] %v6168_v39  ;;  %2149 = vrot.lane.b32.xlu1 %v6168_v39, %s4679_s4  ;;  %v2092_v29 = vpop.permute.xlu0 %2091  ;;  %3431 = vst.msk [vmem:[%s7000_s5 + $0x1f8] sm:$0xff] %vm3367_vm1, %v6168_v39 }
 0x2f0   :  { %7155 = vst [vmem:[#allocation54_spill] sm:$0xff] %v6179_v13  ;;  %3429 = vst.msk [vmem:[%s7000_s5 + $0x1e8] sm:$0xff] %vm3367_vm1, %v6179_v13  ;;  %v6202_v9 = vmax.f32 %v5738_v47, %v2092_v29  ;;  %v2793_v45 = vmul.f32 1.442695, %v2728_v60  ;;  %4298 = vpow2.f32 %v2791_v61 }
 0x2f1   :  { %v2094_v37 = vpop.permute.xlu1 %2093  ;;  %2143 = vrot.lane.b32.xlu0 %v6165_v48, %s4679_s4 }
 0x2f2   :  { %7156 = vst [vmem:[#allocation55_spill] sm:$0xff] %v6202_v9  ;;  %v6207_v39 = vmax.f32 %v5746_v40, %v2094_v37  ;;  %4300 = vpow2.f32 %v2793_v45 }
 0x2f3   :  { %2145 = vrot.lane.b32.xlu1 %v6179_v13, %s4679_s4  ;;  %v2088_v63 = vpop.permute.xlu0 %2087 }
 0x2f4   :  { %7157 = vst [vmem:[#allocation56_spill] sm:$0xff] %v6207_v39  ;;  %v6212_v43 = vmax.f32 %v5743_v46, %v2088_v63 }
 0x2f5   :  { %v2090_v19 = vpop.permute.xlu1 %2089  ;;  %2603 = vrot.lane.b32.xlu0 %v6202_v9, %s4680_s21 }
 0x2f6   :  { %7158 = vst [vmem:[#allocation57_spill] sm:$0xff] %v6212_v43  ;;  %v6217_v29 = vmax.f32 %v5756_v49, %v2090_v19 }
 0x2f7   :  { %2605 = vrot.lane.b32.xlu1 %v6207_v39, %s4680_s21  ;;  %v2548_v25 = vpop.permute.xlu0 %2547  ;;  %v4295_v61 = vpop.eup %4294 }
 0x2f8   :  { %7159 = vst [vmem:[#allocation58_spill] sm:$0xff] %v6217_v29  ;;  %v2733_v60 = vsub.f32 %v5434_v17, %v2548_v25  ;;  %v4297_v45 = vpop.eup %4296 }
 0x2f9   :  { %v2550_v62 = vpop.permute.xlu1 %2549  ;;  %2599 = vrot.lane.b32.xlu0 %v6212_v43, %s4680_s21 }
 0x2fa   :  { %v2734_v63 = vsub.f32 %v5441_v28, %v2550_v62  ;;  %v2803_v39 = vmul.f32 1.442695, %v2733_v60  ;;  %v4299_v43 = vpop.eup %4298 }
 0x2fb   :  { %2601 = vrot.lane.b32.xlu1 %v6217_v29, %s4680_s21  ;;  %v2544_v37 = vpop.permute.xlu0 %2543 }
 0x2fc   :  { %v2731_v19 = vsub.f32 %v5437_v21, %v2544_v37  ;;  %v2805_v46 = vmul.f32 1.442695, %v2734_v63  ;;  %v4301_v29 = vpop.eup %4300  ;;  %4302 = vpow2.f32 %v2803_v39 }
 0x2fd   :  { %v2546_v9 = vpop.permute.xlu1 %2545  ;;  %2987 = vrot.lane.b32.xlu0 %v4295_v61, %s4679_s4 }
 0x2fe   :  { %v2732_v25 = vsub.f32 %v5451_v55, %v2546_v9  ;;  %v2799_v62 = vmul.f32 1.442695, %v2731_v19  ;;  %4304 = vpow2.f32 %v2805_v46 }
 0x2ff   :  { %2989 = vrot.lane.b32.xlu1 %v4297_v45, %s4679_s4  ;;  %v2100_v49 = vpop.permute.xlu0 %2099 }
 0x300   :  { %v6231_v28 = vmax.f32 %v5798_v16, %v2100_v49  ;;  %v2801_v37 = vmul.f32 1.442695, %v2732_v25  ;;  %4306 = vpow2.f32 %v2799_v62 }
 0x301   :  { %v2102_v17 = vpop.permute.xlu1 %2101  ;;  %2983 = vrot.lane.b32.xlu0 %v4299_v43, %s4679_s4 }
 0x302   :  { %7160 = vst [vmem:[#allocation59_spill] sm:$0xff] %v6231_v28  ;;  %v6235_v61 = vmax.f32 %v5806_v56, %v2102_v17  ;;  %4308 = vpow2.f32 %v2801_v37 }
 0x303   :  { %2985 = vrot.lane.b32.xlu1 %v4301_v29, %s4679_s4  ;;  %v2096_v60 = vpop.permute.xlu0 %2095 }
 0x304   :  { %7161 = vst [vmem:[#allocation60_spill] sm:$0xff] %v6235_v61  ;;  %v6240_v9 = vmax.f32 %v5803_v42, %v2096_v60 }
 0x305   :  { %v2098_v63 = vpop.permute.xlu1 %2097  ;;  %2611 = vrot.lane.b32.xlu0 %v6231_v28, %s4680_s21 }
 0x306   :  { %7162 = vst [vmem:[#allocation61_spill] sm:$0xff] %v6240_v9  ;;  %v6245_v49 = vmax.f32 %v5816_v15, %v2098_v63  ;;  %v4303_v29 = vpop.eup %4302 }
 0x307   :  { %2613 = vrot.lane.b32.xlu1 %v6235_v61, %s4680_s21  ;;  %v2556_v39 = vpop.permute.xlu0 %2555 }
 0x308   :  { %7163 = vst [vmem:[#allocation62_spill] sm:$0xff] %v6245_v49  ;;  %v2737_v17 = vsub.f32 %v5480_v59, %v2556_v39  ;;  %v4305_v25 = vpop.eup %4304 }
 0x309   :  { %v2558_v46 = vpop.permute.xlu1 %2557  ;;  %2607 = vrot.lane.b32.xlu0 %v6240_v9, %s4680_s21 }
 0x30a   :  { %v2738_v45 = vsub.f32 %v5486_v23, %v2558_v46  ;;  %v2811_v62 = vmul.f32 1.442695, %v2737_v17  ;;  %v4307_v63 = vpop.eup %4306 }
 0x30b   :  { %2609 = vrot.lane.b32.xlu1 %v6245_v49, %s4680_s21  ;;  %v2552_v43 = vpop.permute.xlu0 %2551 }
 0x30c   :  { %v2735_v60 = vsub.f32 %v5483_v44, %v2552_v43  ;;  %v2813_v9 = vmul.f32 1.442695, %v2738_v45  ;;  %v4309_v49 = vpop.eup %4308  ;;  %4310 = vpow2.f32 %v2811_v62 }
 0x30d   :  { %v2554_v19 = vpop.permute.xlu1 %2553  ;;  %2995 = vrot.lane.b32.xlu0 %v4303_v29, %s4679_s4 }
 0x30e   :  { %v2736_v39 = vsub.f32 %v5496_v32, %v2554_v19  ;;  %v2807_v46 = vmul.f32 1.442695, %v2735_v60  ;;  %4312 = vpow2.f32 %v2813_v9 }
 0x30f   :  { %2997 = vrot.lane.b32.xlu1 %v4305_v25, %s4679_s4  ;;  %v2108_v37 = vpop.permute.xlu0 %2107 }
 0x310   :  { %v6259_v28 = vmax.f32 %v5858_v35, %v2108_v37  ;;  %v2809_v43 = vmul.f32 1.442695, %v2736_v39  ;;  %4314 = vpow2.f32 %v2807_v46 }
 0x311   :  { %v2110_v61 = vpop.permute.xlu1 %2109  ;;  %2991 = vrot.lane.b32.xlu0 %v4307_v63, %s4679_s4 }
 0x312   :  { %7164 = vst [vmem:[#allocation63_spill] sm:$0xff] %v6259_v28  ;;  %v6263_v29 = vmax.f32 %v5866_v7, %v2110_v61  ;;  %4316 = vpow2.f32 %v2809_v43 }
 0x313   :  { %2993 = vrot.lane.b32.xlu1 %v4309_v49, %s4679_s4  ;;  %v2104_v17 = vpop.permute.xlu0 %2103 }
 0x314   :  { %7165 = vst [vmem:[#allocation64_spill] sm:$0xff] %v6263_v29  ;;  %v6268_v19 = vmax.f32 %v5863_v51, %v2104_v17 }
 0x315   :  { %v2106_v45 = vpop.permute.xlu1 %2105  ;;  %2619 = vrot.lane.b32.xlu0 %v6259_v28, %s4680_s21 }
 0x316   :  { %7166 = vst [vmem:[#allocation65_spill] sm:$0xff] %v6268_v19  ;;  %v6273_v49 = vmax.f32 %v5876_v6, %v2106_v45  ;;  %v4311_v60 = vpop.eup %4310 }
 0x317   :  { %2621 = vrot.lane.b32.xlu1 %v6263_v29, %s4680_s21  ;;  %v2564_v25 = vpop.permute.xlu0 %2563 }
 0x318   :  { %7167 = vst [vmem:[#allocation66_spill] sm:$0xff] %v6273_v49  ;;  %v2741_v61 = vsub.f32 %v5520_v41, %v2564_v25  ;;  %v4313_v39 = vpop.eup %4312 }
 0x319   :  { %v2566_v9 = vpop.permute.xlu1 %2565  ;;  %2615 = vrot.lane.b32.xlu0 %v6268_v19, %s4680_s21 }
 0x31a   :  { %v2742_v37 = vsub.f32 %v5526_v34, %v2566_v9  ;;  %v2819_v46 = vmul.f32 1.442695, %v2741_v61  ;;  %v4315_v45 = vpop.eup %4314 }
 0x31b   :  { %2617 = vrot.lane.b32.xlu1 %v6273_v49, %s4680_s21  ;;  %v2560_v62 = vpop.permute.xlu0 %2559 }
 0x31c   :  { %v2739_v17 = vsub.f32 %v5523_v36, %v2560_v62  ;;  %v2821_v19 = vmul.f32 1.442695, %v2742_v37  ;;  %v4317_v49 = vpop.eup %4316  ;;  %4318 = vpow2.f32 %v2819_v46 }
 0x31d   :  { %v2562_v63 = vpop.permute.xlu1 %2561  ;;  %3003 = vrot.lane.b32.xlu0 %v4311_v60, %s4679_s4 }
 0x31e   :  { %v2740_v25 = vsub.f32 %v5536_v54, %v2562_v63  ;;  %v2815_v9 = vmul.f32 1.442695, %v2739_v17  ;;  %4320 = vpow2.f32 %v2821_v19 }
 0x31f   :  { %3005 = vrot.lane.b32.xlu1 %v4313_v39, %s4679_s4  ;;  %v2116_v43 = vpop.permute.xlu0 %2115 }
 0x320   :  { %v6287_v28 = vmax.f32 %v5918_v33, %v2116_v43  ;;  %v2817_v62 = vmul.f32 1.442695, %v2740_v25  ;;  %4322 = vpow2.f32 %v2815_v9 }
 0x321   :  { %v2118_v29 = vpop.permute.xlu1 %2117  ;;  %2999 = vrot.lane.b32.xlu0 %v4315_v45, %s4679_s4 }
 0x322   :  { %7168 = vst [vmem:[#allocation67_spill] sm:$0xff] %v6287_v28  ;;  %v6291_v60 = vmax.f32 %v5926_v12, %v2118_v29  ;;  %4324 = vpow2.f32 %v2817_v62 }
 0x323   :  { %3001 = vrot.lane.b32.xlu1 %v4317_v49, %s4679_s4  ;;  %v2112_v61 = vpop.permute.xlu0 %2111 }
 0x324   :  { %7169 = vst [vmem:[#allocation68_spill] sm:$0xff] %v6291_v60  ;;  %v6296_v63 = vmax.f32 %v5923_v27, %v2112_v61 }
 0x325   :  { %v2114_v37 = vpop.permute.xlu1 %2113  ;;  %2627 = vrot.lane.b32.xlu0 %v6287_v28, %s4680_s21 }
 0x326   :  { %7170 = vst [vmem:[#allocation69_spill] sm:$0xff] %v6296_v63  ;;  %v6301_v49 = vmax.f32 %v5936_v22, %v2114_v37  ;;  %v4319_v17 = vpop.eup %4318 }
 0x327   :  { %2629 = vrot.lane.b32.xlu1 %v6291_v60, %s4680_s21  ;;  %v2572_v39 = vpop.permute.xlu0 %2571 }
 0x328   :  { %7171 = vst [vmem:[#allocation70_spill] sm:$0xff] %v6301_v49  ;;  %v2745_v29 = vsub.f32 %v5560_v3, %v2572_v39  ;;  %v4321_v25 = vpop.eup %4320 }
 0x329   :  { %v2574_v19 = vpop.permute.xlu1 %2573  ;;  %2623 = vrot.lane.b32.xlu0 %v6296_v63, %s4680_s21 }
 0x32a   :  { %v2746_v43 = vsub.f32 %v5566_v50, %v2574_v19  ;;  %v2827_v9 = vmul.f32 1.442695, %v2745_v29  ;;  %v4323_v37 = vpop.eup %4322 }
 0x32b   :  { %2625 = vrot.lane.b32.xlu1 %v6301_v49, %s4680_s21  ;;  %v2568_v46 = vpop.permute.xlu0 %2567 }
 0x32c   :  { %v2743_v61 = vsub.f32 %v5563_v24, %v2568_v46  ;;  %v2829_v63 = vmul.f32 1.442695, %v2746_v43  ;;  %v4325_v49 = vpop.eup %4324  ;;  %4326 = vpow2.f32 %v2827_v9 }
 0x32d   :  { %v2570_v45 = vpop.permute.xlu1 %2569  ;;  %3011 = vrot.lane.b32.xlu0 %v4319_v17, %s4679_s4 }
 0x32e   :  { %v2744_v39 = vsub.f32 %v5576_v18, %v2570_v45  ;;  %v2823_v19 = vmul.f32 1.442695, %v2743_v61  ;;  %4328 = vpow2.f32 %v2829_v63 }
 0x32f   :  { %3013 = vrot.lane.b32.xlu1 %v4321_v25, %s4679_s4  ;;  %v2124_v62 = vpop.permute.xlu0 %2123 }
 0x330   :  { %v6315_v28 = vmax.f32 %v5978_v38, %v2124_v62  ;;  %v2825_v46 = vmul.f32 1.442695, %v2744_v39  ;;  %4330 = vpow2.f32 %v2823_v19 }
 0x331   :  { %v2126_v60 = vpop.permute.xlu1 %2125  ;;  %3007 = vrot.lane.b32.xlu0 %v4323_v37, %s4679_s4 }
 0x332   :  { %7172 = vst [vmem:[#allocation71_spill] sm:$0xff] %v6315_v28  ;;  %v6319_v17 = vmax.f32 %v5986_v1, %v2126_v60  ;;  %4332 = vpow2.f32 %v2825_v46 }
 0x333   :  { %3009 = vrot.lane.b32.xlu1 %v4325_v49, %s4679_s4  ;;  %v2120_v29 = vpop.permute.xlu0 %2119 }
 0x334   :  { %7173 = vst [vmem:[#allocation72_spill] sm:$0xff] %v6319_v17  ;;  %v6324_v45 = vmax.f32 %v5983_v0, %v2120_v29 }
 0x335   :  { %v2122_v43 = vpop.permute.xlu1 %2121  ;;  %2635 = vrot.lane.b32.xlu0 %v6315_v28, %s4680_s21 }
 0x336   :  { %7174 = vst [vmem:[#allocation73_spill] sm:$0xff] %v6324_v45  ;;  %v6329_v49 = vmax.f32 %v5996_v20, %v2122_v43  ;;  %v4327_v61 = vpop.eup %4326 }
 0x337   :  { %2637 = vrot.lane.b32.xlu1 %v6319_v17, %s4680_s21  ;;  %v2580_v25 = vpop.permute.xlu0 %2579 }
 0x338   :  { %7175 = vst [vmem:[#allocation74_spill] sm:$0xff] %v6329_v49  ;;  %v2749_v60 = vsub.f32 %v5600_v57, %v2580_v25  ;;  %v4329_v39 = vpop.eup %4328 }
 0x339   :  { %v2582_v63 = vpop.permute.xlu1 %2581  ;;  %2631 = vrot.lane.b32.xlu0 %v6324_v45, %s4680_s21 }
 0x33a   :  { %v2750_v62 = vsub.f32 %v5606_v10, %v2582_v63  ;;  %v2835_v19 = vmul.f32 1.442695, %v2749_v60  ;;  %v4331_v43 = vpop.eup %4330 }
 0x33b   :  { %2633 = vrot.lane.b32.xlu1 %v6329_v49, %s4680_s21  ;;  %v2576_v9 = vpop.permute.xlu0 %2575 }
 0x33c   :  { %v2747_v29 = vsub.f32 %v5603_v8, %v2576_v9  ;;  %v2837_v45 = vmul.f32 1.442695, %v2750_v62  ;;  %v4333_v49 = vpop.eup %4332  ;;  %4334 = vpow2.f32 %v2835_v19 }
 0x33d   :  { %v2578_v37 = vpop.permute.xlu1 %2577  ;;  %3019 = vrot.lane.b32.xlu0 %v4327_v61, %s4679_s4 }
 0x33e   :  { %v2748_v25 = vsub.f32 %v5616_v26, %v2578_v37  ;;  %v2831_v63 = vmul.f32 1.442695, %v2747_v29  ;;  %4336 = vpow2.f32 %v2837_v45 }
 0x33f   :  { %3021 = vrot.lane.b32.xlu1 %v4329_v39, %s4679_s4  ;;  %v2132_v46 = vpop.permute.xlu0 %2131 }
 0x340   :  { %v6343_v28 = vmax.f32 %v6038_v14, %v2132_v46  ;;  %v2833_v9 = vmul.f32 1.442695, %v2748_v25  ;;  %4338 = vpow2.f32 %v2831_v63 }
 0x341   :  { %v2134_v17 = vpop.permute.xlu1 %2133  ;;  %3015 = vrot.lane.b32.xlu0 %v4331_v43, %s4679_s4  ;;  %v7181_v43 = vld [vmem:[#allocation6_spill] sm:$0xff] }
 0x342   :  { %7176 = vst [vmem:[#allocation75_spill] sm:$0xff] %v6343_v28  ;;  %v6347_v61 = vmax.f32 %v6046_v5, %v2134_v17  ;;  %4340 = vpow2.f32 %v2833_v9  ;;  %v7180_v17 = vld [vmem:[#allocation4_spill] sm:$0xff] }
 0x343   :  { %3017 = vrot.lane.b32.xlu1 %v4333_v49, %s4679_s4  ;;  %v2128_v60 = vpop.permute.xlu0 %2127 }
 0x344   :  { %7177 = vst [vmem:[#allocation76_spill] sm:$0xff] %v6347_v61  ;;  %v6352_v37 = vmax.f32 %v6043_v52, %v2128_v60  ;;  %v7196_v52 = vld [vmem:[#allocation14_spill] sm:$0xff] }
 0x345   :  { %v2130_v62 = vpop.permute.xlu1 %2129  ;;  %2643 = vrot.lane.b32.xlu0 %v6343_v28, %s4680_s21 }
 0x346   :  { %7178 = vst [vmem:[#allocation77_spill] sm:$0xff] %v6352_v37  ;;  %v6357_v49 = vmax.f32 %v6056_v31, %v2130_v62  ;;  %v4335_v46 = vpop.eup %4334 }
 0x347   :  { %2645 = vrot.lane.b32.xlu1 %v6347_v61, %s4680_s21  ;;  %v2588_v39 = vpop.permute.xlu0 %2587 }
 0x348   :  { %7179 = vst [vmem:[#allocation78_spill] sm:$0xff] %v6357_v49  ;;  %v2753_v19 = vsub.f32 %v7180_v17, %v2588_v39  ;;  %v4337_v60 = vpop.eup %4336 }
 0x349   :  { %v2590_v45 = vpop.permute.xlu1 %2589  ;;  %2639 = vrot.lane.b32.xlu0 %v6352_v37, %s4680_s21 }
 0x34a   :  { %v2754_v25 = vsub.f32 %v7181_v43, %v2590_v45  ;;  %v2843_v9 = vmul.f32 1.442695, %v2753_v19  ;;  %v4339_v37 = vpop.eup %4338  ;;  %v7182_v43 = vld [vmem:[#allocation44_spill] sm:$0xff] }
 0x34b   :  { %2641 = vrot.lane.b32.xlu1 %v6357_v49, %s4680_s21  ;;  %v2584_v29 = vpop.permute.xlu0 %2583 }
 0x34c   :  { %v2751_v62 = vsub.f32 %v5643_v4, %v2584_v29  ;;  %v2845_v28 = vmul.f32 1.442695, %v2754_v25  ;;  %v4341_v49 = vpop.eup %4340  ;;  %4342 = vpow2.f32 %v2843_v9  ;;  %v7195_v4 = vld [vmem:[#allocation11_spill] sm:$0xff] }
 0x34d   :  { %v2586_v63 = vpop.permute.xlu1 %2585  ;;  %3027 = vrot.lane.b32.xlu0 %v4335_v46, %s4679_s4  ;;  %v7184_v46 = vld [vmem:[#allocation46_spill] sm:$0xff] }
 0x34e   :  { %v2752_v39 = vsub.f32 %v5656_v11, %v2586_v63  ;;  %v2839_v45 = vmul.f32 1.442695, %v2751_v62  ;;  %4344 = vpow2.f32 %v2845_v28 }
 0x34f   :  { %3029 = vrot.lane.b32.xlu1 %v4337_v60, %s4679_s4  ;;  %v2140_v61 = vpop.permute.xlu0 %2139 }
 0x350   :  { %v6371_v31 = vmax.f32 %v7182_v43, %v2140_v61  ;;  %v2841_v29 = vmul.f32 1.442695, %v2752_v39  ;;  %4346 = vpow2.f32 %v2839_v45 }
 0x351   :  { %v2142_v17 = vpop.permute.xlu1 %2141  ;;  %3023 = vrot.lane.b32.xlu0 %v4339_v37, %s4679_s4  ;;  %v7186_v37 = vld [vmem:[#allocation45_spill] sm:$0xff] }
 0x352   :  { %7183 = vst [vmem:[#allocation79_spill] sm:$0xff] %v6371_v31  ;;  %v6375_v60 = vmax.f32 %v7184_v46, %v2142_v17  ;;  %4348 = vpow2.f32 %v2841_v29  ;;  %v7190_v17 = vld [vmem:[#allocation8_spill] sm:$0xff]  ;;  %v7193_v46 = vld [vmem:[#allocation9_spill] sm:$0xff] }
 0x353   :  { %3025 = vrot.lane.b32.xlu1 %v4341_v49, %s4679_s4  ;;  %v2136_v19 = vpop.permute.xlu0 %2135  ;;  %v7188_v49 = vld [vmem:[#allocation47_spill] sm:$0xff] }
 0x354   :  { %7185 = vst [vmem:[#allocation80_spill] sm:$0xff] %v6375_v60  ;;  %v6380_v63 = vmax.f32 %v7186_v37, %v2136_v19  ;;  %v7191_v19 = vld [vmem:[#allocation10_spill] sm:$0xff]  ;;  %v7192_v37 = vld [vmem:[#allocation12_spill] sm:$0xff] }
 0x355   :  { %v2138_v25 = vpop.permute.xlu1 %2137  ;;  %2651 = vrot.lane.b32.xlu0 %v6371_v31, %s4680_s21 }
 0x356   :  { %7187 = vst [vmem:[#allocation81_spill] sm:$0xff] %v6380_v63  ;;  %v6385_v9 = vmax.f32 %v7188_v49, %v2138_v25  ;;  %v4343_v45 = vpop.eup %4342 }
 0x357   :  { %2653 = vrot.lane.b32.xlu1 %v6375_v60, %s4680_s21  ;;  %v2596_v61 = vpop.permute.xlu0 %2595  ;;  %v2281_v60 = vsub.f32 %v5384_v30, %v7192_v37  ;;  %v2279_v30 = vsub.f32 %v5387_v53, %v7196_v52  ;;  %v7200_v52 = vld [vmem:[#allocation53_spill] sm:$0xff] }
 0x358   :  { %7189 = vst [vmem:[#allocation82_spill] sm:$0xff] %v6385_v9  ;;  %v2757_v62 = vsub.f32 %v7190_v17, %v2596_v61  ;;  %v4345_v25 = vpop.eup %4344 }
 0x359   :  { %v2598_v28 = vpop.permute.xlu1 %2597  ;;  %2647 = vrot.lane.b32.xlu0 %v6380_v63, %s4680_s21  ;;  %v7194_v63 = vld [vmem:[#allocation13_spill] sm:$0xff]  ;;  %v2343_v53 = vmul.f32 1.442695, %v2279_v30 }
 0x35a   :  { %v2758_v31 = vsub.f32 %v7191_v19, %v2598_v28  ;;  %v2851_v49 = vmul.f32 1.442695, %v2757_v62  ;;  %v2282_v61 = vsub.f32 %v5391_v58, %v7194_v63  ;;  %v4347_v17 = vpop.eup %4346  ;;  %v2347_v19 = vmul.f32 1.442695, %v2281_v60  ;;  %v7198_v63 = vld [vmem:[#allocation52_spill] sm:$0xff] }
 0x35b   :  { %2649 = vrot.lane.b32.xlu1 %v6385_v9, %s4680_s21  ;;  %v2592_v39 = vpop.permute.xlu0 %2591 }
 0x35c   :  { %v2755_v43 = vsub.f32 %v7193_v46, %v2592_v39  ;;  %v2853_v11 = vmul.f32 1.442695, %v2758_v31  ;;  %v4349_v62 = vpop.eup %4348  ;;  %4350 = vpow2.f32 %v2851_v49  ;;  %v7197_v46 = vld [vmem:[#allocation15_spill] sm:$0xff] }
 0x35d   :  { %v2594_v29 = vpop.permute.xlu1 %2593  ;;  %3035 = vrot.lane.b32.xlu0 %v4343_v45, %s4679_s4  ;;  %v2349_v45 = vmul.f32 1.442695, %v2282_v61  ;;  %v2280_v58 = vsub.f32 %v5401_v2, %v7197_v46 }
 0x35e   :  { %v2756_v28 = vsub.f32 %v7195_v4, %v2594_v29  ;;  %v2847_v39 = vmul.f32 1.442695, %v2755_v43  ;;  %4352 = vpow2.f32 %v2853_v11 }
 0x35f   :  { %3037 = vrot.lane.b32.xlu1 %v4345_v25, %s4679_s4  ;;  %v2148_v9 = vpop.permute.xlu0 %2147  ;;  %4354 = vpow2.f32 %v2347_v19  ;;  %v2345_v2 = vmul.f32 1.442695, %v2280_v58  ;;  %v7206_v58 = vld [vmem:[#allocation2_spill] sm:$0xff] }
 0x360   :  { %v6407_v25 = vmax.f32 %v7198_v63, %v2148_v9  ;;  %v2849_v60 = vmul.f32 1.442695, %v2756_v28  ;;  %4356 = vpow2.f32 %v2847_v39 }
 0x361   :  { %v2150_v37 = vpop.permute.xlu1 %2149  ;;  %3031 = vrot.lane.b32.xlu0 %v4347_v17, %s4679_s4  ;;  %4358 = vpow2.f32 %v2349_v45  ;;  %v7205_v45 = vld [vmem:[#allocation18_spill] sm:$0xff] }
 0x362   :  { %7199 = vst [vmem:[#allocation12_spill] sm:$0xff] %v6407_v25  ;;  %v6411_v29 = vmax.f32 %v7200_v52, %v2150_v37  ;;  %4360 = vpow2.f32 %v2849_v60 }
 0x363   :  { %3033 = vrot.lane.b32.xlu1 %v4349_v62, %s4679_s4  ;;  %v2144_v31 = vpop.permute.xlu0 %2143  ;;  %4362 = vpow2.f32 %v2343_v53  ;;  %v7204_v62 = vld [vmem:[#allocation16_spill] sm:$0xff] }
 0x364   :  { %7201 = vst [vmem:[#allocation13_spill] sm:$0xff] %v6411_v29  ;;  %v6416_v43 = vmax.f32 %v6165_v48, %v2144_v31  ;;  %4364 = vpow2.f32 %v2345_v2  ;;  %v2285_v31 = vsub.f32 %v7206_v58, %v7205_v45 }
 0x365   :  { %v2146_v17 = vpop.permute.xlu1 %2145  ;;  %2659 = vrot.lane.b32.xlu0 %v6407_v25, %s4680_s21  ;;  %v7210_v25 = vld [vmem:[#allocation20_spill] sm:$0xff] }
 0x366   :  { %7202 = vst [vmem:[#allocation11_spill] sm:$0xff] %v6416_v43  ;;  %v6422_v49 = vmax.f32 %v6179_v13, %v2146_v17  ;;  %v4351_v30 = vpop.eup %4350  ;;  %v2355_v58 = vmul.f32 1.442695, %v2285_v31 }
 0x367   :  { %2661 = vrot.lane.b32.xlu1 %v6411_v29, %s4680_s21  ;;  %v2604_v11 = vpop.permute.xlu0 %2603 }
 0x368   :  { %v2761_v46 = vsub.f32 %v5738_v47, %v2604_v11  ;;  %7203 = vst [vmem:[#allocation14_spill] sm:$0xff] %v6422_v49  ;;  %v4353_v53 = vpop.eup %4352  ;;  %v7207_v11 = vld [vmem:[#allocation17_spill] sm:$0xff] }
 0x369   :  { %v2606_v9 = vpop.permute.xlu1 %2605  ;;  %2655 = vrot.lane.b32.xlu0 %v6416_v43, %s4680_s21 }
 0x36a   :  { %v2859_v19 = vmul.f32 1.442695, %v2761_v46  ;;  %v2762_v61 = vsub.f32 %v5746_v40, %v2606_v9  ;;  %v4355_v46 = vpop.eup %4354  ;;  %v7208_v9 = vld [vmem:[#allocation19_spill] sm:$0xff] }
 0x36b   :  { %2657 = vrot.lane.b32.xlu1 %v6422_v49, %s4680_s21  ;;  %v2600_v28 = vpop.permute.xlu0 %2599  ;;  %v7209_v49 = vld [vmem:[#allocation3_spill] sm:$0xff] }
 0x36c   :  { %v2861_v37 = vmul.f32 1.442695, %v2762_v61  ;;  %v2759_v39 = vsub.f32 %v7204_v62, %v2600_v28  ;;  %4366 = vpow2.f32 %v2859_v19  ;;  %v2286_v29 = vsub.f32 %v7209_v49, %v7208_v9  ;;  %v4357_v28 = vpop.eup %4356  ;;  %v7211_v9 = vld [vmem:[#allocation21_spill] sm:$0xff] }
 0x36d   :  { %v2602_v60 = vpop.permute.xlu1 %2601  ;;  %3043 = vrot.lane.b32.xlu0 %v4351_v30, %s4679_s4  ;;  %v4359_v19 = vpop.eup %4358  ;;  %v2283_v30 = vsub.f32 %v5437_v21, %v7210_v25 }
 0x36e   :  { %4368 = vpow2.f32 %v2861_v37  ;;  %v2855_v17 = vmul.f32 1.442695, %v2759_v39  ;;  %v2760_v2 = vsub.f32 %v7207_v11, %v2602_v60  ;;  %v4361_v39 = vpop.eup %4360  ;;  %v2357_v49 = vmul.f32 1.442695, %v2286_v29 }
 0x36f   :  { %3045 = vrot.lane.b32.xlu1 %v4353_v53, %s4679_s4  ;;  %v2988_v61 = vpop.permute.xlu0 %2987  ;;  %v4363_v13 = vpop.eup %4362  ;;  %v2284_v53 = vsub.f32 %v5451_v55, %v7211_v9  ;;  %v2351_v21 = vmul.f32 1.442695, %v2283_v30 }
 0x370   :  { %4370 = vpow2.f32 %v2855_v17  ;;  %v2857_v43 = vmul.f32 1.442695, %v2760_v2  ;;  %v3177_v45 = vadd.f32 %v4355_v46, %v2988_v61  ;;  %v4365_v2 = vpop.eup %4364 }
 0x371   :  { %v2990_v37 = vpop.permute.xlu1 %2989  ;;  %3039 = vrot.lane.b32.xlu0 %v4357_v28, %s4679_s4 }
 0x372   :  { %4372 = vpow2.f32 %v2857_v43  ;;  %v3178_v60 = vadd.f32 %v4359_v19, %v2990_v37  ;;  %v2353_v43 = vmul.f32 1.442695, %v2284_v53 }
 0x373   :  { %4374 = vrcp.f32 %v3177_v45  ;;  %3041 = vrot.lane.b32.xlu1 %v4361_v39, %s4679_s4  ;;  %v2984_v17 = vpop.permute.xlu0 %2983 }
 0x374   :  { %4376 = vrcp.f32 %v3178_v60  ;;  %v3175_v31 = vadd.f32 %v4363_v13, %v2984_v17 }
 0x375   :  { %4378 = vpow2.f32 %v2355_v58  ;;  %v2986_v25 = vpop.permute.xlu1 %2985 }
 0x376   :  { %4380 = vrcp.f32 %v3175_v31  ;;  %v3176_v61 = vadd.f32 %v4365_v2, %v2986_v25  ;;  %v4367_v28 = vpop.eup %4366  ;;  %v7212_v31 = vld [vmem:[#allocation22_spill] sm:$0xff] }
 0x377   :  { %4382 = vpow2.f32 %v2357_v49  ;;  %v2612_v37 = vpop.permute.xlu0 %2611  ;;  %3051 = vrot.lane.b32.xlu0 %v4367_v28, %s4679_s4 }
 0x378   :  { %v4369_v29 = vpop.eup %4368  ;;  %4384 = vrcp.f32 %v3176_v61  ;;  %v2765_v55 = vsub.f32 %v5798_v16, %v2612_v37 }
 0x379   :  { %4386 = vpow2.f32 %v2351_v21  ;;  %3053 = vrot.lane.b32.xlu1 %v4369_v29, %s4679_s4  ;;  %v2614_v45 = vpop.permute.xlu1 %2613  ;;  %v2289_v21 = vsub.f32 %v5480_v59, %v7212_v31 }
 0x37a   :  { %v4371_v39 = vpop.eup %4370  ;;  %v2867_v58 = vmul.f32 1.442695, %v2765_v55  ;;  %v2766_v30 = vsub.f32 %v5806_v56, %v2614_v45  ;;  %4388 = vpow2.f32 %v2353_v43  ;;  %v7213_v55 = vld [vmem:[#allocation23_spill] sm:$0xff] }
 0x37b   :  { %v2608_v60 = vpop.permute.xlu0 %2607  ;;  %3047 = vrot.lane.b32.xlu0 %v4371_v39, %s4679_s4  ;;  %v2290_v45 = vsub.f32 %v5486_v23, %v7213_v55 }
 0x37c   :  { %v4373_v9 = vpop.eup %4372  ;;  %4390 = vpow2.f32 %v2867_v58  ;;  %v2869_v49 = vmul.f32 1.442695, %v2766_v30  ;;  %v2763_v53 = vsub.f32 %v5803_v42, %v2608_v60 }
 0x37d   :  { %v4375_v17 = vpop.eup %4374  ;;  %3049 = vrot.lane.b32.xlu1 %v4373_v9, %s4679_s4  ;;  %v2610_v25 = vpop.permute.xlu1 %2609 }
 0x37e   :  { %v4377_v61 = vpop.eup %4376  ;;  %4392 = vpow2.f32 %v2869_v49  ;;  %v2863_v28 = vmul.f32 1.442695, %v2763_v53  ;;  %v2764_v43 = vsub.f32 %v5816_v15, %v2610_v25  ;;  %v3305_v37 = vmul.f32 %v4375_v17, %v4355_v46  ;;  %v7214_v53 = vld [vmem:[#allocation24_spill] sm:$0xff] }
 0x37f   :  { %v6453_v29 = vpop.eup %4378  ;;  %v2996_v39 = vpop.permute.xlu0 %2995  ;;  %v3306_v58 = vmul.f32 %v4377_v61, %v4359_v19  ;;  %v2363_v49 = vmul.f32 1.442695, %v2289_v21  ;;  %v2287_v31 = vsub.f32 %v5483_v44, %v7214_v53  ;;  %v2365_v61 = vmul.f32 1.442695, %v2290_v45 }
 0x380   :  { %v4381_v30 = vpop.eup %4380  ;;  %4394 = vpow2.f32 %v2863_v28  ;;  %v2865_v60 = vmul.f32 1.442695, %v2764_v43  ;;  %3500 = vrot.lane.b32.xlu0 %v3305_v37, %s4680_s21  ;;  %v3181_v59 = vadd.f32 %v6453_v29, %v2996_v39  ;;  %v7215_v28 = vld [vmem:[#allocation25_spill] sm:$0xff] }
 0x381   :  { %v4383_v9 = vpop.eup %4382  ;;  %3502 = vrot.lane.b32.xlu1 %v3306_v58, %s4680_s21  ;;  %v2998_v46 = vpop.permute.xlu1 %2997  ;;  %v3303_v17 = vmul.f32 %v4381_v30, %v4363_v13  ;;  %v2288_v43 = vsub.f32 %v5496_v32, %v7215_v28  ;;  %v2359_v39 = vmul.f32 1.442695, %v2287_v31  ;;  %v7216_v28 = vld [vmem:[#allocation26_spill] sm:$0xff] }
 0x382   :  { %v4385_v25 = vpop.eup %4384  ;;  %4396 = vpow2.f32 %v2865_v60  ;;  %v3182_v23 = vadd.f32 %v4383_v9, %v2998_v46 }
 0x383   :  { %v4387_v19 = vpop.eup %4386  ;;  %4398 = vrcp.f32 %v3181_v59  ;;  %v2992_v37 = vpop.permute.xlu0 %2991  ;;  %v3304_v55 = vmul.f32 %v4385_v25, %v4365_v2  ;;  %v2361_v45 = vmul.f32 1.442695, %v2288_v43  ;;  %v2293_v43 = vsub.f32 %v5520_v41, %v7216_v28 }
 0x384   :  { %4400 = vrcp.f32 %v3182_v23  ;;  %3496 = vrot.lane.b32.xlu0 %v3303_v17, %s4680_s21  ;;  %v3179_v21 = vadd.f32 %v4387_v19, %v2992_v37  ;;  %v4389_v44 = vpop.eup %4388 }
 0x385   :  { %4402 = vpow2.f32 %v2363_v49  ;;  %v2994_v58 = vpop.permute.xlu1 %2993  ;;  %3498 = vrot.lane.b32.xlu1 %v3304_v55, %s4680_s21 }
 0x386   :  { %v4391_v13 = vpop.eup %4390  ;;  %4404 = vrcp.f32 %v3179_v21  ;;  %v3180_v30 = vadd.f32 %v4389_v44, %v2994_v58 }
 0x387   :  { %4406 = vpow2.f32 %v2365_v61  ;;  %v2620_v60 = vpop.permute.xlu0 %2619 }
 0x388   :  { %v4393_v32 = vpop.eup %4392  ;;  %4408 = vrcp.f32 %v3180_v30  ;;  %3059 = vrot.lane.b32.xlu0 %v4391_v13, %s4679_s4  ;;  %v2769_v2 = vsub.f32 %v5858_v35, %v2620_v60  ;;  %v7217_v30 = vld [vmem:[#allocation27_spill] sm:$0xff] }
 0x389   :  { %4410 = vpow2.f32 %v2359_v39  ;;  %v2622_v59 = vpop.permute.xlu1 %2621  ;;  %3061 = vrot.lane.b32.xlu1 %v4393_v32, %s4679_s4 }
 0x38a   :  { %v4395_v49 = vpop.eup %4394  ;;  %v2875_v53 = vmul.f32 1.442695, %v2769_v2  ;;  %v2770_v31 = vsub.f32 %v5866_v7, %v2622_v59  ;;  %4412 = vpow2.f32 %v2361_v45  ;;  %v2294_v45 = vsub.f32 %v5526_v34, %v7217_v30 }
 0x38b   :  { %v2616_v46 = vpop.permute.xlu0 %2615 }
 0x38c   :  { %v4397_v17 = vpop.eup %4396  ;;  %4414 = vpow2.f32 %v2875_v53  ;;  %v2877_v25 = vmul.f32 1.442695, %v2770_v31  ;;  %3055 = vrot.lane.b32.xlu0 %v4395_v49, %s4679_s4  ;;  %v2767_v23 = vsub.f32 %v5863_v51, %v2616_v46  ;;  %v2371_v53 = vmul.f32 1.442695, %v2293_v43  ;;  %v7218_v31 = vld [vmem:[#allocation28_spill] sm:$0xff] }
 0x38d   :  { %v4399_v61 = vpop.eup %4398  ;;  %v2618_v37 = vpop.permute.xlu1 %2617  ;;  %3057 = vrot.lane.b32.xlu1 %v4397_v17, %s4679_s4  ;;  %v2291_v46 = vsub.f32 %v5523_v36, %v7218_v31 }
 0x38e   :  { %v4401_v55 = vpop.eup %4400  ;;  %4416 = vpow2.f32 %v2877_v25  ;;  %v2871_v21 = vmul.f32 1.442695, %v2767_v23  ;;  %v2768_v39 = vsub.f32 %v5876_v6, %v2618_v37  ;;  %v3309_v58 = vmul.f32 %v4399_v61, %v6453_v29  ;;  %v7219_v61 = vld [vmem:[#allocation29_spill] sm:$0xff] }
 0x38f   :  { %v6477_v13 = vpop.eup %4402  ;;  %v3004_v60 = vpop.permute.xlu0 %3003  ;;  %v3310_v32 = vmul.f32 %v4401_v55, %v4383_v9  ;;  %v2373_v23 = vmul.f32 1.442695, %v2294_v45  ;;  %v2292_v28 = vsub.f32 %v5536_v54, %v7219_v61 }
 0x390   :  { %v4405_v2 = vpop.eup %4404  ;;  %4418 = vpow2.f32 %v2871_v21  ;;  %v2873_v41 = vmul.f32 1.442695, %v2768_v39  ;;  %3508 = vrot.lane.b32.xlu0 %v3309_v58, %s4680_s21  ;;  %v3185_v59 = vadd.f32 %v6477_v13, %v3004_v60  ;;  %v2367_v21 = vmul.f32 1.442695, %v2291_v46 }
 0x391   :  { %v4407_v49 = vpop.eup %4406  ;;  %v3006_v29 = vpop.permute.xlu1 %3005  ;;  %3510 = vrot.lane.b32.xlu1 %v3310_v32, %s4680_s21  ;;  %v3307_v17 = vmul.f32 %v4405_v2, %v4387_v19  ;;  %v2369_v30 = vmul.f32 1.442695, %v2292_v28 }
 0x392   :  { %v4409_v25 = vpop.eup %4408  ;;  %4420 = vpow2.f32 %v2873_v41  ;;  %v3186_v34 = vadd.f32 %v4407_v49, %v3006_v29 }
 0x393   :  { %v4411_v9 = vpop.eup %4410  ;;  %4422 = vrcp.f32 %v3185_v59  ;;  %v3000_v37 = vpop.permute.xlu0 %2999  ;;  %v3308_v55 = vmul.f32 %v4409_v25, %v4389_v44 }
 0x394   :  { %4424 = vrcp.f32 %v3186_v34  ;;  %3504 = vrot.lane.b32.xlu0 %v3307_v17, %s4680_s21  ;;  %v3183_v43 = vadd.f32 %v4411_v9, %v3000_v37  ;;  %v4413_v36 = vpop.eup %4412  ;;  %v7220_v17 = vld [vmem:[#allocation30_spill] sm:$0xff] }
 0x395   :  { %4426 = vpow2.f32 %v2371_v53  ;;  %v3002_v39 = vpop.permute.xlu1 %3001  ;;  %3506 = vrot.lane.b32.xlu1 %v3308_v55, %s4680_s21  ;;  %v2297_v25 = vsub.f32 %v5560_v3, %v7220_v17 }
 0x396   :  { %v4415_v19 = vpop.eup %4414  ;;  %4428 = vrcp.f32 %v3183_v43  ;;  %v3184_v58 = vadd.f32 %v4413_v36, %v3002_v39  ;;  %v7221_v43 = vld [vmem:[#allocation31_spill] sm:$0xff] }
 0x397   :  { %4430 = vpow2.f32 %v2373_v23  ;;  %v2628_v45 = vpop.permute.xlu0 %2627 }
 0x398   :  { %v4417_v54 = vpop.eup %4416  ;;  %4432 = vrcp.f32 %v3184_v58  ;;  %3067 = vrot.lane.b32.xlu0 %v4415_v19, %s4679_s4  ;;  %v2773_v44 = vsub.f32 %v5918_v33, %v2628_v45 }
 0x399   :  { %4434 = vpow2.f32 %v2367_v21  ;;  %v2630_v60 = vpop.permute.xlu1 %2629  ;;  %3069 = vrot.lane.b32.xlu1 %v4417_v54, %s4679_s4  ;;  %v2298_v21 = vsub.f32 %v5566_v50, %v7221_v43  ;;  %v2379_v54 = vmul.f32 1.442695, %v2297_v25 }
 0x39a   :  { %v4419_v32 = vpop.eup %4418  ;;  %v2883_v2 = vmul.f32 1.442695, %v2773_v44  ;;  %v2774_v41 = vsub.f32 %v5926_v12, %v2630_v60  ;;  %4436 = vpow2.f32 %v2369_v30  ;;  %v7222_v44 = vld [vmem:[#allocation32_spill] sm:$0xff] }
 0x39b   :  { %v2624_v59 = vpop.permute.xlu0 %2623  ;;  %v2295_v60 = vsub.f32 %v5563_v24, %v7222_v44 }
 0x39c   :  { %v4421_v53 = vpop.eup %4420  ;;  %4438 = vpow2.f32 %v2883_v2  ;;  %v2885_v31 = vmul.f32 1.442695, %v2774_v41  ;;  %3063 = vrot.lane.b32.xlu0 %v4419_v32, %s4679_s4  ;;  %v2771_v46 = vsub.f32 %v5923_v27, %v2624_v59  ;;  %v2381_v41 = vmul.f32 1.442695, %v2298_v21  ;;  %v7223_v59 = vld [vmem:[#allocation33_spill] sm:$0xff] }
 0x39d   :  { %v4423_v29 = vpop.eup %4422  ;;  %v2626_v34 = vpop.permute.xlu1 %2625  ;;  %3065 = vrot.lane.b32.xlu1 %v4421_v53, %s4679_s4  ;;  %v2296_v53 = vsub.f32 %v5576_v18, %v7223_v59  ;;  %v2375_v17 = vmul.f32 1.442695, %v2295_v60  ;;  %v7225_v59 = vld [vmem:[#allocation35_spill] sm:$0xff] }
 0x39e   :  { %v4425_v23 = vpop.eup %4424  ;;  %4440 = vpow2.f32 %v2885_v31  ;;  %v2879_v61 = vmul.f32 1.442695, %v2771_v46  ;;  %v2772_v28 = vsub.f32 %v5936_v22, %v2626_v34  ;;  %v3313_v37 = vmul.f32 %v4423_v29, %v6477_v13 }
 0x39f   :  { %v6501_v55 = vpop.eup %4426  ;;  %v3012_v39 = vpop.permute.xlu0 %3011  ;;  %v3314_v19 = vmul.f32 %v4425_v23, %v4407_v49  ;;  %v2377_v23 = vmul.f32 1.442695, %v2296_v53  ;;  %v2302_v53 = vsub.f32 %v5606_v10, %v7225_v59 }
 0x3a0   :  { %v4429_v58 = vpop.eup %4428  ;;  %4442 = vpow2.f32 %v2879_v61  ;;  %v2881_v3 = vmul.f32 1.442695, %v2772_v28  ;;  %3516 = vrot.lane.b32.xlu0 %v3313_v37, %s4680_s21  ;;  %v3189_v30 = vadd.f32 %v6501_v55, %v3012_v39 }
 0x3a1   :  { %v4431_v45 = vpop.eup %4430  ;;  %v3014_v13 = vpop.permute.xlu1 %3013  ;;  %3518 = vrot.lane.b32.xlu1 %v3314_v19, %s4680_s21  ;;  %v3311_v32 = vmul.f32 %v4429_v58, %v4411_v9 }
 0x3a2   :  { %v4433_v2 = vpop.eup %4432  ;;  %4444 = vpow2.f32 %v2881_v3  ;;  %v3190_v50 = vadd.f32 %v4431_v45, %v3014_v13 }
 0x3a3   :  { %v4435_v49 = vpop.eup %4434  ;;  %4446 = vrcp.f32 %v3189_v30  ;;  %v3008_v31 = vpop.permute.xlu0 %3007  ;;  %v3312_v46 = vmul.f32 %v4433_v2, %v4413_v36 }
 0x3a4   :  { %4448 = vrcp.f32 %v3190_v50  ;;  %3512 = vrot.lane.b32.xlu0 %v3311_v32, %s4680_s21  ;;  %v3187_v29 = vadd.f32 %v4435_v49, %v3008_v31  ;;  %v4437_v24 = vpop.eup %4436 }
 0x3a5   :  { %4450 = vpow2.f32 %v2379_v54  ;;  %v3010_v25 = vpop.permute.xlu1 %3009  ;;  %3514 = vrot.lane.b32.xlu1 %v3312_v46, %s4680_s21  ;;  %v7224_v54 = vld [vmem:[#allocation34_spill] sm:$0xff] }
 0x3a6   :  { %v4439_v9 = vpop.eup %4438  ;;  %4452 = vrcp.f32 %v3187_v29  ;;  %v3188_v34 = vadd.f32 %v4437_v24, %v3010_v25  ;;  %v2301_v44 = vsub.f32 %v5600_v57, %v7224_v54 }
 0x3a7   :  { %4454 = vpow2.f32 %v2381_v41  ;;  %v2636_v61 = vpop.permute.xlu0 %2635 }
 0x3a8   :  { %v4441_v18 = vpop.eup %4440  ;;  %4456 = vrcp.f32 %v3188_v34  ;;  %3075 = vrot.lane.b32.xlu0 %v4439_v9, %s4679_s4  ;;  %v2777_v36 = vsub.f32 %v5978_v38, %v2636_v61  ;;  %v2387_v9 = vmul.f32 1.442695, %v2301_v44  ;;  %v7226_v34 = vld [vmem:[#allocation36_spill] sm:$0xff] }
 0x3a9   :  { %4458 = vpow2.f32 %v2375_v17  ;;  %v2638_v28 = vpop.permute.xlu1 %2637  ;;  %3077 = vrot.lane.b32.xlu1 %v4441_v18, %s4679_s4 }
 0x3aa   :  { %v4443_v37 = vpop.eup %4442  ;;  %v2891_v43 = vmul.f32 1.442695, %v2777_v36  ;;  %v2778_v21 = vsub.f32 %v5986_v1, %v2638_v28  ;;  %4460 = vpow2.f32 %v2377_v23  ;;  %v2299_v23 = vsub.f32 %v5603_v8, %v7226_v34  ;;  %v7227_v28 = vld [vmem:[#allocation37_spill] sm:$0xff] }
 0x3ab   :  { %v2632_v39 = vpop.permute.xlu0 %2631 }
 0x3ac   :  { %v4445_v19 = vpop.eup %4444  ;;  %4462 = vpow2.f32 %v2891_v43  ;;  %v2893_v58 = vmul.f32 1.442695, %v2778_v21  ;;  %3071 = vrot.lane.b32.xlu0 %v4443_v37, %s4679_s4  ;;  %v2775_v3 = vsub.f32 %v5983_v0, %v2632_v39  ;;  %v2300_v37 = vsub.f32 %v5616_v26, %v7227_v28 }
 0x3ad   :  { %v4447_v30 = vpop.eup %4446  ;;  %v2634_v60 = vpop.permute.xlu1 %2633  ;;  %3073 = vrot.lane.b32.xlu1 %v4445_v19, %s4679_s4  ;;  %v2383_v19 = vmul.f32 1.442695, %v2299_v23 }
 0x3ae   :  { %v4449_v13 = vpop.eup %4448  ;;  %4464 = vpow2.f32 %v2893_v58  ;;  %v2887_v32 = vmul.f32 1.442695, %v2775_v3  ;;  %v2776_v2 = vsub.f32 %v5996_v20, %v2634_v60  ;;  %v3317_v50 = vmul.f32 %v4447_v30, %v6501_v55 }
 0x3af   :  { %v4451_v41 = vpop.eup %4450  ;;  %v3020_v31 = vpop.permute.xlu0 %3019  ;;  %v3318_v46 = vmul.f32 %v4449_v13, %v4431_v45  ;;  %v2389_v45 = vmul.f32 1.442695, %v2302_v53  ;;  %v2385_v30 = vmul.f32 1.442695, %v2300_v37  ;;  %v7228_v53 = vld [vmem:[#allocation38_spill] sm:$0xff] }
 0x3b0   :  { %v4453_v29 = vpop.eup %4452  ;;  %4466 = vpow2.f32 %v2887_v32  ;;  %v2889_v17 = vmul.f32 1.442695, %v2776_v2  ;;  %3524 = vrot.lane.b32.xlu0 %v3317_v50, %s4680_s21  ;;  %v3193_v57 = vadd.f32 %v4451_v41, %v3020_v31 }
 0x3b1   :  { %v4455_v25 = vpop.eup %4454  ;;  %v3022_v61 = vpop.permute.xlu1 %3021  ;;  %3526 = vrot.lane.b32.xlu1 %v3318_v46, %s4680_s21  ;;  %v3315_v55 = vmul.f32 %v4453_v29, %v4435_v49 }
 0x3b2   :  { %v4457_v18 = vpop.eup %4456  ;;  %4468 = vpow2.f32 %v2889_v17  ;;  %v3194_v10 = vadd.f32 %v4455_v25, %v3022_v61 }
 0x3b3   :  { %v4459_v36 = vpop.eup %4458  ;;  %4470 = vrcp.f32 %v3193_v57  ;;  %v3016_v43 = vpop.permute.xlu0 %3015  ;;  %v3316_v21 = vmul.f32 %v4457_v18, %v4437_v24 }
 0x3b4   :  { %4472 = vrcp.f32 %v3194_v10  ;;  %3520 = vrot.lane.b32.xlu0 %v3315_v55, %s4680_s21  ;;  %v3191_v39 = vadd.f32 %v4459_v36, %v3016_v43  ;;  %v4461_v8 = vpop.eup %4460  ;;  %v7230_v43 = vld [vmem:[#allocation42_spill] sm:$0xff] }
 0x3b5   :  { %4474 = vpow2.f32 %v2387_v9  ;;  %v3018_v58 = vpop.permute.xlu1 %3017  ;;  %3522 = vrot.lane.b32.xlu1 %v3316_v21, %s4680_s21  ;;  %v7229_v9 = vld [vmem:[#allocation39_spill] sm:$0xff]  ;;  %v7231_v21 = vld [vmem:[#allocation5_spill] sm:$0xff] }
 0x3b6   :  { %v4463_v49 = vpop.eup %4462  ;;  %4476 = vrcp.f32 %v3191_v39  ;;  %v3192_v3 = vadd.f32 %v4461_v8, %v3018_v58  ;;  %v2303_v39 = vsub.f32 %v7231_v21, %v7230_v43 }
 0x3b7   :  { %4478 = vpow2.f32 %v2389_v45  ;;  %v2644_v54 = vpop.permute.xlu0 %2643 }
 0x3b8   :  { %v4465_v26 = vpop.eup %4464  ;;  %4480 = vrcp.f32 %v3192_v3  ;;  %3083 = vrot.lane.b32.xlu0 %v4463_v49, %s4679_s4  ;;  %v2781_v24 = vsub.f32 %v6038_v14, %v2644_v54 }
 0x3b9   :  { %4482 = vpow2.f32 %v2383_v19  ;;  %v2646_v44 = vpop.permute.xlu1 %2645  ;;  %3085 = vrot.lane.b32.xlu1 %v4465_v26, %s4679_s4 }
 0x3ba   :  { %v4467_v60 = vpop.eup %4466  ;;  %v2899_v13 = vmul.f32 1.442695, %v2781_v24  ;;  %v2782_v32 = vsub.f32 %v6046_v5, %v2646_v44  ;;  %4484 = vpow2.f32 %v2385_v30  ;;  %v7232_v30 = vld [vmem:[#allocation43_spill] sm:$0xff] }
 0x3bb   :  { %v2640_v2 = vpop.permute.xlu0 %2639 }
 0x3bc   :  { %v4469_v50 = vpop.eup %4468  ;;  %4486 = vpow2.f32 %v2899_v13  ;;  %v2901_v59 = vmul.f32 1.442695, %v2782_v32  ;;  %3079 = vrot.lane.b32.xlu0 %v4467_v60, %s4679_s4  ;;  %v2779_v31 = vsub.f32 %v7228_v53, %v2640_v2  ;;  %v2391_v13 = vmul.f32 1.442695, %v2303_v39 }
 0x3bd   :  { %v4471_v46 = vpop.eup %4470  ;;  %v2642_v29 = vpop.permute.xlu1 %2641  ;;  %3081 = vrot.lane.b32.xlu1 %v4469_v50, %s4679_s4  ;;  %v7234_v50 = vld [vmem:[#allocation40_spill] sm:$0xff] }
 0x3be   :  { %v4473_v17 = vpop.eup %4472  ;;  %4488 = vpow2.f32 %v2901_v59  ;;  %v2895_v57 = vmul.f32 1.442695, %v2779_v31  ;;  %v2780_v34 = vsub.f32 %v7229_v9, %v2642_v29  ;;  %v3321_v23 = vmul.f32 %v4471_v46, %v4451_v41  ;;  %v7235_v59 = vld [vmem:[#allocation4_spill] sm:$0xff] }
 0x3bf   :  { %v4475_v61 = vpop.eup %4474  ;;  %v3028_v55 = vpop.permute.xlu0 %3027  ;;  %v3322_v18 = vmul.f32 %v4473_v17, %v4455_v25  ;;  %v7233_v25 = vld [vmem:[#allocation7_spill] sm:$0xff]  ;;  %v2305_v31 = vsub.f32 %v7235_v59, %v7234_v50  ;;  %v7244_v59 = vld [vmem:[#allocation49_spill] sm:$0xff] }
 0x3c0   :  { %v4477_v10 = vpop.eup %4476  ;;  %4490 = vpow2.f32 %v2895_v57  ;;  %v2897_v45 = vmul.f32 1.442695, %v2780_v34  ;;  %3532 = vrot.lane.b32.xlu0 %v3321_v23, %s4680_s21  ;;  %v3197_v28 = vadd.f32 %v4475_v61, %v3028_v55  ;;  %v2304_v54 = vsub.f32 %v7233_v25, %v7232_v30  ;;  %v7237_v34 = vld [vmem:[#allocation41_spill] sm:$0xff]  ;;  %v7238_v23 = vld [vmem:[#allocation6_spill] sm:$0xff] }
 0x3c1   :  { %v4479_v37 = vpop.eup %4478  ;;  %v3030_v19 = vpop.permute.xlu1 %3029  ;;  %3534 = vrot.lane.b32.xlu1 %v3322_v18, %s4680_s21  ;;  %v3319_v58 = vmul.f32 %v4477_v10, %v4459_v36  ;;  %v2306_v55 = vsub.f32 %v7238_v23, %v7237_v34  ;;  %v2395_v21 = vmul.f32 1.442695, %v2305_v31  ;;  %v7245_v31 = vld [vmem:[#allocation10_spill] sm:$0xff] }
 0x3c2   :  { %v4481_v49 = vpop.eup %4480  ;;  %4492 = vpow2.f32 %v2897_v45  ;;  %v3198_v41 = vadd.f32 %v4479_v37, %v3030_v19  ;;  %v2393_v46 = vmul.f32 1.442695, %v2304_v54  ;;  %v7241_v54 = vld [vmem:[#allocation48_spill] sm:$0xff] }
 0x3c3   :  { %v4483_v3 = vpop.eup %4482  ;;  %4494 = vrcp.f32 %v3197_v28  ;;  %v3024_v26 = vpop.permute.xlu0 %3023  ;;  %v3320_v24 = vmul.f32 %v4481_v49, %v4461_v8  ;;  %v7236_v8 = vld [vmem:[#allocation44_spill] sm:$0xff]  ;;  %v7239_v28 = vld [vmem:[#allocation46_spill] sm:$0xff]  ;;  %v7240_v49 = vld [vmem:[#allocation45_spill] sm:$0xff]  ;;  %v2397_v25 = vmul.f32 1.442695, %v2306_v55 }
 0x3c4   :  { %4496 = vrcp.f32 %v3198_v41  ;;  %3528 = vrot.lane.b32.xlu0 %v3319_v58, %s4680_s21  ;;  %v3195_v44 = vadd.f32 %v4483_v3, %v3024_v26  ;;  %v4485_v60 = vpop.eup %4484  ;;  %v7242_v26 = vld [vmem:[#allocation8_spill] sm:$0xff]  ;;  %v7246_v55 = vld [vmem:[#allocation50_spill] sm:$0xff] }
 0x3c5   :  { %v3026_v32 = vpop.permute.xlu1 %3025  ;;  %3530 = vrot.lane.b32.xlu1 %v3320_v24, %s4680_s21  ;;  %v2309_v24 = vsub.f32 %v7242_v26, %v7241_v54 }
 0x3c6   :  { %v4487_v36 = vpop.eup %4486  ;;  %4498 = vrcp.f32 %v3195_v44  ;;  %v3196_v2 = vadd.f32 %v4485_v60, %v3026_v32 }
 0x3c7   :  { %v2652_v29 = vpop.permute.xlu0 %2651  ;;  %v2403_v23 = vmul.f32 1.442695, %v2309_v24  ;;  %v7250_v24 = vld [vmem:[#allocation56_spill] sm:$0xff] }
 0x3c8   :  { %v4489_v17 = vpop.eup %4488  ;;  %4500 = vrcp.f32 %v3196_v2  ;;  %3091 = vrot.lane.b32.xlu0 %v4487_v36, %s4679_s4  ;;  %v2785_v57 = vsub.f32 %v7236_v8, %v2652_v29  ;;  %v7243_v36 = vld [vmem:[#allocation47_spill] sm:$0xff] }
 0x3c9   :  { %4502 = vpow2.f32 %v2391_v13  ;;  %v2654_v18 = vpop.permute.xlu1 %2653  ;;  %3093 = vrot.lane.b32.xlu1 %v4489_v17, %s4679_s4 }
 0x3ca   :  { %v4491_v10 = vpop.eup %4490  ;;  %v2907_v45 = vmul.f32 1.442695, %v2785_v57  ;;  %v2786_v43 = vsub.f32 %v7239_v28, %v2654_v18  ;;  %4504 = vpow2.f32 %v2393_v46  ;;  %v2310_v46 = vsub.f32 %v7245_v31, %v7244_v59  ;;  %v7247_v18 = vld [vmem:[#allocation9_spill] sm:$0xff] }
 0x3cb   :  { %v2648_v39 = vpop.permute.xlu0 %2647 }
 0x3cc   :  { %v4493_v19 = vpop.eup %4492  ;;  %4506 = vpow2.f32 %v2907_v45  ;;  %v2909_v58 = vmul.f32 1.442695, %v2786_v43  ;;  %3087 = vrot.lane.b32.xlu0 %v4491_v10, %s4679_s4  ;;  %v2783_v41 = vsub.f32 %v7240_v49, %v2648_v39  ;;  %v2307_v10 = vsub.f32 %v7247_v18, %v7246_v55  ;;  %v7251_v55 = vld [vmem:[#allocation57_spill] sm:$0xff] }
 0x3cd   :  { %v4495_v30 = vpop.eup %4494  ;;  %v2650_v44 = vpop.permute.xlu1 %2649  ;;  %3089 = vrot.lane.b32.xlu1 %v4493_v19, %s4679_s4  ;;  %v2405_v19 = vmul.f32 1.442695, %v2310_v46  ;;  %v2311_v18 = vsub.f32 %v7204_v62, %v7251_v55 }
 0x3ce   :  { %v4497_v13 = vpop.eup %4496  ;;  %4508 = vpow2.f32 %v2909_v58  ;;  %v2903_v32 = vmul.f32 1.442695, %v2783_v41  ;;  %v2784_v2 = vsub.f32 %v7243_v36, %v2650_v44  ;;  %v3325_v50 = vmul.f32 %v4495_v30, %v4475_v61  ;;  %v7249_v58 = vld [vmem:[#allocation55_spill] sm:$0xff] }
 0x3cf   :  { %4510 = vpow2.f32 %v2395_v21  ;;  %v3036_v29 = vpop.permute.xlu0 %3035  ;;  %v3326_v17 = vmul.f32 %v4497_v13, %v4479_v37  ;;  %v7248_v21 = vld [vmem:[#allocation51_spill] sm:$0xff]  ;;  %v2313_v41 = vsub.f32 %v5738_v47, %v7249_v58 }
 0x3d0   :  { %v4499_v57 = vpop.eup %4498  ;;  %4512 = vpow2.f32 %v2903_v32  ;;  %v2905_v34 = vmul.f32 1.442695, %v2784_v2  ;;  %3540 = vrot.lane.b32.xlu0 %v3325_v50, %s4680_s21  ;;  %v2308_v39 = vsub.f32 %v7195_v4, %v7248_v21  ;;  %v2314_v4 = vsub.f32 %v5746_v40, %v7250_v24 }
 0x3d1   :  { %4514 = vpow2.f32 %v2397_v25  ;;  %v3038_v45 = vpop.permute.xlu1 %3037  ;;  %3542 = vrot.lane.b32.xlu1 %v3326_v17, %s4680_s21  ;;  %v3323_v61 = vmul.f32 %v4499_v57, %v4483_v3  ;;  %v2399_v3 = vmul.f32 1.442695, %v2307_v10 }
 0x3d2   :  { %v4501_v43 = vpop.eup %4500  ;;  %4516 = vpow2.f32 %v2905_v34  ;;  %v2401_v32 = vmul.f32 1.442695, %v2308_v39  ;;  %v2413_v40 = vmul.f32 1.442695, %v2314_v4 }
 0x3d3   :  { %v6573_v37 = vpop.eup %4502  ;;  %v3032_v30 = vpop.permute.xlu0 %3031  ;;  %v3324_v25 = vmul.f32 %v4501_v43, %v4485_v60  ;;  %4518 = vpow2.f32 %v2403_v23  ;;  %v2411_v60 = vmul.f32 1.442695, %v2313_v41 }
 0x3d4   :  { %3536 = vrot.lane.b32.xlu0 %v3323_v61, %s4680_s21  ;;  %v3199_v54 = vadd.f32 %v6573_v37, %v3032_v30  ;;  %v6579_v26 = vpop.eup %4504 }
 0x3d5   :  { %v3034_v44 = vpop.permute.xlu1 %3033  ;;  %3538 = vrot.lane.b32.xlu1 %v3324_v25, %s4680_s21 }
 0x3d6   :  { %v4507_v13 = vpop.eup %4506  ;;  %4520 = vrcp.f32 %v3199_v54  ;;  %v3200_v47 = vadd.f32 %v6579_v26, %v3034_v44 }
 0x3d7   :  { %4522 = vpow2.f32 %v2405_v19  ;;  %v2660_v2 = vpop.permute.xlu0 %2659  ;;  %v7252_v19 = vld [vmem:[#allocation58_spill] sm:$0xff] }
 0x3d8   :  { %v4509_v50 = vpop.eup %4508  ;;  %4524 = vrcp.f32 %v3200_v47  ;;  %3099 = vrot.lane.b32.xlu0 %v4507_v13, %s4679_s4  ;;  %v2789_v59 = vsub.f32 %v7198_v63, %v2660_v2  ;;  %v2312_v58 = vsub.f32 %v7207_v11, %v7252_v19 }
 0x3d9   :  { %v6587_v31 = vpop.eup %4510  ;;  %4526 = vpow2.f32 %v2399_v3  ;;  %v2662_v46 = vpop.permute.xlu1 %2661  ;;  %3101 = vrot.lane.b32.xlu1 %v4509_v50, %s4679_s4  ;;  %v2407_v3 = vmul.f32 1.442695, %v2311_v18 }
 0x3da   :  { %v4513_v17 = vpop.eup %4512  ;;  %4528 = vpow2.f32 %v2401_v32  ;;  %v2915_v57 = vmul.f32 1.442695, %v2789_v59  ;;  %v2790_v34 = vsub.f32 %v7200_v52, %v2662_v46  ;;  %v3201_v10 = vadd.f32 %v6587_v31, %v3036_v29  ;;  %v7253_v29 = vld [vmem:[#allocation54_spill] sm:$0xff] }
 0x3db   :  { %v6591_v23 = vpop.eup %4514  ;;  %4530 = vpow2.f32 %v2411_v60  ;;  %v2656_v61 = vpop.permute.xlu0 %2655 }
 0x3dc   :  { %v4517_v43 = vpop.eup %4516  ;;  %4532 = vpow2.f32 %v2915_v57  ;;  %v2917_v21 = vmul.f32 1.442695, %v2790_v34  ;;  %3095 = vrot.lane.b32.xlu0 %v4513_v17, %s4679_s4  ;;  %v2787_v39 = vsub.f32 %v6165_v48, %v2656_v61  ;;  %v3202_v41 = vadd.f32 %v6591_v23, %v3038_v45 }
 0x3dd   :  { %4534 = vpow2.f32 %v2413_v40  ;;  %v2658_v30 = vpop.permute.xlu1 %2657  ;;  %3097 = vrot.lane.b32.xlu1 %v4517_v43, %s4679_s4  ;;  %v6603_v54 = vpop.eup %4518  ;;  %v2409_v45 = vmul.f32 1.442695, %v2312_v58  ;;  %v7255_v43 = vld [vmem:[#allocation60_spill] sm:$0xff] }
 0x3de   :  { %4536 = vpow2.f32 %v2917_v21  ;;  %v2911_v62 = vmul.f32 1.442695, %v2787_v39  ;;  %v2788_v25 = vsub.f32 %v7253_v29, %v2658_v30  ;;  %v2318_v21 = vsub.f32 %v5806_v56, %v7255_v43 }
 0x3df   :  { %4538 = vrcp.f32 %v3201_v10  ;;  %v3044_v24 = vpop.permute.xlu0 %3043  ;;  %v7254_v10 = vld [vmem:[#allocation59_spill] sm:$0xff] }
 0x3e0   :  { %v4521_v4 = vpop.eup %4520  ;;  %4540 = vpow2.f32 %v2911_v62  ;;  %v2913_v44 = vmul.f32 1.442695, %v2788_v25  ;;  %v3205_v13 = vadd.f32 %v6603_v54, %v3044_v24  ;;  %v7256_v24 = vld [vmem:[#allocation61_spill] sm:$0xff] }
 0x3e1   :  { %v6606_v11 = vpop.eup %4522  ;;  %4542 = vrcp.f32 %v3202_v41  ;;  %v3046_v32 = vpop.permute.xlu1 %3045  ;;  %v3327_v47 = vmul.f32 %v4521_v4, %v6573_v37  ;;  %v2315_v4 = vsub.f32 %v5803_v42, %v7256_v24 }
 0x3e2   :  { %v4525_v60 = vpop.eup %4524  ;;  %4544 = vpow2.f32 %v2913_v44  ;;  %v3206_v2 = vadd.f32 %v6606_v11, %v3046_v32 }
 0x3e3   :  { %v6610_v50 = vpop.eup %4526  ;;  %4546 = vpow2.f32 %v2407_v3  ;;  %3544 = vrot.lane.b32.xlu0 %v3327_v47, %s4680_s21  ;;  %v3040_v59 = vpop.permute.xlu0 %3039  ;;  %v3328_v40 = vmul.f32 %v4525_v60, %v6579_v26  ;;  %v2317_v26 = vsub.f32 %v5798_v16, %v7254_v10  ;;  %v2421_v3 = vmul.f32 1.442695, %v2318_v21 }
 0x3e4   :  { %v6614_v46 = vpop.eup %4528  ;;  %4548 = vrcp.f32 %v3205_v13  ;;  %v3203_v17 = vadd.f32 %v6610_v50, %v3040_v59  ;;  %v7257_v13 = vld [vmem:[#allocation62_spill] sm:$0xff] }
 0x3e5   :  { %v6617_v57 = vpop.eup %4530  ;;  %4550 = vpow2.f32 %v2409_v45  ;;  %v3042_v37 = vpop.permute.xlu1 %3041  ;;  %3546 = vrot.lane.b32.xlu1 %v3328_v40, %s4680_s21  ;;  %v2419_v30 = vmul.f32 1.442695, %v2317_v26  ;;  %v2316_v45 = vsub.f32 %v5816_v15, %v7257_v13  ;;  %v2415_v15 = vmul.f32 1.442695, %v2315_v4 }
 0x3e6   :  { %v4533_v34 = vpop.eup %4532  ;;  %4552 = vrcp.f32 %v3206_v2  ;;  %v3204_v55 = vadd.f32 %v6614_v46, %v3042_v37 }
 0x3e7   :  { %v6621_v18 = vpop.eup %4534  ;;  %3107 = vrot.lane.b32.xlu0 %v4533_v34, %s4679_s4  ;;  %4554 = vrcp.f32 %v3203_v17 }
 0x3e8   :  { %v4537_v61 = vpop.eup %4536  ;;  %4556 = vrcp.f32 %v3204_v55 }
 0x3e9   :  { %v4539_v39 = vpop.eup %4538  ;;  %3109 = vrot.lane.b32.xlu1 %v4537_v61, %s4679_s4  ;;  %v3052_v58 = vpop.permute.xlu0 %3051 }
 0x3ea   :  { %v4541_v19 = vpop.eup %4540  ;;  %v3209_v62 = vadd.f32 %v6617_v57, %v3052_v58  ;;  %v3329_v32 = vmul.f32 %v4539_v39, %v6587_v31  ;;  %v2417_v31 = vmul.f32 1.442695, %v2316_v45  ;;  %v7258_v39 = vld [vmem:[#allocation63_spill] sm:$0xff]  ;;  %v7260_v45 = vld [vmem:[#allocation65_spill] sm:$0xff] }
 0x3eb   :  { %v4543_v41 = vpop.eup %4542  ;;  %v3054_v25 = vpop.permute.xlu1 %3053  ;;  %3103 = vrot.lane.b32.xlu0 %v4541_v19, %s4679_s4  ;;  %v2321_v19 = vsub.f32 %v5858_v35, %v7258_v39 }
 0x3ec   :  { %v4545_v16 = vpop.eup %4544  ;;  %v3210_v56 = vadd.f32 %v6621_v18, %v3054_v25  ;;  %4558 = vrcp.f32 %v3209_v62  ;;  %v3330_v40 = vmul.f32 %v4543_v41, %v6591_v23 }
 0x3ed   :  { %v6634_v44 = vpop.eup %4546  ;;  %3105 = vrot.lane.b32.xlu1 %v4545_v16, %s4679_s4  ;;  %v3048_v60 = vpop.permute.xlu0 %3047  ;;  %v2427_v24 = vmul.f32 1.442695, %v2321_v19 }
 0x3ee   :  { %v4549_v47 = vpop.eup %4548  ;;  %4560 = vrcp.f32 %v3210_v56  ;;  %v3207_v42 = vadd.f32 %v6634_v44, %v3048_v60  ;;  %v7261_v60 = vld [vmem:[#allocation66_spill] sm:$0xff] }
 0x3ef   :  { %v6640_v2 = vpop.eup %4550  ;;  %4562 = vpow2.f32 %v2419_v30  ;;  %v3050_v59 = vpop.permute.xlu1 %3049  ;;  %3548 = vrot.lane.b32.xlu0 %v3329_v32, %s4680_s21  ;;  %v3333_v34 = vmul.f32 %v4549_v47, %v6603_v54  ;;  %v7259_v30 = vld [vmem:[#allocation64_spill] sm:$0xff]  ;;  %v2319_v32 = vsub.f32 %v5863_v51, %v7260_v45 }
 0x3f0   :  { %v4553_v17 = vpop.eup %4552  ;;  %4564 = vpow2.f32 %v2421_v3  ;;  %v3208_v37 = vadd.f32 %v6640_v2, %v3050_v59  ;;  %v2322_v62 = vsub.f32 %v5866_v7, %v7259_v30 }
 0x3f1   :  { %4566 = vrcp.f32 %v3207_v42  ;;  %3550 = vrot.lane.b32.xlu1 %v3330_v40, %s4680_s21  ;;  %v4555_v55 = vpop.eup %4554  ;;  %v3334_v26 = vmul.f32 %v4553_v17, %v6606_v11  ;;  %v2320_v42 = vsub.f32 %v5876_v6, %v7261_v60 }
 0x3f2   :  { %4568 = vrcp.f32 %v3208_v37  ;;  %v3501_v10 = vpop.permute.xlu0 %3500  ;;  %v4557_v61 = vpop.eup %4556  ;;  %v3331_v54 = vmul.f32 %v4555_v55, %v6610_v50  ;;  %v2429_v13 = vmul.f32 1.442695, %v2322_v62  ;;  %v2423_v37 = vmul.f32 1.442695, %v2319_v32 }
 0x3f3   :  { %3691 = vst.msk [vmem:[%s7000_s5 + $0x10] sm:$0xff] %vm3688_vm2, %v3501_v10  ;;  %v3503_v23 = vpop.permute.xlu1 %3502  ;;  %3556 = vrot.lane.b32.xlu0 %v3333_v34, %s4680_s21  ;;  %4570 = vpow2.f32 %v2415_v15  ;;  %v3332_v58 = vmul.f32 %v4557_v61, %v6614_v46  ;;  %v2425_v6 = vmul.f32 1.442695, %v2320_v42  ;;  %v7262_v10 = vld [vmem:[#allocation67_spill] sm:$0xff] }
 0x3f4   :  { %3692 = vst.msk [vmem:[%s7000_s5 + $0x18] sm:$0xff] %vm3688_vm2, %v3503_v23  ;;  %4572 = vpow2.f32 %v2417_v31  ;;  %v2325_v23 = vsub.f32 %v5918_v33, %v7262_v10 }
 0x3f5   :  { %3558 = vrot.lane.b32.xlu1 %v3334_v26, %s4680_s21 }
 0x3f6   :  { %v3497_v43 = vpop.permute.xlu0 %3496  ;;  %v4559_v21 = vpop.eup %4558 }
 0x3f7   :  { %3689 = vst.msk [vmem:[%s7000_s5] sm:$0xff] %vm3688_vm2, %v3497_v43  ;;  %v3499_v11 = vpop.permute.xlu1 %3498  ;;  %3552 = vrot.lane.b32.xlu0 %v3331_v54, %s4680_s21  ;;  %v3337_v50 = vmul.f32 %v4559_v21, %v6617_v57  ;;  %v7263_v54 = vld [vmem:[#allocation68_spill] sm:$0xff] }
 0x3f8   :  { %v4561_v41 = vpop.eup %4560  ;;  %3690 = vst.msk [vmem:[%s7000_s5 + $0x8] sm:$0xff] %vm3688_vm2, %v3499_v11  ;;  %v2326_v43 = vsub.f32 %v5926_v12, %v7263_v54 }
 0x3f9   :  { %v4563_v35 = vpop.eup %4562  ;;  %3554 = vrot.lane.b32.xlu1 %v3332_v58, %s4680_s21  ;;  %v3338_v7 = vmul.f32 %v4561_v41, %v6621_v18  ;;  %v2435_v41 = vmul.f32 1.442695, %v2325_v23 }
 0x3fa   :  { %v4565_v25 = vpop.eup %4564  ;;  %v3060_v16 = vpop.permute.xlu0 %3059  ;;  %v2437_v12 = vmul.f32 1.442695, %v2326_v43 }
 0x3fb   :  { %v4567_v3 = vpop.eup %4566  ;;  %v3213_v4 = vadd.f32 %v4563_v35, %v3060_v16  ;;  %v3062_v46 = vpop.permute.xlu1 %3061  ;;  %3564 = vrot.lane.b32.xlu0 %v3337_v50, %s4680_s21  ;;  %v7264_v16 = vld [vmem:[#allocation69_spill] sm:$0xff] }
 0x3fc   :  { %v4569_v56 = vpop.eup %4568  ;;  %v3214_v47 = vadd.f32 %v4565_v25, %v3062_v46  ;;  %v3335_v57 = vmul.f32 %v4567_v3, %v6634_v44  ;;  %v2323_v3 = vsub.f32 %v5923_v27, %v7264_v16 }
 0x3fd   :  { %4574 = vrcp.f32 %v3213_v4  ;;  %3566 = vrot.lane.b32.xlu1 %v3338_v7, %s4680_s21  ;;  %v4571_v59 = vpop.eup %4570  ;;  %v3336_v51 = vmul.f32 %v4569_v56, %v6640_v2 }
 0x3fe   :  { %4576 = vrcp.f32 %v3214_v47  ;;  %v3056_v40 = vpop.permute.xlu0 %3055  ;;  %v4573_v17 = vpop.eup %4572  ;;  %v2431_v27 = vmul.f32 1.442695, %v2323_v3 }
 0x3ff   :  { %4578 = vpow2.f32 %v2427_v24  ;;  %v3211_v18 = vadd.f32 %v4571_v59, %v3056_v40  ;;  %v3058_v15 = vpop.permute.xlu1 %3057  ;;  %3560 = vrot.lane.b32.xlu0 %v3335_v57, %s4680_s21  ;;  %v7266_v40 = vld [vmem:[#allocation71_spill] sm:$0xff] }
 0x400   :  { %4580 = vpow2.f32 %v2429_v13  ;;  %v3212_v31 = vadd.f32 %v4573_v17, %v3058_v15 }
 0x401   :  { %4582 = vrcp.f32 %v3211_v18  ;;  %3562 = vrot.lane.b32.xlu1 %v3336_v51, %s4680_s21  ;;  %v7267_v51 = vld [vmem:[#allocation72_spill] sm:$0xff] }
 0x402   :  { %4584 = vrcp.f32 %v3212_v31  ;;  %v3509_v44 = vpop.permute.xlu0 %3508 }
 0x403   :  { %3695 = vst.msk [vmem:[%s7000_s5 + $0x30] sm:$0xff] %vm3688_vm2, %v3509_v44  ;;  %v3511_v34 = vpop.permute.xlu1 %3510  ;;  %4586 = vpow2.f32 %v2423_v37  ;;  %v2330_v37 = vsub.f32 %v5986_v1, %v7267_v51 }
 0x404   :  { %3696 = vst.msk [vmem:[%s7000_s5 + $0x38] sm:$0xff] %vm3688_vm2, %v3511_v34  ;;  %4588 = vpow2.f32 %v2425_v6 }
 0x405   :  { %v2445_v1 = vmul.f32 1.442695, %v2330_v37 }
 0x406   :  { %v3505_v2 = vpop.permute.xlu0 %3504 }
 0x407   :  { %v4575_v55 = vpop.eup %4574  ;;  %3693 = vst.msk [vmem:[%s7000_s5 + $0x20] sm:$0xff] %vm3688_vm2, %v3505_v2  ;;  %v3507_v26 = vpop.permute.xlu1 %3506 }
 0x408   :  { %v4577_v61 = vpop.eup %4576  ;;  %3694 = vst.msk [vmem:[%s7000_s5 + $0x28] sm:$0xff] %vm3688_vm2, %v3507_v26  ;;  %v3341_v21 = vmul.f32 %v4575_v55, %v4563_v35  ;;  %v7265_v35 = vld [vmem:[#allocation70_spill] sm:$0xff] }
 0x409   :  { %v4579_v39 = vpop.eup %4578  ;;  %v3342_v19 = vmul.f32 %v4577_v61, %v4565_v25  ;;  %v2324_v25 = vsub.f32 %v5936_v22, %v7265_v35  ;;  %v7268_v61 = vld [vmem:[#allocation73_spill] sm:$0xff] }
 0x40a   :  { %v4581_v11 = vpop.eup %4580  ;;  %3572 = vrot.lane.b32.xlu0 %v3341_v21, %s4680_s21  ;;  %v3068_v33 = vpop.permute.xlu0 %3067  ;;  %v2327_v54 = vsub.f32 %v5983_v0, %v7268_v61 }
 0x40b   :  { %v4583_v58 = vpop.eup %4582  ;;  %v3217_v30 = vadd.f32 %v4579_v39, %v3068_v33  ;;  %3574 = vrot.lane.b32.xlu1 %v3342_v19, %s4680_s21  ;;  %v3070_v62 = vpop.permute.xlu1 %3069  ;;  %v2433_v60 = vmul.f32 1.442695, %v2324_v25 }
 0x40c   :  { %v4585_v50 = vpop.eup %4584  ;;  %v3218_v24 = vadd.f32 %v4581_v11, %v3070_v62  ;;  %v3339_v4 = vmul.f32 %v4583_v58, %v4571_v59  ;;  %v2439_v0 = vmul.f32 1.442695, %v2327_v54 }
 0x40d   :  { %4590 = vrcp.f32 %v3217_v30  ;;  %v3340_v46 = vmul.f32 %v4585_v50, %v4573_v17  ;;  %v4587_v7 = vpop.eup %4586  ;;  %v2329_v17 = vsub.f32 %v5978_v38, %v7266_v40 }
 0x40e   :  { %4592 = vrcp.f32 %v3218_v24  ;;  %3568 = vrot.lane.b32.xlu0 %v3339_v4, %s4680_s21  ;;  %v3064_v56 = vpop.permute.xlu0 %3063  ;;  %v4589_v13 = vpop.eup %4588  ;;  %v7270_v4 = vld [vmem:[#allocation75_spill] sm:$0xff] }
 0x40f   :  { %4594 = vpow2.f32 %v2435_v41  ;;  %v3215_v45 = vadd.f32 %v4587_v7, %v3064_v56  ;;  %3570 = vrot.lane.b32.xlu1 %v3340_v46, %s4680_s21  ;;  %v3066_v32 = vpop.permute.xlu1 %3065  ;;  %v2443_v55 = vmul.f32 1.442695, %v2329_v17  ;;  %v2333_v35 = vsub.f32 %v6038_v14, %v7270_v4 }
 0x410   :  { %4596 = vpow2.f32 %v2437_v12  ;;  %v3216_v47 = vadd.f32 %v4589_v13, %v3066_v32 }
 0x411   :  { %4598 = vrcp.f32 %v3215_v45 }
 0x412   :  { %4600 = vrcp.f32 %v3216_v47  ;;  %v3517_v22 = vpop.permute.xlu0 %3516 }
 0x413   :  { %3699 = vst.msk [vmem:[%s7000_s5 + $0x50] sm:$0xff] %vm3688_vm2, %v3517_v22  ;;  %v3519_v42 = vpop.permute.xlu1 %3518  ;;  %4602 = vpow2.f32 %v2431_v27 }
 0x414   :  { %3700 = vst.msk [vmem:[%s7000_s5 + $0x58] sm:$0xff] %vm3688_vm2, %v3519_v42  ;;  %4604 = vpow2.f32 %v2433_v60  ;;  %v2451_v60 = vmul.f32 1.442695, %v2333_v35 }
 0x416   :  { %v3513_v57 = vpop.permute.xlu0 %3512 }
 0x417   :  { %v4591_v59 = vpop.eup %4590  ;;  %3697 = vst.msk [vmem:[%s7000_s5 + $0x40] sm:$0xff] %vm3688_vm2, %v3513_v57  ;;  %v3515_v18 = vpop.permute.xlu1 %3514 }
 0x418   :  { %v4593_v15 = vpop.eup %4592  ;;  %3698 = vst.msk [vmem:[%s7000_s5 + $0x48] sm:$0xff] %vm3688_vm2, %v3515_v18  ;;  %v3345_v31 = vmul.f32 %v4591_v59, %v4579_v39  ;;  %v7269_v39 = vld [vmem:[#allocation74_spill] sm:$0xff]  ;;  %v7272_v59 = vld [vmem:[#allocation77_spill] sm:$0xff] }
 0x419   :  { %v4595_v6 = vpop.eup %4594  ;;  %v3346_v44 = vmul.f32 %v4593_v15, %v4581_v11  ;;  %v2328_v19 = vsub.f32 %v5996_v20, %v7269_v39  ;;  %v2331_v40 = vsub.f32 %v7228_v53, %v7272_v59  ;;  %v7273_v15 = vld [vmem:[#allocation78_spill] sm:$0xff] }
 0x41a   :  { %v4597_v34 = vpop.eup %4596  ;;  %3580 = vrot.lane.b32.xlu0 %v3345_v31, %s4680_s21  ;;  %v3076_v38 = vpop.permute.xlu0 %3075  ;;  %v2332_v51 = vsub.f32 %v7229_v9, %v7273_v15 }
 0x41b   :  { %v4599_v2 = vpop.eup %4598  ;;  %v3221_v10 = vadd.f32 %v4595_v6, %v3076_v38  ;;  %3582 = vrot.lane.b32.xlu1 %v3346_v44, %s4680_s21  ;;  %v3078_v23 = vpop.permute.xlu1 %3077  ;;  %v2441_v12 = vmul.f32 1.442695, %v2328_v19  ;;  %v2447_v53 = vmul.f32 1.442695, %v2331_v40 }
 0x41c   :  { %v4601_v26 = vpop.eup %4600  ;;  %v3222_v43 = vadd.f32 %v4597_v34, %v3078_v23  ;;  %v3343_v21 = vmul.f32 %v4599_v2, %v4587_v7  ;;  %v7271_v7 = vld [vmem:[#allocation76_spill] sm:$0xff] }
 0x41d   :  { %4606 = vrcp.f32 %v3221_v10  ;;  %v3344_v11 = vmul.f32 %v4601_v26, %v4589_v13  ;;  %v4603_v33 = vpop.eup %4602  ;;  %v2334_v56 = vsub.f32 %v6046_v5, %v7271_v7 }
 0x41e   :  { %4608 = vrcp.f32 %v3222_v43  ;;  %3576 = vrot.lane.b32.xlu0 %v3343_v21, %s4680_s21  ;;  %v3072_v58 = vpop.permute.xlu0 %3071  ;;  %v4605_v41 = vpop.eup %4604  ;;  %v7275_v21 = vld [vmem:[#allocation80_spill] sm:$0xff] }
 0x41f   :  { %4610 = vpow2.f32 %v2443_v55  ;;  %v3219_v30 = vadd.f32 %v4603_v33, %v3072_v58  ;;  %3578 = vrot.lane.b32.xlu1 %v3344_v11, %s4680_s21  ;;  %v3074_v62 = vpop.permute.xlu1 %3073  ;;  %v2453_v5 = vmul.f32 1.442695, %v2334_v56  ;;  %v2449_v55 = vmul.f32 1.442695, %v2332_v51  ;;  %v7279_v51 = vld [vmem:[#allocation11_spill] sm:$0xff] }
 0x420   :  { %4612 = vpow2.f32 %v2445_v1  ;;  %v3220_v50 = vadd.f32 %v4605_v41, %v3074_v62  ;;  %v7274_v1 = vld [vmem:[#allocation79_spill] sm:$0xff]  ;;  %v2338_v39 = vsub.f32 %v7239_v28, %v7275_v21 }
 0x421   :  { %4614 = vrcp.f32 %v3219_v30  ;;  %v2337_v61 = vsub.f32 %v7236_v8, %v7274_v1 }
 0x422   :  { %4616 = vrcp.f32 %v3220_v50  ;;  %v3525_v20 = vpop.permute.xlu0 %3524  ;;  %v2461_v28 = vmul.f32 1.442695, %v2338_v39 }
 0x423   :  { %3703 = vst.msk [vmem:[%s7000_s5 + $0x70] sm:$0xff] %vm3688_vm2, %v3525_v20  ;;  %v3527_v16 = vpop.permute.xlu1 %3526  ;;  %4618 = vpow2.f32 %v2439_v0  ;;  %v2459_v30 = vmul.f32 1.442695, %v2337_v61 }
 0x424   :  { %3704 = vst.msk [vmem:[%s7000_s5 + $0x78] sm:$0xff] %vm3688_vm2, %v3527_v16  ;;  %4620 = vpow2.f32 %v2441_v12  ;;  %v7276_v12 = vld [vmem:[#allocation81_spill] sm:$0xff] }
 0x425   :  { %v2335_v20 = vsub.f32 %v7240_v49, %v7276_v12 }
 0x426   :  { %v3521_v3 = vpop.permute.xlu0 %3520 }
 0x427   :  { %v4607_v24 = vpop.eup %4606  ;;  %3701 = vst.msk [vmem:[%s7000_s5 + $0x60] sm:$0xff] %vm3688_vm2, %v3521_v3  ;;  %v3523_v25 = vpop.permute.xlu1 %3522  ;;  %v2455_v49 = vmul.f32 1.442695, %v2335_v20 }
 0x428   :  { %v4609_v46 = vpop.eup %4608  ;;  %3702 = vst.msk [vmem:[%s7000_s5 + $0x68] sm:$0xff] %vm3688_vm2, %v3523_v25  ;;  %v3349_v13 = vmul.f32 %v4607_v24, %v4595_v6  ;;  %v7277_v24 = vld [vmem:[#allocation82_spill] sm:$0xff] }
 0x429   :  { %v4611_v45 = vpop.eup %4610  ;;  %v3350_v32 = vmul.f32 %v4609_v46, %v4597_v34  ;;  %v2336_v4 = vsub.f32 %v7243_v36, %v7277_v24 }
 0x42a   :  { %v4613_v27 = vpop.eup %4612  ;;  %3588 = vrot.lane.b32.xlu0 %v3349_v13, %s4680_s21  ;;  %v3084_v14 = vpop.permute.xlu0 %3083 }
 0x42b   :  { %v4615_v47 = vpop.eup %4614  ;;  %v3225_v22 = vadd.f32 %v4611_v45, %v3084_v14  ;;  %3590 = vrot.lane.b32.xlu1 %v3350_v32, %s4680_s21  ;;  %v3086_v42 = vpop.permute.xlu1 %3085  ;;  %v2457_v32 = vmul.f32 1.442695, %v2336_v4 }
 0x42c   :  { %v4617_v57 = vpop.eup %4616  ;;  %v3226_v17 = vadd.f32 %v4613_v27, %v3086_v42  ;;  %v3347_v18 = vmul.f32 %v4615_v47, %v4603_v33  ;;  %v7278_v42 = vld [vmem:[#allocation12_spill] sm:$0xff] }
 0x42d   :  { %4622 = vrcp.f32 %v3225_v22  ;;  %v3348_v37 = vmul.f32 %v4617_v57, %v4605_v41  ;;  %v4619_v31 = vpop.eup %4618  ;;  %v2341_v57 = vsub.f32 %v7198_v63, %v7278_v42 }
 0x42e   :  { %4624 = vrcp.f32 %v3226_v17  ;;  %3584 = vrot.lane.b32.xlu0 %v3347_v18, %s4680_s21  ;;  %v3080_v6 = vpop.permute.xlu0 %3079  ;;  %v4621_v44 = vpop.eup %4620 }
 0x42f   :  { %4626 = vpow2.f32 %v2451_v60  ;;  %v3223_v34 = vadd.f32 %v4619_v31, %v3080_v6  ;;  %3586 = vrot.lane.b32.xlu1 %v3348_v37, %s4680_s21  ;;  %v3082_v38 = vpop.permute.xlu1 %3081  ;;  %v2339_v37 = vsub.f32 %v6165_v48, %v7279_v51 }
 0x430   :  { %4628 = vpow2.f32 %v2453_v5  ;;  %v3224_v2 = vadd.f32 %v4621_v44, %v3082_v38 }
 0x431   :  { %4630 = vrcp.f32 %v3223_v34  ;;  %v7280_v34 = vld [vmem:[#allocation13_spill] sm:$0xff]  ;;  %v2463_v1 = vmul.f32 1.442695, %v2339_v37 }
 0x432   :  { %4632 = vrcp.f32 %v3224_v2  ;;  %v3533_v9 = vpop.permute.xlu0 %3532  ;;  %v2342_v38 = vsub.f32 %v7200_v52, %v7280_v34 }
 0x433   :  { %3707 = vst.msk [vmem:[%s7000_s5 + $0x90] sm:$0xff] %vm3688_vm2, %v3533_v9  ;;  %v3535_v10 = vpop.permute.xlu1 %3534  ;;  %4634 = vpow2.f32 %v2447_v53 }
 0x434   :  { %3708 = vst.msk [vmem:[%s7000_s5 + $0x98] sm:$0xff] %vm3688_vm2, %v3535_v10  ;;  %4636 = vpow2.f32 %v2449_v55  ;;  %v7281_v55 = vld [vmem:[#allocation14_spill] sm:$0xff]  ;;  %v2469_v52 = vmul.f32 1.442695, %v2342_v38 }
 0x435   :  { %v2340_v9 = vsub.f32 %v7253_v29, %v7281_v55 }
 0x436   :  { %v3529_v23 = vpop.permute.xlu0 %3528 }
 0x437   :  { %v4623_v26 = vpop.eup %4622  ;;  %3705 = vst.msk [vmem:[%s7000_s5 + $0x80] sm:$0xff] %vm3688_vm2, %v3529_v23  ;;  %v3531_v54 = vpop.permute.xlu1 %3530  ;;  %v2465_v21 = vmul.f32 1.442695, %v2340_v9 }
 0x438   :  { %v4625_v43 = vpop.eup %4624  ;;  %3706 = vst.msk [vmem:[%s7000_s5 + $0x88] sm:$0xff] %vm3688_vm2, %v3531_v54  ;;  %v3353_v19 = vmul.f32 %v4623_v26, %v4611_v45 }
 0x439   :  { %v4627_v11 = vpop.eup %4626  ;;  %v3354_v33 = vmul.f32 %v4625_v43, %v4613_v27 }
 0x43a   :  { %v4629_v58 = vpop.eup %4628  ;;  %3596 = vrot.lane.b32.xlu0 %v3353_v19, %s4680_s21  ;;  %v3092_v8 = vpop.permute.xlu0 %3091 }
 0x43b   :  { %v4631_v41 = vpop.eup %4630  ;;  %v3229_v62 = vadd.f32 %v4627_v11, %v3092_v8  ;;  %3598 = vrot.lane.b32.xlu1 %v3354_v33, %s4680_s21  ;;  %v3094_v0 = vpop.permute.xlu1 %3093 }
 0x43c   :  { %v4633_v50 = vpop.eup %4632  ;;  %v3230_v16 = vadd.f32 %v4629_v58, %v3094_v0  ;;  %v3351_v3 = vmul.f32 %v4631_v41, %v4619_v31 }
 0x43d   :  { %4638 = vrcp.f32 %v3229_v62  ;;  %v3352_v35 = vmul.f32 %v4633_v50, %v4621_v44  ;;  %v4635_v25 = vpop.eup %4634  ;;  %v2467_v44 = vmul.f32 1.442695, %v2341_v57 }
 0x43e   :  { %4640 = vrcp.f32 %v3230_v16  ;;  %3592 = vrot.lane.b32.xlu0 %v3351_v3, %s4680_s21  ;;  %v3088_v46 = vpop.permute.xlu0 %3087  ;;  %v4637_v7 = vpop.eup %4636 }
 0x43f   :  { %4642 = vpow2.f32 %v2459_v30  ;;  %v3227_v56 = vadd.f32 %v4635_v25, %v3088_v46  ;;  %3594 = vrot.lane.b32.xlu1 %v3352_v35, %s4680_s21  ;;  %v3090_v13 = vpop.permute.xlu1 %3089 }
 0x440   :  { %4644 = vpow2.f32 %v2461_v28  ;;  %v3228_v45 = vadd.f32 %v4637_v7, %v3090_v13 }
 0x441   :  { %4646 = vrcp.f32 %v3227_v56 }
 0x442   :  { %4648 = vrcp.f32 %v3228_v45  ;;  %v3541_v36 = vpop.permute.xlu0 %3540 }
 0x443   :  { %3711 = vst.msk [vmem:[%s7000_s5 + $0xb0] sm:$0xff] %vm3688_vm2, %v3541_v36  ;;  %v3543_v27 = vpop.permute.xlu1 %3542  ;;  %4650 = vpow2.f32 %v2455_v49 }
 0x444   :  { %3712 = vst.msk [vmem:[%s7000_s5 + $0xb8] sm:$0xff] %vm3688_vm2, %v3543_v27  ;;  %4652 = vpow2.f32 %v2457_v32 }
 0x446   :  { %v3537_v14 = vpop.permute.xlu0 %3536 }
 0x447   :  { %v4639_v47 = vpop.eup %4638  ;;  %3709 = vst.msk [vmem:[%s7000_s5 + $0xa0] sm:$0xff] %vm3688_vm2, %v3537_v14  ;;  %v3539_v60 = vpop.permute.xlu1 %3538 }
 0x448   :  { %v4641_v22 = vpop.eup %4640  ;;  %3710 = vst.msk [vmem:[%s7000_s5 + $0xa8] sm:$0xff] %vm3688_vm2, %v3539_v60  ;;  %v3357_v5 = vmul.f32 %v4639_v47, %v4627_v11 }
 0x449   :  { %v4643_v59 = vpop.eup %4642  ;;  %v3358_v40 = vmul.f32 %v4641_v22, %v4629_v58 }
 0x44a   :  { %v4645_v17 = vpop.eup %4644  ;;  %3604 = vrot.lane.b32.xlu0 %v3357_v5, %s4680_s21  ;;  %v3100_v18 = vpop.permute.xlu0 %3099 }
 0x44b   :  { %v4647_v15 = vpop.eup %4646  ;;  %v3233_v31 = vadd.f32 %v4643_v59, %v3100_v18  ;;  %3606 = vrot.lane.b32.xlu1 %v3358_v40, %s4680_s21  ;;  %v3102_v63 = vpop.permute.xlu1 %3101 }
 0x44c   :  { %v4649_v6 = vpop.eup %4648  ;;  %v3234_v53 = vadd.f32 %v4645_v17, %v3102_v63  ;;  %v3355_v2 = vmul.f32 %v4647_v15, %v4635_v25 }
 0x44d   :  { %4654 = vrcp.f32 %v3233_v31  ;;  %v3356_v10 = vmul.f32 %v4649_v6, %v4637_v7  ;;  %v4651_v23 = vpop.eup %4650 }
 0x44e   :  { %4656 = vrcp.f32 %v3234_v53  ;;  %3600 = vrot.lane.b32.xlu0 %v3355_v2, %s4680_s21  ;;  %v3096_v48 = vpop.permute.xlu0 %3095  ;;  %v4653_v26 = vpop.eup %4652 }
 0x44f   :  { %v3231_v61 = vadd.f32 %v4651_v23, %v3096_v48  ;;  %3602 = vrot.lane.b32.xlu1 %v3356_v10, %s4680_s21  ;;  %v3098_v54 = vpop.permute.xlu1 %3097  ;;  %4658 = vpow2.f32 %v2467_v44 }
 0x450   :  { %v3232_v43 = vadd.f32 %v4653_v26, %v3098_v54 }
 0x451   :  { %4660 = vrcp.f32 %v3231_v61 }
 0x452   :  { %4662 = vrcp.f32 %v3232_v43 }
 0x453   :  { %4664 = vpow2.f32 %v2463_v1 }
 0x454   :  { %4666 = vpow2.f32 %v2469_v52 }
 0x455   :  { %4668 = vpow2.f32 %v2465_v21  ;;  %v3545_v29 = vpop.permute.xlu0 %3544 }
 0x456   :  { %3713 = vst.msk [vmem:[%s7000_s5 + $0xc0] sm:$0xff] %vm3688_vm2, %v3545_v29 }
 0x457   :  { %v4655_v39 = vpop.eup %4654  ;;  %v3547_v19 = vpop.permute.xlu1 %3546 }
 0x458   :  { %v4657_v11 = vpop.eup %4656  ;;  %3714 = vst.msk [vmem:[%s7000_s5 + $0xc8] sm:$0xff] %vm3688_vm2, %v3547_v19  ;;  %v3361_v33 = vmul.f32 %v4655_v39, %v4643_v59 }
 0x459   :  { %v3108_v58 = vpop.permute.xlu0 %3107  ;;  %v3362_v8 = vmul.f32 %v4657_v11, %v4645_v17  ;;  %v4659_v41 = vpop.eup %4658 }
 0x45a   :  { %3612 = vrot.lane.b32.xlu0 %v3361_v33, %s4680_s21  ;;  %v3237_v12 = vadd.f32 %v4659_v41, %v3108_v58 }
 0x45b   :  { %v4661_v30 = vpop.eup %4660  ;;  %3614 = vrot.lane.b32.xlu1 %v3362_v8, %s4680_s21  ;;  %v3110_v62 = vpop.permute.xlu1 %3109 }
 0x45c   :  { %v4663_v0 = vpop.eup %4662  ;;  %v3359_v50 = vmul.f32 %v4661_v30, %v4651_v23 }
 0x45d   :  { %v4665_v28 = vpop.eup %4664  ;;  %v3104_v20 = vpop.permute.xlu0 %3103  ;;  %v3360_v16 = vmul.f32 %v4663_v0, %v4653_v26 }
 0x45e   :  { %v4667_v3 = vpop.eup %4666  ;;  %3608 = vrot.lane.b32.xlu0 %v3359_v50, %s4680_s21  ;;  %v3235_v24 = vadd.f32 %v4665_v28, %v3104_v20 }
 0x45f   :  { %v4669_v4 = vpop.eup %4668  ;;  %3610 = vrot.lane.b32.xlu1 %v3360_v16, %s4680_s21  ;;  %v3106_v35 = vpop.permute.xlu1 %3105  ;;  %v3238_v25 = vadd.f32 %v4667_v3, %v3110_v62 }
 0x460   :  { %4670 = vrcp.f32 %v3235_v24  ;;  %v3236_v46 = vadd.f32 %v4669_v4, %v3106_v35 }
 0x461   :  { %4672 = vrcp.f32 %v3237_v12  ;;  %v3549_v7 = vpop.permute.xlu0 %3548 }
 0x462   :  { %4674 = vrcp.f32 %v3236_v46  ;;  %3715 = vst.msk [vmem:[%s7000_s5 + $0xd0] sm:$0xff] %vm3688_vm2, %v3549_v7 }
 0x463   :  { %v3551_v56 = vpop.permute.xlu1 %3550  ;;  %4676 = vrcp.f32 %v3238_v25 }
 0x464   :  { %3716 = vst.msk [vmem:[%s7000_s5 + $0xd8] sm:$0xff] %vm3688_vm2, %v3551_v56 }
 0x465   :  { %v3557_v13 = vpop.permute.xlu0 %3556 }
 0x466   :  { %3719 = vst.msk [vmem:[%s7000_s5 + $0xf0] sm:$0xff] %vm3688_vm2, %v3557_v13 }
 0x467   :  { %v3559_v49 = vpop.permute.xlu1 %3558 }
 0x468   :  { %3720 = vst.msk [vmem:[%s7000_s5 + $0xf8] sm:$0xff] %vm3688_vm2, %v3559_v49 }
 0x469   :  { %v3553_v45 = vpop.permute.xlu0 %3552 }
 0x46a   :  { %v4671_v32 = vpop.eup %4670  ;;  %3717 = vst.msk [vmem:[%s7000_s5 + $0xe0] sm:$0xff] %vm3688_vm2, %v3553_v45 }
 0x46b   :  { %v4673_v36 = vpop.eup %4672  ;;  %v3555_v27 = vpop.permute.xlu1 %3554  ;;  %v3363_v14 = vmul.f32 %v4671_v32, %v4665_v28 }
 0x46c   :  { %v4675_v47 = vpop.eup %4674  ;;  %3718 = vst.msk [vmem:[%s7000_s5 + $0xe8] sm:$0xff] %vm3688_vm2, %v3555_v27  ;;  %v3365_v5 = vmul.f32 %v4673_v36, %v4659_v41 }
 0x46d   :  { %3616 = vrot.lane.b32.xlu0 %v3363_v14, %s4680_s21  ;;  %v3565_v60 = vpop.permute.xlu0 %3564  ;;  %v3364_v22 = vmul.f32 %v4675_v47, %v4669_v4  ;;  %v4677_v42 = vpop.eup %4676 }
 0x46e   :  { %3723 = vst.msk [vmem:[%s7000_s5 + $0x110] sm:$0xff] %vm3688_vm2, %v3565_v60  ;;  %v3366_v40 = vmul.f32 %v4677_v42, %v4667_v3 }
 0x46f   :  { %3618 = vrot.lane.b32.xlu1 %v3364_v22, %s4680_s21  ;;  %v3567_v57 = vpop.permute.xlu1 %3566 }
 0x470   :  { %3724 = vst.msk [vmem:[%s7000_s5 + $0x118] sm:$0xff] %vm3688_vm2, %v3567_v57 }
 0x471   :  { %3620 = vrot.lane.b32.xlu0 %v3365_v5, %s4680_s21  ;;  %v3561_v59 = vpop.permute.xlu0 %3560 }
 0x472   :  { %3721 = vst.msk [vmem:[%s7000_s5 + $0x100] sm:$0xff] %vm3688_vm2, %v3561_v59 }
 0x473   :  { %3622 = vrot.lane.b32.xlu1 %v3366_v40, %s4680_s21  ;;  %v3563_v17 = vpop.permute.xlu1 %3562 }
 0x474   :  { %3722 = vst.msk [vmem:[%s7000_s5 + $0x108] sm:$0xff] %vm3688_vm2, %v3563_v17 }
 0x47c   :  { %v3573_v18 = vpop.permute.xlu0 %3572 }
 0x47d   :  { %3727 = vst.msk [vmem:[%s7000_s5 + $0x130] sm:$0xff] %vm3688_vm2, %v3573_v18  ;;  %v3575_v15 = vpop.permute.xlu1 %3574 }
 0x47e   :  { %3728 = vst.msk [vmem:[%s7000_s5 + $0x138] sm:$0xff] %vm3688_vm2, %v3575_v15 }
 0x480   :  { %v3569_v51 = vpop.permute.xlu0 %3568 }
 0x481   :  { %3725 = vst.msk [vmem:[%s7000_s5 + $0x120] sm:$0xff] %vm3688_vm2, %v3569_v51  ;;  %v3571_v37 = vpop.permute.xlu1 %3570 }
 0x482   :  { %3726 = vst.msk [vmem:[%s7000_s5 + $0x128] sm:$0xff] %vm3688_vm2, %v3571_v37 }
 0x48c   :  { %v3581_v31 = vpop.permute.xlu0 %3580 }
 0x48d   :  { %3731 = vst.msk [vmem:[%s7000_s5 + $0x150] sm:$0xff] %vm3688_vm2, %v3581_v31  ;;  %v3583_v63 = vpop.permute.xlu1 %3582 }
 0x48e   :  { %3732 = vst.msk [vmem:[%s7000_s5 + $0x158] sm:$0xff] %vm3688_vm2, %v3583_v63 }
 0x490   :  { %v3577_v6 = vpop.permute.xlu0 %3576 }
 0x491   :  { %3729 = vst.msk [vmem:[%s7000_s5 + $0x140] sm:$0xff] %vm3688_vm2, %v3577_v6  ;;  %v3579_v44 = vpop.permute.xlu1 %3578 }
 0x492   :  { %3730 = vst.msk [vmem:[%s7000_s5 + $0x148] sm:$0xff] %vm3688_vm2, %v3579_v44 }
 0x49c   :  { %v3589_v34 = vpop.permute.xlu0 %3588 }
 0x49d   :  { %3735 = vst.msk [vmem:[%s7000_s5 + $0x170] sm:$0xff] %vm3688_vm2, %v3589_v34  ;;  %v3591_v38 = vpop.permute.xlu1 %3590 }
 0x49e   :  { %3736 = vst.msk [vmem:[%s7000_s5 + $0x178] sm:$0xff] %vm3688_vm2, %v3591_v38 }
 0x4a0   :  { %v3585_v53 = vpop.permute.xlu0 %3584 }
 0x4a1   :  { %3733 = vst.msk [vmem:[%s7000_s5 + $0x160] sm:$0xff] %vm3688_vm2, %v3585_v53  ;;  %v3587_v2 = vpop.permute.xlu1 %3586 }
 0x4a2   :  { %3734 = vst.msk [vmem:[%s7000_s5 + $0x168] sm:$0xff] %vm3688_vm2, %v3587_v2 }
 0x4ac   :  { %v3597_v55 = vpop.permute.xlu0 %3596 }
 0x4ad   :  { %3739 = vst.msk [vmem:[%s7000_s5 + $0x190] sm:$0xff] %vm3688_vm2, %v3597_v55  ;;  %v3599_v9 = vpop.permute.xlu1 %3598 }
 0x4ae   :  { %3740 = vst.msk [vmem:[%s7000_s5 + $0x198] sm:$0xff] %vm3688_vm2, %v3599_v9 }
 0x4b0   :  { %v3593_v10 = vpop.permute.xlu0 %3592 }
 0x4b1   :  { %3737 = vst.msk [vmem:[%s7000_s5 + $0x180] sm:$0xff] %vm3688_vm2, %v3593_v10  ;;  %v3595_v23 = vpop.permute.xlu1 %3594 }
 0x4b2   :  { %3738 = vst.msk [vmem:[%s7000_s5 + $0x188] sm:$0xff] %vm3688_vm2, %v3595_v23 }
 0x4bc   :  { %v3605_v48 = vpop.permute.xlu0 %3604 }
 0x4bd   :  { %3743 = vst.msk [vmem:[%s7000_s5 + $0x1b0] sm:$0xff] %vm3688_vm2, %v3605_v48  ;;  %v3607_v26 = vpop.permute.xlu1 %3606 }
 0x4be   :  { %3744 = vst.msk [vmem:[%s7000_s5 + $0x1b8] sm:$0xff] %vm3688_vm2, %v3607_v26 }
 0x4c0   :  { %v3601_v1 = vpop.permute.xlu0 %3600 }
 0x4c1   :  { %3741 = vst.msk [vmem:[%s7000_s5 + $0x1a0] sm:$0xff] %vm3688_vm2, %v3601_v1  ;;  %v3603_v61 = vpop.permute.xlu1 %3602 }
 0x4c2   :  { %3742 = vst.msk [vmem:[%s7000_s5 + $0x1a8] sm:$0xff] %vm3688_vm2, %v3603_v61 }
 0x4cc   :  { %v3613_v54 = vpop.permute.xlu0 %3612 }
 0x4cd   :  { %3747 = vst.msk [vmem:[%s7000_s5 + $0x1d0] sm:$0xff] %vm3688_vm2, %v3613_v54  ;;  %v3615_v52 = vpop.permute.xlu1 %3614 }
 0x4ce   :  { %3748 = vst.msk [vmem:[%s7000_s5 + $0x1d8] sm:$0xff] %vm3688_vm2, %v3615_v52 }
 0x4d0   :  { %v3609_v43 = vpop.permute.xlu0 %3608 }
 0x4d1   :  { %3745 = vst.msk [vmem:[%s7000_s5 + $0x1c0] sm:$0xff] %vm3688_vm2, %v3609_v43  ;;  %v3611_v21 = vpop.permute.xlu1 %3610 }
 0x4d2   :  { %3746 = vst.msk [vmem:[%s7000_s5 + $0x1c8] sm:$0xff] %vm3688_vm2, %v3611_v21 }
 0x4df   :  { %v3617_v29 = vpop.permute.xlu0 %3616 }
 0x4e0   :  { %3749 = vst.msk [vmem:[%s7000_s5 + $0x1e0] sm:$0xff] %vm3688_vm2, %v3617_v29 }
 0x4e1   :  { %v3619_v39 = vpop.permute.xlu1 %3618 }
 0x4e2   :  { %3750 = vst.msk [vmem:[%s7000_s5 + $0x1e8] sm:$0xff] %vm3688_vm2, %v3619_v39 }
 0x4e3   :  { %v3621_v19 = vpop.permute.xlu0 %3620 }
 0x4e4   :  { %3751 = vst.msk [vmem:[%s7000_s5 + $0x1f0] sm:$0xff] %vm3688_vm2, %v3621_v19 }
 0x4e5   :  { %v3623_v11 = vpop.permute.xlu1 %3622 }
 0x4e6   :  { %3752 = vst.msk [vmem:[%s7000_s5 + $0x1f8] sm:$0xff] %vm3688_vm2, %v3623_v11 }

</bundles_post_ra>
